<compile_context>
chip_gen: v5e
topology: v5e:2x2
jax: 0.10.0
libtpu: 0.0.40
codegen_flags: <defaults>
</compile_context>

<pallas_src>
import jax
import jax.numpy as jnp
from jax.experimental import pallas as pl
from jax.experimental.pallas import tpu as pltpu

NEG_SLOPE = 0.01  # nn.LeakyReLU default negative_slope


def _leaky(v):
    return jnp.where(v >= 0, v, NEG_SLOPE * v)


# ------------------------------ fused Pallas kernel --------------------------
def _inverter_kernel(p1_ref, w1_ref, b1_ref, w2_ref, b2_ref, w3_ref, b3_ref,
                     l1w_ref, l1b_ref, l2w_ref, l2b_ref, out_ref,
                     a1p_ref, a2p_ref, h3_ref):
    B = out_ref.shape[0]
    C1 = w1_ref.shape[1]
    C2 = w2_ref.shape[2]
    C3 = w3_ref.shape[2]
    H1 = a1p_ref.shape[1] - 2      # conv1 output spatial size (16)
    H2 = a2p_ref.shape[1] - 2      # conv2 output spatial size (8)
    H3 = h3_ref.shape[1]           # conv3 output rows (4)
    W3 = h3_ref.shape[2]           # conv3 output cols padded to 8 (only 0..3 valid)

    # Padded activation scratch: borders (and spare columns) must be zero.
    a1p_ref[...] = jnp.zeros_like(a1p_ref)
    a2p_ref[...] = jnp.zeros_like(a2p_ref)

    # ---- conv1 + LeakyReLU. im2col patches (B*H1*H1, 9*Cin) come pre-built
    #      from the jitted wrapper (they are derived from the raw input only).
    h1 = jnp.dot(p1_ref[...], w1_ref[...], preferred_element_type=jnp.float32)
    h1 = _leaky(h1 + b1_ref[...])                               # (B*H1*H1, C1)
    a1p_ref[:, 1:1 + H1, 1:1 + H1, :] = h1.reshape(B, H1, H1, C1)

    # ---- conv2 + LeakyReLU: 9 stride-2 taps read from padded VMEM scratch,
    #      accumulated in f32 registers (minor dim stays intact in every
    #      reshape, so no relayouts).
    acc2 = jnp.zeros((B * H2 * H2, C2), jnp.float32)
    for kh in range(3):
        for kw in range(3):
            tap = a1p_ref[:, pl.ds(kh, H2, stride=2), pl.ds(kw, H2, stride=2), :]
            acc2 = acc2 + jnp.dot(tap.reshape(B * H2 * H2, C1),
                                  w2_ref[kh * 3 + kw],
                                  preferred_element_type=jnp.float32)
    h2 = _leaky(acc2 + b2_ref[...])                             # (B*H2*H2, C2)
    a2p_ref[:, 1:1 + H2, 1:1 + H2, :] = h2.reshape(B, H2, H2, C2)

    # ---- conv3 + LeakyReLU: computed over W3(=8) output columns so every
    #      reshape stays 8-sublane aligned; columns >= H3(=4) only ever read
    #      zero padding and are never consumed downstream.
    acc3 = jnp.zeros((B * H3 * W3, C3), jnp.float32)
    for kh in range(3):
        for kw in range(3):
            tap = a2p_ref[:, pl.ds(kh, H3, stride=2), pl.ds(kw, W3, stride=2), :]
            acc3 = acc3 + jnp.dot(tap.reshape(B * H3 * W3, C2),
                                  w3_ref[kh * 3 + kw],
                                  preferred_element_type=jnp.float32)
    h3_ref[...] = _leaky(acc3 + b3_ref[...]).reshape(B, H3, W3, C3)

    # ---- flatten + linear1 + LeakyReLU. The PyTorch (C, H, W) flatten order
    #      is folded into l1w (shape (H3, H3, C3, 512)), so this is a sum of
    #      16 (B, C3) @ (C3, 512) dots with a lane-dense (N=512) result.
    acc4 = jnp.zeros((B, l1w_ref.shape[3]), jnp.float32)
    for i in range(H3):
        for j in range(H3):
            acc4 = acc4 + jnp.dot(h3_ref[:, i, j, :], l1w_ref[i, j],
                                  preferred_element_type=jnp.float32)
    h4 = _leaky(acc4 + l1b_ref[...])                            # (B, 512)

    # ---- linear2
    out = jnp.dot(h4, l2w_ref[...], preferred_element_type=jnp.float32) + l2b_ref[...]
    out_ref[...] = out.astype(out_ref.dtype)


# ------------------------------ jitted wrapper --------------------------------
@jax.jit
def inverter_forward(kparams, x_nchw):
    """x_nchw: (B, 1, 32, 32) float32 -> (B, z_dim) float32."""
    B, Cin, H, W = x_nchw.shape
    assert (Cin, H, W) == (1, 32, 32), "Inverter geometry is fixed to 1x32x32 inputs"
    C1 = kparams["w1"].shape[1]
    C2 = kparams["w2"].shape[2]
    C3 = kparams["w3"].shape[2]
    n_hidden = kparams["l1w"].shape[3]
    z_dim = kparams["l2w"].shape[1]
    Ho = H // 2

    # conv1 im2col on the raw input (a few KB; fused by XLA, no extra launch).
    x = jnp.transpose(x_nchw, (0, 2, 3, 1))                     # NHWC
    xp = jnp.pad(x, ((0, 0), (1, 1), (1, 1), (0, 0)))
    taps = [xp[:, kh:kh + 2 * Ho:2, kw:kw + 2 * Ho:2, :]
            for kh in range(3) for kw in range(3)]
    patches = jnp.concatenate(taps, axis=-1).reshape(B * Ho * Ho, 9 * Cin)

    # Advisory cost hint for XLA's scheduler around the fused custom call.
    flops = 2 * (B * Ho * Ho * 9 * Cin * C1              # conv1
                 + 9 * (B * 8 * 8) * C1 * C2              # conv2
                 + 9 * (B * 4 * 8) * C2 * C3              # conv3 (W padded to 8)
                 + 16 * B * C3 * n_hidden                 # linear1
                 + B * n_hidden * z_dim)                  # linear2
    bytes_accessed = 4 * (patches.size
                          + sum(int(kparams[k].size) for k in
                                ("w1", "b1", "w2", "b2", "w3", "b3",
                                 "l1w", "l1b", "l2w", "l2b"))
                          + B * z_dim)

    vmem = pl.BlockSpec(memory_space=pltpu.MemorySpace.VMEM)
    return pl.pallas_call(
        _inverter_kernel,
        out_shape=jax.ShapeDtypeStruct((B, z_dim), jnp.float32),
        in_specs=[vmem] * 11,
        out_specs=vmem,
        scratch_shapes=[
            pltpu.VMEM((B, 18, 18, C1), jnp.float32),   # zero-padded conv1 output
            pltpu.VMEM((B, 10, 18, C2), jnp.float32),   # zero-padded conv2 output (W widened)
            pltpu.VMEM((B, 4, 8, C3), jnp.float32),     # conv3 output (W padded to 8)
        ],
        cost_estimate=pl.CostEstimate(flops=flops, transcendentals=0,
                                      bytes_accessed=bytes_accessed),
    )(patches, kparams["w1"], kparams["b1"], kparams["w2"], kparams["b2"],
      kparams["w3"], kparams["b3"], kparams["l1w"], kparams["l1b"],
      kparams["l2w"], kparams["l2b"])


# ------------------- params: PyTorch layout + one-time prep ------------------
def init_params(key, ngf, z_dim):
    """Deterministic params in PyTorch layout (conv: (Cout,Cin,3,3); linear: (out,in))."""
    ks = jax.random.split(key, 10)

    def rnd(k, shape, fan_in):
        return jax.random.normal(k, shape, jnp.float32) * (1.0 / jnp.sqrt(fan_in))

    return {
        "c1_w": rnd(ks[0], (ngf, 1, 3, 3), 1 * 9),
        "c1_b": rnd(ks[1], (ngf,), 1 * 9),
        "c2_w": rnd(ks[2], (ngf * 2, ngf, 3, 3), ngf * 9),
        "c2_b": rnd(ks[3], (ngf * 2,), ngf * 9),
        "c3_w": rnd(ks[4], (ngf * 4, ngf * 2, 3, 3), ngf * 2 * 9),
        "c3_b": rnd(ks[5], (ngf * 4,), ngf * 2 * 9),
        "l1_w": rnd(ks[6], (512, ngf * 64), ngf * 64),
        "l1_b": rnd(ks[7], (512,), ngf * 64),
        "l2_w": rnd(ks[8], (z_dim, 512), 512),
        "l2_b": rnd(ks[9], (z_dim,), 512),
    }


def prepare_params(p):
    """One-time conversion of PyTorch-layout params into the kernel layout."""
    C1 = p["c1_w"].shape[0]
    C2 = p["c2_w"].shape[0]
    C3 = p["c3_w"].shape[0]
    cin1 = p["c1_w"].shape[1]
    n_out1 = p["l1_w"].shape[0]
    # conv weights -> (kh*3+kw [, cin], cout), matching in-kernel tap ordering
    w1 = jnp.transpose(p["c1_w"], (2, 3, 1, 0)).reshape(9 * cin1, C1)
    w2 = jnp.transpose(p["c2_w"], (2, 3, 1, 0)).reshape(9, p["c2_w"].shape[1], C2)
    w3 = jnp.transpose(p["c3_w"], (2, 3, 1, 0)).reshape(9, p["c3_w"].shape[1], C3)
    # linear1: fold PyTorch (c, h, w) flatten order into the weight:
    # (out, in) -> (in, out) -> (C3, 4, 4, out) -> (4, 4, C3, out)
    l1w = p["l1_w"].T.reshape(C3, 4, 4, n_out1).transpose(1, 2, 0, 3)
    return {
        "w1": w1, "b1": p["c1_b"].reshape(1, -1),
        "w2": w2, "b2": p["c2_b"].reshape(1, -1),
        "w3": w3, "b3": p["c3_b"].reshape(1, -1),
        "l1w": l1w, "l1b": p["l1_b"].reshape(1, -1),
        "l2w": p["l2_w"].T, "l2b": p["l2_b"].reshape(1, -1),
    }


# ------------------------------ pure-JAX reference ---------------------------
def _reference_forward(p, x_nchw):
    x = jnp.transpose(x_nchw, (0, 2, 3, 1))

    def conv(x, w, b):
        B, H, W, Cin = x.shape
        Cout = w.shape[0]
        xp = jnp.pad(x, ((0, 0), (1, 1), (1, 1), (0, 0)))
        Ho, Wo = H // 2, W // 2
        cols = [xp[:, kh:kh + 2 * Ho:2, kw:kw + 2 * Wo:2, :]
                for kh in range(3) for kw in range(3)]
        patches = jnp.concatenate(cols, axis=-1).reshape(B * Ho * Wo, 9 * Cin)
        wm = jnp.transpose(w, (2, 3, 1, 0)).reshape(9 * Cin, Cout)
        y = _leaky(patches @ wm + b)
        return y.reshape(B, Ho, Wo, Cout)

    h = conv(x, p["c1_w"], p["c1_b"])
    h = conv(h, p["c2_w"], p["c2_b"])
    h = conv(h, p["c3_w"], p["c3_b"])
    B = x_nchw.shape[0]
    h = jnp.transpose(h, (0, 3, 1, 2)).reshape(B, -1)   # PyTorch NCHW flatten
    h = _leaky(h @ p["l1_w"].T + p["l1_b"])
    return h @ p["l2_w"].T + p["l2_b"]


if __name__ == "__main__":
    # Inverter(ngf=8, z_dim=16) on 1x32x32 inputs (32 -> 16 -> 8 -> 4 spatially,
    # so the flatten width is 4*4*(4*ngf) == ngf*64, matching the Linear).
    ngf, z_dim, batch = 8, 16, 2

    key = jax.random.PRNGKey(0)
    kx, kp = jax.random.split(key)
    x = jax.random.normal(kx, (batch, 1, 32, 32), jnp.float32)

    torch_params = init_params(kp, ngf, z_dim)
    kernel_params = prepare_params(torch_params)   # one-time weight prep

    out = inverter_forward(kernel_params, x)
    out = jax.block_until_ready(out)

    assert out.shape == (batch, z_dim), out.shape
    assert out.dtype == jnp.float32
    ref = _reference_forward(torch_params, x)
    assert jnp.allclose(out, ref, atol=2e-3, rtol=2e-3), (
        float(jnp.max(jnp.abs(out - ref))))
    print("KERNEL_OK")
</pallas_src>

<mosaic_0001>
module attributes {stable_mosaic.version = 11 : i64} {
  func.func @_inverter_kernel(%arg0: memref<512x9xf32, #tpu.memory_space<vmem>>, %arg1: memref<9x8xf32, #tpu.memory_space<vmem>>, %arg2: memref<1x8xf32, #tpu.memory_space<vmem>>, %arg3: memref<9x8x16xf32, #tpu.memory_space<vmem>>, %arg4: memref<1x16xf32, #tpu.memory_space<vmem>>, %arg5: memref<9x16x32xf32, #tpu.memory_space<vmem>>, %arg6: memref<1x32xf32, #tpu.memory_space<vmem>>, %arg7: memref<4x4x32x512xf32, #tpu.memory_space<vmem>>, %arg8: memref<1x512xf32, #tpu.memory_space<vmem>>, %arg9: memref<512x16xf32, #tpu.memory_space<vmem>>, %arg10: memref<1x16xf32, #tpu.memory_space<vmem>>, %arg11: memref<2x16xf32, #tpu.memory_space<vmem>>, %arg12: memref<2x18x18x8xf32, #tpu.memory_space<vmem>>, %arg13: memref<2x10x18x16xf32, #tpu.memory_space<vmem>>, %arg14: memref<2x4x8x32xf32, #tpu.memory_space<vmem>>) attributes {dimension_semantics = [], scalar_prefetch = 0 : i64, scratch_operands = 3 : i64, tpu.core_type = #tpu.core_type<tc>} {
    %cst = arith.constant 0.000000e+00 : f32
    %0 = vector.broadcast %cst : f32 to vector<2x18x18x8xf32>
    %c0 = arith.constant 0 : index
    %c0_0 = arith.constant 0 : index
    %c0_1 = arith.constant 0 : index
    %c0_2 = arith.constant 0 : index
    %1 = vector.load %arg12[%c0, %c0_0, %c0_1, %c0_2] : memref<2x18x18x8xf32, #tpu.memory_space<vmem>>, vector<2x18x18x8xf32>
    tpu.vector_store %arg12[%c0, %c0_0, %c0_1, %c0_2], %0 {strides = array<i32>} : memref<2x18x18x8xf32, #tpu.memory_space<vmem>>, vector<2x18x18x8xf32>,
    %cst_3 = arith.constant 0.000000e+00 : f32
    %2 = vector.broadcast %cst_3 : f32 to vector<2x10x18x16xf32>
    %c0_4 = arith.constant 0 : index
    %c0_5 = arith.constant 0 : index
    %c0_6 = arith.constant 0 : index
    %c0_7 = arith.constant 0 : index
    %3 = vector.load %arg13[%c0_4, %c0_5, %c0_6, %c0_7] : memref<2x10x18x16xf32, #tpu.memory_space<vmem>>, vector<2x10x18x16xf32>
    tpu.vector_store %arg13[%c0_4, %c0_5, %c0_6, %c0_7], %2 {strides = array<i32>} : memref<2x10x18x16xf32, #tpu.memory_space<vmem>>, vector<2x10x18x16xf32>,
    %c0_8 = arith.constant 0 : index
    %c0_9 = arith.constant 0 : index
    %4 = vector.load %arg0[%c0_8, %c0_9] : memref<512x9xf32, #tpu.memory_space<vmem>>, vector<512x9xf32>
    %c0_10 = arith.constant 0 : index
    %c0_11 = arith.constant 0 : index
    %5 = vector.load %arg1[%c0_10, %c0_11] : memref<9x8xf32, #tpu.memory_space<vmem>>, vector<9x8xf32>
    %cst_12 = arith.constant dense<0.000000e+00> : vector<512x8xf32>
    %6 = tpu.matmul %4, %5, %cst_12 {dimension_numbers = #tpu.dot_dimension_numbers<[1], [0], [0], [1], [0, 0, 1, 1], [], []>} : vector<512x9xf32>, vector<9x8xf32>, vector<512x8xf32> -> vector<512x8xf32>
    %c0_13 = arith.constant 0 : index
    %c0_14 = arith.constant 0 : index
    %7 = vector.load %arg2[%c0_13, %c0_14] : memref<1x8xf32, #tpu.memory_space<vmem>>, vector<1x8xf32>
    %8 = vector.broadcast %7 : vector<1x8xf32> to vector<512x8xf32>
    %9 = arith.addf %6, %8 : vector<512x8xf32>
    %cst_15 = arith.constant 0.000000e+00 : f32
    %10 = vector.broadcast %cst_15 : f32 to vector<512x8xf32>
    %11 = arith.cmpf oge, %9, %10 : vector<512x8xf32>
    %cst_16 = arith.constant 0.00999999977 : f32
    %12 = vector.broadcast %cst_16 : f32 to vector<512x8xf32>
    %13 = arith.mulf %12, %9 : vector<512x8xf32>
    %14 = arith.select %11, %9, %13 : vector<512x8xi1>, vector<512x8xf32>
    %15 = vector.shape_cast %14 : vector<512x8xf32> to vector<2x16x16x8xf32>
    %c0_17 = arith.constant 0 : index
    %c1 = arith.constant 1 : index
    %c1_18 = arith.constant 1 : index
    %c0_19 = arith.constant 0 : index
    %16 = vector.load %arg12[%c0_17, %c1, %c1_18, %c0_19] : memref<2x18x18x8xf32, #tpu.memory_space<vmem>>, vector<2x16x16x8xf32>
    tpu.vector_store %arg12[%c0_17, %c1, %c1_18, %c0_19], %15 {strides = array<i32>} : memref<2x18x18x8xf32, #tpu.memory_space<vmem>>, vector<2x16x16x8xf32>,
    %cst_20 = arith.constant 0.000000e+00 : f32
    %17 = vector.broadcast %cst_20 : f32 to vector<128x16xf32>
    %c0_21 = arith.constant 0 : index
    %c0_22 = arith.constant 0 : index
    %c0_23 = arith.constant 0 : index
    %c0_24 = arith.constant 0 : index
    %18 = tpu.strided_load %arg12[%c0_21, %c0_22, %c0_23, %c0_24] {strides = array<i32: 1, 2, 2, 1>} : memref<2x18x18x8xf32, #tpu.memory_space<vmem>>, vector<2x8x8x8xf32>
    %19 = vector.shape_cast %18 : vector<2x8x8x8xf32> to vector<128x8xf32>
    %c0_25 = arith.constant 0 : index
    %c0_26 = arith.constant 0 : index
    %c0_27 = arith.constant 0 : index
    %20 = vector.load %arg3[%c0_25, %c0_26, %c0_27] : memref<9x8x16xf32, #tpu.memory_space<vmem>>, vector<1x8x16xf32>
    %21 = vector.shape_cast %20 : vector<1x8x16xf32> to vector<8x16xf32>
    %cst_28 = arith.constant dense<0.000000e+00> : vector<128x16xf32>
    %22 = tpu.matmul %19, %21, %cst_28 {dimension_numbers = #tpu.dot_dimension_numbers<[1], [0], [0], [1], [0, 0, 1, 1], [], []>} : vector<128x8xf32>, vector<8x16xf32>, vector<128x16xf32> -> vector<128x16xf32>
    %23 = arith.addf %17, %22 : vector<128x16xf32>
    %c0_29 = arith.constant 0 : index
    %c0_30 = arith.constant 0 : index
    %c1_31 = arith.constant 1 : index
    %c0_32 = arith.constant 0 : index
    %24 = tpu.strided_load %arg12[%c0_29, %c0_30, %c1_31, %c0_32] {strides = array<i32: 1, 2, 2, 1>} : memref<2x18x18x8xf32, #tpu.memory_space<vmem>>, vector<2x8x8x8xf32>
    %25 = vector.shape_cast %24 : vector<2x8x8x8xf32> to vector<128x8xf32>
    %c1_33 = arith.constant 1 : index
    %c0_34 = arith.constant 0 : index
    %c0_35 = arith.constant 0 : index
    %26 = vector.load %arg3[%c1_33, %c0_34, %c0_35] : memref<9x8x16xf32, #tpu.memory_space<vmem>>, vector<1x8x16xf32>
    %27 = vector.shape_cast %26 : vector<1x8x16xf32> to vector<8x16xf32>
    %cst_36 = arith.constant dense<0.000000e+00> : vector<128x16xf32>
    %28 = tpu.matmul %25, %27, %cst_36 {dimension_numbers = #tpu.dot_dimension_numbers<[1], [0], [0], [1], [0, 0, 1, 1], [], []>} : vector<128x8xf32>, vector<8x16xf32>, vector<128x16xf32> -> vector<128x16xf32>
    %29 = arith.addf %23, %28 : vector<128x16xf32>
    %c0_37 = arith.constant 0 : index
    %c0_38 = arith.constant 0 : index
    %c2 = arith.constant 2 : index
    %c0_39 = arith.constant 0 : index
    %30 = tpu.strided_load %arg12[%c0_37, %c0_38, %c2, %c0_39] {strides = array<i32: 1, 2, 2, 1>} : memref<2x18x18x8xf32, #tpu.memory_space<vmem>>, vector<2x8x8x8xf32>
    %31 = vector.shape_cast %30 : vector<2x8x8x8xf32> to vector<128x8xf32>
    %c2_40 = arith.constant 2 : index
    %c0_41 = arith.constant 0 : index
    %c0_42 = arith.constant 0 : index
    %32 = vector.load %arg3[%c2_40, %c0_41, %c0_42] : memref<9x8x16xf32, #tpu.memory_space<vmem>>, vector<1x8x16xf32>
    %33 = vector.shape_cast %32 : vector<1x8x16xf32> to vector<8x16xf32>
    %cst_43 = arith.constant dense<0.000000e+00> : vector<128x16xf32>
    %34 = tpu.matmul %31, %33, %cst_43 {dimension_numbers = #tpu.dot_dimension_numbers<[1], [0], [0], [1], [0, 0, 1, 1], [], []>} : vector<128x8xf32>, vector<8x16xf32>, vector<128x16xf32> -> vector<128x16xf32>
    %35 = arith.addf %29, %34 : vector<128x16xf32>
    %c0_44 = arith.constant 0 : index
    %c1_45 = arith.constant 1 : index
    %c0_46 = arith.constant 0 : index
    %c0_47 = arith.constant 0 : index
    %36 = tpu.strided_load %arg12[%c0_44, %c1_45, %c0_46, %c0_47] {strides = array<i32: 1, 2, 2, 1>} : memref<2x18x18x8xf32, #tpu.memory_space<vmem>>, vector<2x8x8x8xf32>
    %37 = vector.shape_cast %36 : vector<2x8x8x8xf32> to vector<128x8xf32>
    %c3 = arith.constant 3 : index
    %c0_48 = arith.constant 0 : index
    %c0_49 = arith.constant 0 : index
    %38 = vector.load %arg3[%c3, %c0_48, %c0_49] : memref<9x8x16xf32, #tpu.memory_space<vmem>>, vector<1x8x16xf32>
    %39 = vector.shape_cast %38 : vector<1x8x16xf32> to vector<8x16xf32>
    %cst_50 = arith.constant dense<0.000000e+00> : vector<128x16xf32>
    %40 = tpu.matmul %37, %39, %cst_50 {dimension_numbers = #tpu.dot_dimension_numbers<[1], [0], [0], [1], [0, 0, 1, 1], [], []>} : vector<128x8xf32>, vector<8x16xf32>, vector<128x16xf32> -> vector<128x16xf32>
    %41 = arith.addf %35, %40 : vector<128x16xf32>
    %c0_51 = arith.constant 0 : index
    %c1_52 = arith.constant 1 : index
    %c1_53 = arith.constant 1 : index
    %c0_54 = arith.constant 0 : index
    %42 = tpu.strided_load %arg12[%c0_51, %c1_52, %c1_53, %c0_54] {strides = array<i32: 1, 2, 2, 1>} : memref<2x18x18x8xf32, #tpu.memory_space<vmem>>, vector<2x8x8x8xf32>
    %43 = vector.shape_cast %42 : vector<2x8x8x8xf32> to vector<128x8xf32>
    %c4 = arith.constant 4 : index
    %c0_55 = arith.constant 0 : index
    %c0_56 = arith.constant 0 : index
    %44 = vector.load %arg3[%c4, %c0_55, %c0_56] : memref<9x8x16xf32, #tpu.memory_space<vmem>>, vector<1x8x16xf32>
    %45 = vector.shape_cast %44 : vector<1x8x16xf32> to vector<8x16xf32>
    %cst_57 = arith.constant dense<0.000000e+00> : vector<128x16xf32>
    %46 = tpu.matmul %43, %45, %cst_57 {dimension_numbers = #tpu.dot_dimension_numbers<[1], [0], [0], [1], [0, 0, 1, 1], [], []>} : vector<128x8xf32>, vector<8x16xf32>, vector<128x16xf32> -> vector<128x16xf32>
    %47 = arith.addf %41, %46 : vector<128x16xf32>
    %c0_58 = arith.constant 0 : index
    %c1_59 = arith.constant 1 : index
    %c2_60 = arith.constant 2 : index
    %c0_61 = arith.constant 0 : index
    %48 = tpu.strided_load %arg12[%c0_58, %c1_59, %c2_60, %c0_61] {strides = array<i32: 1, 2, 2, 1>} : memref<2x18x18x8xf32, #tpu.memory_space<vmem>>, vector<2x8x8x8xf32>
    %49 = vector.shape_cast %48 : vector<2x8x8x8xf32> to vector<128x8xf32>
    %c5 = arith.constant 5 : index
    %c0_62 = arith.constant 0 : index
    %c0_63 = arith.constant 0 : index
    %50 = vector.load %arg3[%c5, %c0_62, %c0_63] : memref<9x8x16xf32, #tpu.memory_space<vmem>>, vector<1x8x16xf32>
    %51 = vector.shape_cast %50 : vector<1x8x16xf32> to vector<8x16xf32>
    %cst_64 = arith.constant dense<0.000000e+00> : vector<128x16xf32>
    %52 = tpu.matmul %49, %51, %cst_64 {dimension_numbers = #tpu.dot_dimension_numbers<[1], [0], [0], [1], [0, 0, 1, 1], [], []>} : vector<128x8xf32>, vector<8x16xf32>, vector<128x16xf32> -> vector<128x16xf32>
    %53 = arith.addf %47, %52 : vector<128x16xf32>
    %c0_65 = arith.constant 0 : index
    %c2_66 = arith.constant 2 : index
    %c0_67 = arith.constant 0 : index
    %c0_68 = arith.constant 0 : index
    %54 = tpu.strided_load %arg12[%c0_65, %c2_66, %c0_67, %c0_68] {strides = array<i32: 1, 2, 2, 1>} : memref<2x18x18x8xf32, #tpu.memory_space<vmem>>, vector<2x8x8x8xf32>
    %55 = vector.shape_cast %54 : vector<2x8x8x8xf32> to vector<128x8xf32>
    %c6 = arith.constant 6 : index
    %c0_69 = arith.constant 0 : index
    %c0_70 = arith.constant 0 : index
    %56 = vector.load %arg3[%c6, %c0_69, %c0_70] : memref<9x8x16xf32, #tpu.memory_space<vmem>>, vector<1x8x16xf32>
    %57 = vector.shape_cast %56 : vector<1x8x16xf32> to vector<8x16xf32>
    %cst_71 = arith.constant dense<0.000000e+00> : vector<128x16xf32>
    %58 = tpu.matmul %55, %57, %cst_71 {dimension_numbers = #tpu.dot_dimension_numbers<[1], [0], [0], [1], [0, 0, 1, 1], [], []>} : vector<128x8xf32>, vector<8x16xf32>, vector<128x16xf32> -> vector<128x16xf32>
    %59 = arith.addf %53, %58 : vector<128x16xf32>
    %c0_72 = arith.constant 0 : index
    %c2_73 = arith.constant 2 : index
    %c1_74 = arith.constant 1 : index
    %c0_75 = arith.constant 0 : index
    %60 = tpu.strided_load %arg12[%c0_72, %c2_73, %c1_74, %c0_75] {strides = array<i32: 1, 2, 2, 1>} : memref<2x18x18x8xf32, #tpu.memory_space<vmem>>, vector<2x8x8x8xf32>
    %61 = vector.shape_cast %60 : vector<2x8x8x8xf32> to vector<128x8xf32>
    %c7 = arith.constant 7 : index
    %c0_76 = arith.constant 0 : index
    %c0_77 = arith.constant 0 : index
    %62 = vector.load %arg3[%c7, %c0_76, %c0_77] : memref<9x8x16xf32, #tpu.memory_space<vmem>>, vector<1x8x16xf32>
    %63 = vector.shape_cast %62 : vector<1x8x16xf32> to vector<8x16xf32>
    %cst_78 = arith.constant dense<0.000000e+00> : vector<128x16xf32>
    %64 = tpu.matmul %61, %63, %cst_78 {dimension_numbers = #tpu.dot_dimension_numbers<[1], [0], [0], [1], [0, 0, 1, 1], [], []>} : vector<128x8xf32>, vector<8x16xf32>, vector<128x16xf32> -> vector<128x16xf32>
    %65 = arith.addf %59, %64 : vector<128x16xf32>
    %c0_79 = arith.constant 0 : index
    %c2_80 = arith.constant 2 : index
    %c2_81 = arith.constant 2 : index
    %c0_82 = arith.constant 0 : index
    %66 = tpu.strided_load %arg12[%c0_79, %c2_80, %c2_81, %c0_82] {strides = array<i32: 1, 2, 2, 1>} : memref<2x18x18x8xf32, #tpu.memory_space<vmem>>, vector<2x8x8x8xf32>
    %67 = vector.shape_cast %66 : vector<2x8x8x8xf32> to vector<128x8xf32>
    %c8 = arith.constant 8 : index
    %c0_83 = arith.constant 0 : index
    %c0_84 = arith.constant 0 : index
    %68 = vector.load %arg3[%c8, %c0_83, %c0_84] : memref<9x8x16xf32, #tpu.memory_space<vmem>>, vector<1x8x16xf32>
    %69 = vector.shape_cast %68 : vector<1x8x16xf32> to vector<8x16xf32>
    %cst_85 = arith.constant dense<0.000000e+00> : vector<128x16xf32>
    %70 = tpu.matmul %67, %69, %cst_85 {dimension_numbers = #tpu.dot_dimension_numbers<[1], [0], [0], [1], [0, 0, 1, 1], [], []>} : vector<128x8xf32>, vector<8x16xf32>, vector<128x16xf32> -> vector<128x16xf32>
    %71 = arith.addf %65, %70 : vector<128x16xf32>
    %c0_86 = arith.constant 0 : index
    %c0_87 = arith.constant 0 : index
    %72 = vector.load %arg4[%c0_86, %c0_87] : memref<1x16xf32, #tpu.memory_space<vmem>>, vector<1x16xf32>
    %73 = vector.broadcast %72 : vector<1x16xf32> to vector<128x16xf32>
    %74 = arith.addf %71, %73 : vector<128x16xf32>
    %cst_88 = arith.constant 0.000000e+00 : f32
    %75 = vector.broadcast %cst_88 : f32 to vector<128x16xf32>
    %76 = arith.cmpf oge, %74, %75 : vector<128x16xf32>
    %cst_89 = arith.constant 0.00999999977 : f32
    %77 = vector.broadcast %cst_89 : f32 to vector<128x16xf32>
    %78 = arith.mulf %77, %74 : vector<128x16xf32>
    %79 = arith.select %76, %74, %78 : vector<128x16xi1>, vector<128x16xf32>
    %80 = vector.shape_cast %79 : vector<128x16xf32> to vector<2x8x8x16xf32>
    %c0_90 = arith.constant 0 : index
    %c1_91 = arith.constant 1 : index
    %c1_92 = arith.constant 1 : index
    %c0_93 = arith.constant 0 : index
    %81 = vector.load %arg13[%c0_90, %c1_91, %c1_92, %c0_93] : memref<2x10x18x16xf32, #tpu.memory_space<vmem>>, vector<2x8x8x16xf32>
    tpu.vector_store %arg13[%c0_90, %c1_91, %c1_92, %c0_93], %80 {strides = array<i32>} : memref<2x10x18x16xf32, #tpu.memory_space<vmem>>, vector<2x8x8x16xf32>,
    %cst_94 = arith.constant 0.000000e+00 : f32
    %82 = vector.broadcast %cst_94 : f32 to vector<64x32xf32>
    %c0_95 = arith.constant 0 : index
    %c0_96 = arith.constant 0 : index
    %c0_97 = arith.constant 0 : index
    %c0_98 = arith.constant 0 : index
    %83 = tpu.strided_load %arg13[%c0_95, %c0_96, %c0_97, %c0_98] {strides = array<i32: 1, 2, 2, 1>} : memref<2x10x18x16xf32, #tpu.memory_space<vmem>>, vector<2x4x8x16xf32>
    %84 = vector.shape_cast %83 : vector<2x4x8x16xf32> to vector<64x16xf32>
    %c0_99 = arith.constant 0 : index
    %c0_100 = arith.constant 0 : index
    %c0_101 = arith.constant 0 : index
    %85 = vector.load %arg5[%c0_99, %c0_100, %c0_101] : memref<9x16x32xf32, #tpu.memory_space<vmem>>, vector<1x16x32xf32>
    %86 = vector.shape_cast %85 : vector<1x16x32xf32> to vector<16x32xf32>
    %cst_102 = arith.constant dense<0.000000e+00> : vector<64x32xf32>
    %87 = tpu.matmul %84, %86, %cst_102 {dimension_numbers = #tpu.dot_dimension_numbers<[1], [0], [0], [1], [0, 0, 1, 1], [], []>} : vector<64x16xf32>, vector<16x32xf32>, vector<64x32xf32> -> vector<64x32xf32>
    %88 = arith.addf %82, %87 : vector<64x32xf32>
    %c0_103 = arith.constant 0 : index
    %c0_104 = arith.constant 0 : index
    %c1_105 = arith.constant 1 : index
    %c0_106 = arith.constant 0 : index
    %89 = tpu.strided_load %arg13[%c0_103, %c0_104, %c1_105, %c0_106] {strides = array<i32: 1, 2, 2, 1>} : memref<2x10x18x16xf32, #tpu.memory_space<vmem>>, vector<2x4x8x16xf32>
    %90 = vector.shape_cast %89 : vector<2x4x8x16xf32> to vector<64x16xf32>
    %c1_107 = arith.constant 1 : index
    %c0_108 = arith.constant 0 : index
    %c0_109 = arith.constant 0 : index
    %91 = vector.load %arg5[%c1_107, %c0_108, %c0_109] : memref<9x16x32xf32, #tpu.memory_space<vmem>>, vector<1x16x32xf32>
    %92 = vector.shape_cast %91 : vector<1x16x32xf32> to vector<16x32xf32>
    %cst_110 = arith.constant dense<0.000000e+00> : vector<64x32xf32>
    %93 = tpu.matmul %90, %92, %cst_110 {dimension_numbers = #tpu.dot_dimension_numbers<[1], [0], [0], [1], [0, 0, 1, 1], [], []>} : vector<64x16xf32>, vector<16x32xf32>, vector<64x32xf32> -> vector<64x32xf32>
    %94 = arith.addf %88, %93 : vector<64x32xf32>
    %c0_111 = arith.constant 0 : index
    %c0_112 = arith.constant 0 : index
    %c2_113 = arith.constant 2 : index
    %c0_114 = arith.constant 0 : index
    %95 = tpu.strided_load %arg13[%c0_111, %c0_112, %c2_113, %c0_114] {strides = array<i32: 1, 2, 2, 1>} : memref<2x10x18x16xf32, #tpu.memory_space<vmem>>, vector<2x4x8x16xf32>
    %96 = vector.shape_cast %95 : vector<2x4x8x16xf32> to vector<64x16xf32>
    %c2_115 = arith.constant 2 : index
    %c0_116 = arith.constant 0 : index
    %c0_117 = arith.constant 0 : index
    %97 = vector.load %arg5[%c2_115, %c0_116, %c0_117] : memref<9x16x32xf32, #tpu.memory_space<vmem>>, vector<1x16x32xf32>
    %98 = vector.shape_cast %97 : vector<1x16x32xf32> to vector<16x32xf32>
    %cst_118 = arith.constant dense<0.000000e+00> : vector<64x32xf32>
    %99 = tpu.matmul %96, %98, %cst_118 {dimension_numbers = #tpu.dot_dimension_numbers<[1], [0], [0], [1], [0, 0, 1, 1], [], []>} : vector<64x16xf32>, vector<16x32xf32>, vector<64x32xf32> -> vector<64x32xf32>
    %100 = arith.addf %94, %99 : vector<64x32xf32>
    %c0_119 = arith.constant 0 : index
    %c1_120 = arith.constant 1 : index
    %c0_121 = arith.constant 0 : index
    %c0_122 = arith.constant 0 : index
    %101 = tpu.strided_load %arg13[%c0_119, %c1_120, %c0_121, %c0_122] {strides = array<i32: 1, 2, 2, 1>} : memref<2x10x18x16xf32, #tpu.memory_space<vmem>>, vector<2x4x8x16xf32>
    %102 = vector.shape_cast %101 : vector<2x4x8x16xf32> to vector<64x16xf32>
    %c3_123 = arith.constant 3 : index
    %c0_124 = arith.constant 0 : index
    %c0_125 = arith.constant 0 : index
    %103 = vector.load %arg5[%c3_123, %c0_124, %c0_125] : memref<9x16x32xf32, #tpu.memory_space<vmem>>, vector<1x16x32xf32>
    %104 = vector.shape_cast %103 : vector<1x16x32xf32> to vector<16x32xf32>
    %cst_126 = arith.constant dense<0.000000e+00> : vector<64x32xf32>
    %105 = tpu.matmul %102, %104, %cst_126 {dimension_numbers = #tpu.dot_dimension_numbers<[1], [0], [0], [1], [0, 0, 1, 1], [], []>} : vector<64x16xf32>, vector<16x32xf32>, vector<64x32xf32> -> vector<64x32xf32>
    %106 = arith.addf %100, %105 : vector<64x32xf32>
    %c0_127 = arith.constant 0 : index
    %c1_128 = arith.constant 1 : index
    %c1_129 = arith.constant 1 : index
    %c0_130 = arith.constant 0 : index
    %107 = tpu.strided_load %arg13[%c0_127, %c1_128, %c1_129, %c0_130] {strides = array<i32: 1, 2, 2, 1>} : memref<2x10x18x16xf32, #tpu.memory_space<vmem>>, vector<2x4x8x16xf32>
    %108 = vector.shape_cast %107 : vector<2x4x8x16xf32> to vector<64x16xf32>
    %c4_131 = arith.constant 4 : index
    %c0_132 = arith.constant 0 : index
    %c0_133 = arith.constant 0 : index
    %109 = vector.load %arg5[%c4_131, %c0_132, %c0_133] : memref<9x16x32xf32, #tpu.memory_space<vmem>>, vector<1x16x32xf32>
    %110 = vector.shape_cast %109 : vector<1x16x32xf32> to vector<16x32xf32>
    %cst_134 = arith.constant dense<0.000000e+00> : vector<64x32xf32>
    %111 = tpu.matmul %108, %110, %cst_134 {dimension_numbers = #tpu.dot_dimension_numbers<[1], [0], [0], [1], [0, 0, 1, 1], [], []>} : vector<64x16xf32>, vector<16x32xf32>, vector<64x32xf32> -> vector<64x32xf32>
    %112 = arith.addf %106, %111 : vector<64x32xf32>
    %c0_135 = arith.constant 0 : index
    %c1_136 = arith.constant 1 : index
    %c2_137 = arith.constant 2 : index
    %c0_138 = arith.constant 0 : index
    %113 = tpu.strided_load %arg13[%c0_135, %c1_136, %c2_137, %c0_138] {strides = array<i32: 1, 2, 2, 1>} : memref<2x10x18x16xf32, #tpu.memory_space<vmem>>, vector<2x4x8x16xf32>
    %114 = vector.shape_cast %113 : vector<2x4x8x16xf32> to vector<64x16xf32>
    %c5_139 = arith.constant 5 : index
    %c0_140 = arith.constant 0 : index
    %c0_141 = arith.constant 0 : index
    %115 = vector.load %arg5[%c5_139, %c0_140, %c0_141] : memref<9x16x32xf32, #tpu.memory_space<vmem>>, vector<1x16x32xf32>
    %116 = vector.shape_cast %115 : vector<1x16x32xf32> to vector<16x32xf32>
    %cst_142 = arith.constant dense<0.000000e+00> : vector<64x32xf32>
    %117 = tpu.matmul %114, %116, %cst_142 {dimension_numbers = #tpu.dot_dimension_numbers<[1], [0], [0], [1], [0, 0, 1, 1], [], []>} : vector<64x16xf32>, vector<16x32xf32>, vector<64x32xf32> -> vector<64x32xf32>
    %118 = arith.addf %112, %117 : vector<64x32xf32>
    %c0_143 = arith.constant 0 : index
    %c2_144 = arith.constant 2 : index
    %c0_145 = arith.constant 0 : index
    %c0_146 = arith.constant 0 : index
    %119 = tpu.strided_load %arg13[%c0_143, %c2_144, %c0_145, %c0_146] {strides = array<i32: 1, 2, 2, 1>} : memref<2x10x18x16xf32, #tpu.memory_space<vmem>>, vector<2x4x8x16xf32>
    %120 = vector.shape_cast %119 : vector<2x4x8x16xf32> to vector<64x16xf32>
    %c6_147 = arith.constant 6 : index
    %c0_148 = arith.constant 0 : index
    %c0_149 = arith.constant 0 : index
    %121 = vector.load %arg5[%c6_147, %c0_148, %c0_149] : memref<9x16x32xf32, #tpu.memory_space<vmem>>, vector<1x16x32xf32>
    %122 = vector.shape_cast %121 : vector<1x16x32xf32> to vector<16x32xf32>
    %cst_150 = arith.constant dense<0.000000e+00> : vector<64x32xf32>
    %123 = tpu.matmul %120, %122, %cst_150 {dimension_numbers = #tpu.dot_dimension_numbers<[1], [0], [0], [1], [0, 0, 1, 1], [], []>} : vector<64x16xf32>, vector<16x32xf32>, vector<64x32xf32> -> vector<64x32xf32>
    %124 = arith.addf %118, %123 : vector<64x32xf32>
    %c0_151 = arith.constant 0 : index
    %c2_152 = arith.constant 2 : index
    %c1_153 = arith.constant 1 : index
    %c0_154 = arith.constant 0 : index
    %125 = tpu.strided_load %arg13[%c0_151, %c2_152, %c1_153, %c0_154] {strides = array<i32: 1, 2, 2, 1>} : memref<2x10x18x16xf32, #tpu.memory_space<vmem>>, vector<2x4x8x16xf32>
    %126 = vector.shape_cast %125 : vector<2x4x8x16xf32> to vector<64x16xf32>
    %c7_155 = arith.constant 7 : index
    %c0_156 = arith.constant 0 : index
    %c0_157 = arith.constant 0 : index
    %127 = vector.load %arg5[%c7_155, %c0_156, %c0_157] : memref<9x16x32xf32, #tpu.memory_space<vmem>>, vector<1x16x32xf32>
    %128 = vector.shape_cast %127 : vector<1x16x32xf32> to vector<16x32xf32>
    %cst_158 = arith.constant dense<0.000000e+00> : vector<64x32xf32>
    %129 = tpu.matmul %126, %128, %cst_158 {dimension_numbers = #tpu.dot_dimension_numbers<[1], [0], [0], [1], [0, 0, 1, 1], [], []>} : vector<64x16xf32>, vector<16x32xf32>, vector<64x32xf32> -> vector<64x32xf32>
    %130 = arith.addf %124, %129 : vector<64x32xf32>
    %c0_159 = arith.constant 0 : index
    %c2_160 = arith.constant 2 : index
    %c2_161 = arith.constant 2 : index
    %c0_162 = arith.constant 0 : index
    %131 = tpu.strided_load %arg13[%c0_159, %c2_160, %c2_161, %c0_162] {strides = array<i32: 1, 2, 2, 1>} : memref<2x10x18x16xf32, #tpu.memory_space<vmem>>, vector<2x4x8x16xf32>
    %132 = vector.shape_cast %131 : vector<2x4x8x16xf32> to vector<64x16xf32>
    %c8_163 = arith.constant 8 : index
    %c0_164 = arith.constant 0 : index
    %c0_165 = arith.constant 0 : index
    %133 = vector.load %arg5[%c8_163, %c0_164, %c0_165] : memref<9x16x32xf32, #tpu.memory_space<vmem>>, vector<1x16x32xf32>
    %134 = vector.shape_cast %133 : vector<1x16x32xf32> to vector<16x32xf32>
    %cst_166 = arith.constant dense<0.000000e+00> : vector<64x32xf32>
    %135 = tpu.matmul %132, %134, %cst_166 {dimension_numbers = #tpu.dot_dimension_numbers<[1], [0], [0], [1], [0, 0, 1, 1], [], []>} : vector<64x16xf32>, vector<16x32xf32>, vector<64x32xf32> -> vector<64x32xf32>
    %136 = arith.addf %130, %135 : vector<64x32xf32>
    %c0_167 = arith.constant 0 : index
    %c0_168 = arith.constant 0 : index
    %137 = vector.load %arg6[%c0_167, %c0_168] : memref<1x32xf32, #tpu.memory_space<vmem>>, vector<1x32xf32>
    %138 = vector.broadcast %137 : vector<1x32xf32> to vector<64x32xf32>
    %139 = arith.addf %136, %138 : vector<64x32xf32>
    %cst_169 = arith.constant 0.000000e+00 : f32
    %140 = vector.broadcast %cst_169 : f32 to vector<64x32xf32>
    %141 = arith.cmpf oge, %139, %140 : vector<64x32xf32>
    %cst_170 = arith.constant 0.00999999977 : f32
    %142 = vector.broadcast %cst_170 : f32 to vector<64x32xf32>
    %143 = arith.mulf %142, %139 : vector<64x32xf32>
    %144 = arith.select %141, %139, %143 : vector<64x32xi1>, vector<64x32xf32>
    %145 = vector.shape_cast %144 : vector<64x32xf32> to vector<2x4x8x32xf32>
    %c0_171 = arith.constant 0 : index
    %c0_172 = arith.constant 0 : index
    %c0_173 = arith.constant 0 : index
    %c0_174 = arith.constant 0 : index
    %146 = vector.load %arg14[%c0_171, %c0_172, %c0_173, %c0_174] : memref<2x4x8x32xf32, #tpu.memory_space<vmem>>, vector<2x4x8x32xf32>
    tpu.vector_store %arg14[%c0_171, %c0_172, %c0_173, %c0_174], %145 {strides = array<i32>} : memref<2x4x8x32xf32, #tpu.memory_space<vmem>>, vector<2x4x8x32xf32>,
    %cst_175 = arith.constant 0.000000e+00 : f32
    %147 = vector.broadcast %cst_175 : f32 to vector<2x512xf32>
    %c0_176 = arith.constant 0 : index
    %c0_177 = arith.constant 0 : index
    %c0_178 = arith.constant 0 : index
    %c0_179 = arith.constant 0 : index
    %148 = vector.load %arg14[%c0_176, %c0_177, %c0_178, %c0_179] : memref<2x4x8x32xf32, #tpu.memory_space<vmem>>, vector<2x1x1x32xf32>
    %149 = vector.shape_cast %148 : vector<2x1x1x32xf32> to vector<2x32xf32>
    %c0_180 = arith.constant 0 : index
    %c0_181 = arith.constant 0 : index
    %c0_182 = arith.constant 0 : index
    %c0_183 = arith.constant 0 : index
    %150 = vector.load %arg7[%c0_180, %c0_181, %c0_182, %c0_183] : memref<4x4x32x512xf32, #tpu.memory_space<vmem>>, vector<1x1x32x512xf32>
    %151 = vector.shape_cast %150 : vector<1x1x32x512xf32> to vector<32x512xf32>
    %cst_184 = arith.constant dense<0.000000e+00> : vector<2x512xf32>
    %152 = tpu.matmul %149, %151, %cst_184 {dimension_numbers = #tpu.dot_dimension_numbers<[1], [0], [0], [1], [0, 0, 1, 1], [], []>} : vector<2x32xf32>, vector<32x512xf32>, vector<2x512xf32> -> vector<2x512xf32>
    %153 = arith.addf %147, %152 : vector<2x512xf32>
    %c0_185 = arith.constant 0 : index
    %c0_186 = arith.constant 0 : index
    %c1_187 = arith.constant 1 : index
    %c0_188 = arith.constant 0 : index
    %154 = vector.load %arg14[%c0_185, %c0_186, %c1_187, %c0_188] : memref<2x4x8x32xf32, #tpu.memory_space<vmem>>, vector<2x1x1x32xf32>
    %155 = vector.shape_cast %154 : vector<2x1x1x32xf32> to vector<2x32xf32>
    %c0_189 = arith.constant 0 : index
    %c1_190 = arith.constant 1 : index
    %c0_191 = arith.constant 0 : index
    %c0_192 = arith.constant 0 : index
    %156 = vector.load %arg7[%c0_189, %c1_190, %c0_191, %c0_192] : memref<4x4x32x512xf32, #tpu.memory_space<vmem>>, vector<1x1x32x512xf32>
    %157 = vector.shape_cast %156 : vector<1x1x32x512xf32> to vector<32x512xf32>
    %cst_193 = arith.constant dense<0.000000e+00> : vector<2x512xf32>
    %158 = tpu.matmul %155, %157, %cst_193 {dimension_numbers = #tpu.dot_dimension_numbers<[1], [0], [0], [1], [0, 0, 1, 1], [], []>} : vector<2x32xf32>, vector<32x512xf32>, vector<2x512xf32> -> vector<2x512xf32>
    %159 = arith.addf %153, %158 : vector<2x512xf32>
    %c0_194 = arith.constant 0 : index
    %c0_195 = arith.constant 0 : index
    %c2_196 = arith.constant 2 : index
    %c0_197 = arith.constant 0 : index
    %160 = vector.load %arg14[%c0_194, %c0_195, %c2_196, %c0_197] : memref<2x4x8x32xf32, #tpu.memory_space<vmem>>, vector<2x1x1x32xf32>
    %161 = vector.shape_cast %160 : vector<2x1x1x32xf32> to vector<2x32xf32>
    %c0_198 = arith.constant 0 : index
    %c2_199 = arith.constant 2 : index
    %c0_200 = arith.constant 0 : index
    %c0_201 = arith.constant 0 : index
    %162 = vector.load %arg7[%c0_198, %c2_199, %c0_200, %c0_201] : memref<4x4x32x512xf32, #tpu.memory_space<vmem>>, vector<1x1x32x512xf32>
    %163 = vector.shape_cast %162 : vector<1x1x32x512xf32> to vector<32x512xf32>
    %cst_202 = arith.constant dense<0.000000e+00> : vector<2x512xf32>
    %164 = tpu.matmul %161, %163, %cst_202 {dimension_numbers = #tpu.dot_dimension_numbers<[1], [0], [0], [1], [0, 0, 1, 1], [], []>} : vector<2x32xf32>, vector<32x512xf32>, vector<2x512xf32> -> vector<2x512xf32>
    %165 = arith.addf %159, %164 : vector<2x512xf32>
    %c0_203 = arith.constant 0 : index
    %c0_204 = arith.constant 0 : index
    %c3_205 = arith.constant 3 : index
    %c0_206 = arith.constant 0 : index
    %166 = vector.load %arg14[%c0_203, %c0_204, %c3_205, %c0_206] : memref<2x4x8x32xf32, #tpu.memory_space<vmem>>, vector<2x1x1x32xf32>
    %167 = vector.shape_cast %166 : vector<2x1x1x32xf32> to vector<2x32xf32>
    %c0_207 = arith.constant 0 : index
    %c3_208 = arith.constant 3 : index
    %c0_209 = arith.constant 0 : index
    %c0_210 = arith.constant 0 : index
    %168 = vector.load %arg7[%c0_207, %c3_208, %c0_209, %c0_210] : memref<4x4x32x512xf32, #tpu.memory_space<vmem>>, vector<1x1x32x512xf32>
    %169 = vector.shape_cast %168 : vector<1x1x32x512xf32> to vector<32x512xf32>
    %cst_211 = arith.constant dense<0.000000e+00> : vector<2x512xf32>
    %170 = tpu.matmul %167, %169, %cst_211 {dimension_numbers = #tpu.dot_dimension_numbers<[1], [0], [0], [1], [0, 0, 1, 1], [], []>} : vector<2x32xf32>, vector<32x512xf32>, vector<2x512xf32> -> vector<2x512xf32>
    %171 = arith.addf %165, %170 : vector<2x512xf32>
    %c0_212 = arith.constant 0 : index
    %c1_213 = arith.constant 1 : index
    %c0_214 = arith.constant 0 : index
    %c0_215 = arith.constant 0 : index
    %172 = vector.load %arg14[%c0_212, %c1_213, %c0_214, %c0_215] : memref<2x4x8x32xf32, #tpu.memory_space<vmem>>, vector<2x1x1x32xf32>
    %173 = vector.shape_cast %172 : vector<2x1x1x32xf32> to vector<2x32xf32>
    %c1_216 = arith.constant 1 : index
    %c0_217 = arith.constant 0 : index
    %c0_218 = arith.constant 0 : index
    %c0_219 = arith.constant 0 : index
    %174 = vector.load %arg7[%c1_216, %c0_217, %c0_218, %c0_219] : memref<4x4x32x512xf32, #tpu.memory_space<vmem>>, vector<1x1x32x512xf32>
    %175 = vector.shape_cast %174 : vector<1x1x32x512xf32> to vector<32x512xf32>
    %cst_220 = arith.constant dense<0.000000e+00> : vector<2x512xf32>
    %176 = tpu.matmul %173, %175, %cst_220 {dimension_numbers = #tpu.dot_dimension_numbers<[1], [0], [0], [1], [0, 0, 1, 1], [], []>} : vector<2x32xf32>, vector<32x512xf32>, vector<2x512xf32> -> vector<2x512xf32>
    %177 = arith.addf %171, %176 : vector<2x512xf32>
    %c0_221 = arith.constant 0 : index
    %c1_222 = arith.constant 1 : index
    %c1_223 = arith.constant 1 : index
    %c0_224 = arith.constant 0 : index
    %178 = vector.load %arg14[%c0_221, %c1_222, %c1_223, %c0_224] : memref<2x4x8x32xf32, #tpu.memory_space<vmem>>, vector<2x1x1x32xf32>
    %179 = vector.shape_cast %178 : vector<2x1x1x32xf32> to vector<2x32xf32>
    %c1_225 = arith.constant 1 : index
    %c1_226 = arith.constant 1 : index
    %c0_227 = arith.constant 0 : index
    %c0_228 = arith.constant 0 : index
    %180 = vector.load %arg7[%c1_225, %c1_226, %c0_227, %c0_228] : memref<4x4x32x512xf32, #tpu.memory_space<vmem>>, vector<1x1x32x512xf32>
    %181 = vector.shape_cast %180 : vector<1x1x32x512xf32> to vector<32x512xf32>
    %cst_229 = arith.constant dense<0.000000e+00> : vector<2x512xf32>
    %182 = tpu.matmul %179, %181, %cst_229 {dimension_numbers = #tpu.dot_dimension_numbers<[1], [0], [0], [1], [0, 0, 1, 1], [], []>} : vector<2x32xf32>, vector<32x512xf32>, vector<2x512xf32> -> vector<2x512xf32>
    %183 = arith.addf %177, %182 : vector<2x512xf32>
    %c0_230 = arith.constant 0 : index
    %c1_231 = arith.constant 1 : index
    %c2_232 = arith.constant 2 : index
    %c0_233 = arith.constant 0 : index
    %184 = vector.load %arg14[%c0_230, %c1_231, %c2_232, %c0_233] : memref<2x4x8x32xf32, #tpu.memory_space<vmem>>, vector<2x1x1x32xf32>
    %185 = vector.shape_cast %184 : vector<2x1x1x32xf32> to vector<2x32xf32>
    %c1_234 = arith.constant 1 : index
    %c2_235 = arith.constant 2 : index
    %c0_236 = arith.constant 0 : index
    %c0_237 = arith.constant 0 : index
    %186 = vector.load %arg7[%c1_234, %c2_235, %c0_236, %c0_237] : memref<4x4x32x512xf32, #tpu.memory_space<vmem>>, vector<1x1x32x512xf32>
    %187 = vector.shape_cast %186 : vector<1x1x32x512xf32> to vector<32x512xf32>
    %cst_238 = arith.constant dense<0.000000e+00> : vector<2x512xf32>
    %188 = tpu.matmul %185, %187, %cst_238 {dimension_numbers = #tpu.dot_dimension_numbers<[1], [0], [0], [1], [0, 0, 1, 1], [], []>} : vector<2x32xf32>, vector<32x512xf32>, vector<2x512xf32> -> vector<2x512xf32>
    %189 = arith.addf %183, %188 : vector<2x512xf32>
    %c0_239 = arith.constant 0 : index
    %c1_240 = arith.constant 1 : index
    %c3_241 = arith.constant 3 : index
    %c0_242 = arith.constant 0 : index
    %190 = vector.load %arg14[%c0_239, %c1_240, %c3_241, %c0_242] : memref<2x4x8x32xf32, #tpu.memory_space<vmem>>, vector<2x1x1x32xf32>
    %191 = vector.shape_cast %190 : vector<2x1x1x32xf32> to vector<2x32xf32>
    %c1_243 = arith.constant 1 : index
    %c3_244 = arith.constant 3 : index
    %c0_245 = arith.constant 0 : index
    %c0_246 = arith.constant 0 : index
    %192 = vector.load %arg7[%c1_243, %c3_244, %c0_245, %c0_246] : memref<4x4x32x512xf32, #tpu.memory_space<vmem>>, vector<1x1x32x512xf32>
    %193 = vector.shape_cast %192 : vector<1x1x32x512xf32> to vector<32x512xf32>
    %cst_247 = arith.constant dense<0.000000e+00> : vector<2x512xf32>
    %194 = tpu.matmul %191, %193, %cst_247 {dimension_numbers = #tpu.dot_dimension_numbers<[1], [0], [0], [1], [0, 0, 1, 1], [], []>} : vector<2x32xf32>, vector<32x512xf32>, vector<2x512xf32> -> vector<2x512xf32>
    %195 = arith.addf %189, %194 : vector<2x512xf32>
    %c0_248 = arith.constant 0 : index
    %c2_249 = arith.constant 2 : index
    %c0_250 = arith.constant 0 : index
    %c0_251 = arith.constant 0 : index
    %196 = vector.load %arg14[%c0_248, %c2_249, %c0_250, %c0_251] : memref<2x4x8x32xf32, #tpu.memory_space<vmem>>, vector<2x1x1x32xf32>
    %197 = vector.shape_cast %196 : vector<2x1x1x32xf32> to vector<2x32xf32>
    %c2_252 = arith.constant 2 : index
    %c0_253 = arith.constant 0 : index
    %c0_254 = arith.constant 0 : index
    %c0_255 = arith.constant 0 : index
    %198 = vector.load %arg7[%c2_252, %c0_253, %c0_254, %c0_255] : memref<4x4x32x512xf32, #tpu.memory_space<vmem>>, vector<1x1x32x512xf32>
    %199 = vector.shape_cast %198 : vector<1x1x32x512xf32> to vector<32x512xf32>
    %cst_256 = arith.constant dense<0.000000e+00> : vector<2x512xf32>
    %200 = tpu.matmul %197, %199, %cst_256 {dimension_numbers = #tpu.dot_dimension_numbers<[1], [0], [0], [1], [0, 0, 1, 1], [], []>} : vector<2x32xf32>, vector<32x512xf32>, vector<2x512xf32> -> vector<2x512xf32>
    %201 = arith.addf %195, %200 : vector<2x512xf32>
    %c0_257 = arith.constant 0 : index
    %c2_258 = arith.constant 2 : index
    %c1_259 = arith.constant 1 : index
    %c0_260 = arith.constant 0 : index
    %202 = vector.load %arg14[%c0_257, %c2_258, %c1_259, %c0_260] : memref<2x4x8x32xf32, #tpu.memory_space<vmem>>, vector<2x1x1x32xf32>
    %203 = vector.shape_cast %202 : vector<2x1x1x32xf32> to vector<2x32xf32>
    %c2_261 = arith.constant 2 : index
    %c1_262 = arith.constant 1 : index
    %c0_263 = arith.constant 0 : index
    %c0_264 = arith.constant 0 : index
    %204 = vector.load %arg7[%c2_261, %c1_262, %c0_263, %c0_264] : memref<4x4x32x512xf32, #tpu.memory_space<vmem>>, vector<1x1x32x512xf32>
    %205 = vector.shape_cast %204 : vector<1x1x32x512xf32> to vector<32x512xf32>
    %cst_265 = arith.constant dense<0.000000e+00> : vector<2x512xf32>
    %206 = tpu.matmul %203, %205, %cst_265 {dimension_numbers = #tpu.dot_dimension_numbers<[1], [0], [0], [1], [0, 0, 1, 1], [], []>} : vector<2x32xf32>, vector<32x512xf32>, vector<2x512xf32> -> vector<2x512xf32>
    %207 = arith.addf %201, %206 : vector<2x512xf32>
    %c0_266 = arith.constant 0 : index
    %c2_267 = arith.constant 2 : index
    %c2_268 = arith.constant 2 : index
    %c0_269 = arith.constant 0 : index
    %208 = vector.load %arg14[%c0_266, %c2_267, %c2_268, %c0_269] : memref<2x4x8x32xf32, #tpu.memory_space<vmem>>, vector<2x1x1x32xf32>
    %209 = vector.shape_cast %208 : vector<2x1x1x32xf32> to vector<2x32xf32>
    %c2_270 = arith.constant 2 : index
    %c2_271 = arith.constant 2 : index
    %c0_272 = arith.constant 0 : index
    %c0_273 = arith.constant 0 : index
    %210 = vector.load %arg7[%c2_270, %c2_271, %c0_272, %c0_273] : memref<4x4x32x512xf32, #tpu.memory_space<vmem>>, vector<1x1x32x512xf32>
    %211 = vector.shape_cast %210 : vector<1x1x32x512xf32> to vector<32x512xf32>
    %cst_274 = arith.constant dense<0.000000e+00> : vector<2x512xf32>
    %212 = tpu.matmul %209, %211, %cst_274 {dimension_numbers = #tpu.dot_dimension_numbers<[1], [0], [0], [1], [0, 0, 1, 1], [], []>} : vector<2x32xf32>, vector<32x512xf32>, vector<2x512xf32> -> vector<2x512xf32>
    %213 = arith.addf %207, %212 : vector<2x512xf32>
    %c0_275 = arith.constant 0 : index
    %c2_276 = arith.constant 2 : index
    %c3_277 = arith.constant 3 : index
    %c0_278 = arith.constant 0 : index
    %214 = vector.load %arg14[%c0_275, %c2_276, %c3_277, %c0_278] : memref<2x4x8x32xf32, #tpu.memory_space<vmem>>, vector<2x1x1x32xf32>
    %215 = vector.shape_cast %214 : vector<2x1x1x32xf32> to vector<2x32xf32>
    %c2_279 = arith.constant 2 : index
    %c3_280 = arith.constant 3 : index
    %c0_281 = arith.constant 0 : index
    %c0_282 = arith.constant 0 : index
    %216 = vector.load %arg7[%c2_279, %c3_280, %c0_281, %c0_282] : memref<4x4x32x512xf32, #tpu.memory_space<vmem>>, vector<1x1x32x512xf32>
    %217 = vector.shape_cast %216 : vector<1x1x32x512xf32> to vector<32x512xf32>
    %cst_283 = arith.constant dense<0.000000e+00> : vector<2x512xf32>
    %218 = tpu.matmul %215, %217, %cst_283 {dimension_numbers = #tpu.dot_dimension_numbers<[1], [0], [0], [1], [0, 0, 1, 1], [], []>} : vector<2x32xf32>, vector<32x512xf32>, vector<2x512xf32> -> vector<2x512xf32>
    %219 = arith.addf %213, %218 : vector<2x512xf32>
    %c0_284 = arith.constant 0 : index
    %c3_285 = arith.constant 3 : index
    %c0_286 = arith.constant 0 : index
    %c0_287 = arith.constant 0 : index
    %220 = vector.load %arg14[%c0_284, %c3_285, %c0_286, %c0_287] : memref<2x4x8x32xf32, #tpu.memory_space<vmem>>, vector<2x1x1x32xf32>
    %221 = vector.shape_cast %220 : vector<2x1x1x32xf32> to vector<2x32xf32>
    %c3_288 = arith.constant 3 : index
    %c0_289 = arith.constant 0 : index
    %c0_290 = arith.constant 0 : index
    %c0_291 = arith.constant 0 : index
    %222 = vector.load %arg7[%c3_288, %c0_289, %c0_290, %c0_291] : memref<4x4x32x512xf32, #tpu.memory_space<vmem>>, vector<1x1x32x512xf32>
    %223 = vector.shape_cast %222 : vector<1x1x32x512xf32> to vector<32x512xf32>
    %cst_292 = arith.constant dense<0.000000e+00> : vector<2x512xf32>
    %224 = tpu.matmul %221, %223, %cst_292 {dimension_numbers = #tpu.dot_dimension_numbers<[1], [0], [0], [1], [0, 0, 1, 1], [], []>} : vector<2x32xf32>, vector<32x512xf32>, vector<2x512xf32> -> vector<2x512xf32>
    %225 = arith.addf %219, %224 : vector<2x512xf32>
    %c0_293 = arith.constant 0 : index
    %c3_294 = arith.constant 3 : index
    %c1_295 = arith.constant 1 : index
    %c0_296 = arith.constant 0 : index
    %226 = vector.load %arg14[%c0_293, %c3_294, %c1_295, %c0_296] : memref<2x4x8x32xf32, #tpu.memory_space<vmem>>, vector<2x1x1x32xf32>
    %227 = vector.shape_cast %226 : vector<2x1x1x32xf32> to vector<2x32xf32>
    %c3_297 = arith.constant 3 : index
    %c1_298 = arith.constant 1 : index
    %c0_299 = arith.constant 0 : index
    %c0_300 = arith.constant 0 : index
    %228 = vector.load %arg7[%c3_297, %c1_298, %c0_299, %c0_300] : memref<4x4x32x512xf32, #tpu.memory_space<vmem>>, vector<1x1x32x512xf32>
    %229 = vector.shape_cast %228 : vector<1x1x32x512xf32> to vector<32x512xf32>
    %cst_301 = arith.constant dense<0.000000e+00> : vector<2x512xf32>
    %230 = tpu.matmul %227, %229, %cst_301 {dimension_numbers = #tpu.dot_dimension_numbers<[1], [0], [0], [1], [0, 0, 1, 1], [], []>} : vector<2x32xf32>, vector<32x512xf32>, vector<2x512xf32> -> vector<2x512xf32>
    %231 = arith.addf %225, %230 : vector<2x512xf32>
    %c0_302 = arith.constant 0 : index
    %c3_303 = arith.constant 3 : index
    %c2_304 = arith.constant 2 : index
    %c0_305 = arith.constant 0 : index
    %232 = vector.load %arg14[%c0_302, %c3_303, %c2_304, %c0_305] : memref<2x4x8x32xf32, #tpu.memory_space<vmem>>, vector<2x1x1x32xf32>
    %233 = vector.shape_cast %232 : vector<2x1x1x32xf32> to vector<2x32xf32>
    %c3_306 = arith.constant 3 : index
    %c2_307 = arith.constant 2 : index
    %c0_308 = arith.constant 0 : index
    %c0_309 = arith.constant 0 : index
    %234 = vector.load %arg7[%c3_306, %c2_307, %c0_308, %c0_309] : memref<4x4x32x512xf32, #tpu.memory_space<vmem>>, vector<1x1x32x512xf32>
    %235 = vector.shape_cast %234 : vector<1x1x32x512xf32> to vector<32x512xf32>
    %cst_310 = arith.constant dense<0.000000e+00> : vector<2x512xf32>
    %236 = tpu.matmul %233, %235, %cst_310 {dimension_numbers = #tpu.dot_dimension_numbers<[1], [0], [0], [1], [0, 0, 1, 1], [], []>} : vector<2x32xf32>, vector<32x512xf32>, vector<2x512xf32> -> vector<2x512xf32>
    %237 = arith.addf %231, %236 : vector<2x512xf32>
    %c0_311 = arith.constant 0 : index
    %c3_312 = arith.constant 3 : index
    %c3_313 = arith.constant 3 : index
    %c0_314 = arith.constant 0 : index
    %238 = vector.load %arg14[%c0_311, %c3_312, %c3_313, %c0_314] : memref<2x4x8x32xf32, #tpu.memory_space<vmem>>, vector<2x1x1x32xf32>
    %239 = vector.shape_cast %238 : vector<2x1x1x32xf32> to vector<2x32xf32>
    %c3_315 = arith.constant 3 : index
    %c3_316 = arith.constant 3 : index
    %c0_317 = arith.constant 0 : index
    %c0_318 = arith.constant 0 : index
    %240 = vector.load %arg7[%c3_315, %c3_316, %c0_317, %c0_318] : memref<4x4x32x512xf32, #tpu.memory_space<vmem>>, vector<1x1x32x512xf32>
    %241 = vector.shape_cast %240 : vector<1x1x32x512xf32> to vector<32x512xf32>
    %cst_319 = arith.constant dense<0.000000e+00> : vector<2x512xf32>
    %242 = tpu.matmul %239, %241, %cst_319 {dimension_numbers = #tpu.dot_dimension_numbers<[1], [0], [0], [1], [0, 0, 1, 1], [], []>} : vector<2x32xf32>, vector<32x512xf32>, vector<2x512xf32> -> vector<2x512xf32>
    %243 = arith.addf %237, %242 : vector<2x512xf32>
    %c0_320 = arith.constant 0 : index
    %c0_321 = arith.constant 0 : index
    %244 = vector.load %arg8[%c0_320, %c0_321] : memref<1x512xf32, #tpu.memory_space<vmem>>, vector<1x512xf32>
    %245 = vector.broadcast %244 : vector<1x512xf32> to vector<2x512xf32>
    %246 = arith.addf %243, %245 : vector<2x512xf32>
    %cst_322 = arith.constant 0.000000e+00 : f32
    %247 = vector.broadcast %cst_322 : f32 to vector<2x512xf32>
    %248 = arith.cmpf oge, %246, %247 : vector<2x512xf32>
    %cst_323 = arith.constant 0.00999999977 : f32
    %249 = vector.broadcast %cst_323 : f32 to vector<2x512xf32>
    %250 = arith.mulf %249, %246 : vector<2x512xf32>
    %251 = arith.select %248, %246, %250 : vector<2x512xi1>, vector<2x512xf32>
    %c0_324 = arith.constant 0 : index
    %c0_325 = arith.constant 0 : index
    %252 = vector.load %arg9[%c0_324, %c0_325] : memref<512x16xf32, #tpu.memory_space<vmem>>, vector<512x16xf32>
    %cst_326 = arith.constant dense<0.000000e+00> : vector<2x16xf32>
    %253 = tpu.matmul %251, %252, %cst_326 {dimension_numbers = #tpu.dot_dimension_numbers<[1], [0], [0], [1], [0, 0, 1, 1], [], []>} : vector<2x512xf32>, vector<512x16xf32>, vector<2x16xf32> -> vector<2x16xf32>
    %c0_327 = arith.constant 0 : index
    %c0_328 = arith.constant 0 : index
    %254 = vector.load %arg10[%c0_327, %c0_328] : memref<1x16xf32, #tpu.memory_space<vmem>>, vector<1x16xf32>
    %255 = vector.broadcast %254 : vector<1x16xf32> to vector<2x16xf32>
    %256 = arith.addf %253, %255 : vector<2x16xf32>
    %c0_329 = arith.constant 0 : index
    %c0_330 = arith.constant 0 : index
    %257 = vector.load %arg11[%c0_329, %c0_330] : memref<2x16xf32, #tpu.memory_space<vmem>>, vector<2x16xf32>
    tpu.vector_store %arg11[%c0_329, %c0_330], %256 {strides = array<i32>} : memref<2x16xf32, #tpu.memory_space<vmem>>, vector<2x16xf32>,
    return
  }
}

</mosaic_0001>

<bundles_post_ra>
// kernel: inverter_forward.1
= control target key start
LH: loop header
LB: loop body
LE: loop exit
PB: predicated region body
PF: predicated region fallthrough
CT: control target
= control target key end

     0   :  { %vm474_vm0 = vcmask 1040384   ;;  %vm281_vm1 = vcmask 72704   ;;  %s8755_s0 = inlined_call_operand.vmem [shape: f32[512,9], index: 0, kind: input, shape index: {}]   ;;  %s8756_s1 = inlined_call_operand.vmem [shape: f32[9,8], index: 1, kind: input, shape index: {}]   ;;  %s8757_s2 = inlined_call_operand.vmem [shape: f32[1,8], index: 2, kind: input, shape index: {}]   ;;  %s8758_s3 = inlined_call_operand.vmem [shape: f32[9,8,16], index: 3, kind: input, shape index: {}]   ;;  %s8759_s4 = inlined_call_operand.vmem [shape: f32[1,16], index: 4, kind: input, shape index: {}]   ;;  %s8760_s5 = inlined_call_operand.vmem [shape: f32[9,16,32], index: 5, kind: input, shape index: {}]   ;;  %s8761_s6 = inlined_call_operand.vmem [shape: f32[1,32], index: 6, kind: input, shape index: {}]   ;;  %s8762_s7 = inlined_call_operand.vmem [shape: f32[4,4,32,512], index: 7, kind: input, shape index: {}]   ;;  %s8763_s8 = inlined_call_operand.vmem [shape: f32[1,512], index: 8, kind: input, shape index: {}]   ;;  %s8764_s9 = inlined_call_operand.vmem [shape: f32[512,16], index: 9, kind: input, shape index: {}]   ;;  %s8765_s10 = inlined_call_operand.vmem [shape: f32[1,16], index: 10, kind: input, shape index: {}]   ;;  %s8766_s11 = inlined_call_operand.hbm [shape: f32[2,16], index: 11, kind: output, shape index: {}]  }
   0x1   :  { %v276_v0 = vld [vmem:[%s8756_s1 + $0x8] sm:$0x1]  ;;  %v275_v1 = vld [vmem:[%s8756_s1] sm:$0xff] }
   0x2   :  { %5385 = vmatpush.msk.msra.mxu0 %vm474_vm0, %v276_v0  ;;  %v211_v2 = vld [vmem:[%s8755_s0] sm:$0xff] }
   0x4   :  { %493 = vmatpush.msra.mxu0 %v275_v1 }
   0x5   :  { %16 = vsyncpa [#allocation6], 0  ;;  %5386 = vmatmul.msk.f32.vlgmr.msra.gmra.mxu0 %vm281_vm1, %v211_v2  ;;  %v212_v3 = vld [vmem:[%s8755_s0 + $0x8] sm:$0xff]  ;;  %v213_v4 = vld [vmem:[%s8755_s0 + $0x10] sm:$0xff]  ;;  %vm39_vm2 = vcmask 64512   ;;  %v6027_v14 = vmov 0.0  }
   0x6   :  { %v214_v5 = vld [vmem:[%s8755_s0 + $0x18] sm:$0xff]  ;;  %v215_v6 = vld [vmem:[%s8755_s0 + $0x20] sm:$0xff]  ;;  %v216_v7 = vld [vmem:[%s8755_s0 + $0x28] sm:$0xff]  ;;  %44 = vst.msk [vmem:[#allocation2 + $0x18] sm:$0xff] %vm39_vm2, %v6027_v14  ;;  %vm42_vm4 = vcmask 58368   ;;  %s6028_s29 = smov [#allocation5]  }
   0x7   :  { %v217_v8 = vld [vmem:[%s8755_s0 + $0x30] sm:$0xff]  ;;  %v218_v9 = vld [vmem:[%s8755_s0 + $0x38] sm:$0xff]  ;;  %v219_v10 = vld [vmem:[%s8755_s0 + $0x40] sm:$0xff]  ;;  %45 = vst.msk [vmem:[#allocation2 + $0x20] sm:$0xff] %vm39_vm2, %v6027_v14  ;;  %s5234_s30 = sshll.u32 %s6028_s29, 4  ;;  %s5236_s14 = sshll.u32 %s8766_s11, 4  ;;  %s5235_s30 = int_to_ptr.vmem [resolvable:$true] %s5234_s30  ;;  %s5237_s14 = int_to_ptr.hbm [resolvable:$true] %s5236_s14 }
   0x8   :  { %v220_v11 = vld [vmem:[%s8755_s0 + $0x48] sm:$0xff]  ;;  %v221_v12 = vld [vmem:[%s8755_s0 + $0x50] sm:$0xff]  ;;  %v222_v13 = vld [vmem:[%s8755_s0 + $0x58] sm:$0xff]  ;;  %40 = vst.msk [vmem:[#allocation2] sm:$0xff] %vm39_vm2, %v6027_v14 }
   0x9   :  { %v223_v15 = vld [vmem:[%s8755_s0 + $0x60] sm:$0xff]  ;;  %41 = vst.msk [vmem:[#allocation2 + $0x8] sm:$0xff] %vm39_vm2, %v6027_v14  ;;  %v224_v16 = vld [vmem:[%s8755_s0 + $0x68] sm:$0xff]  ;;  %v225_v17 = vld [vmem:[%s8755_s0 + $0x70] sm:$0xff] }
   0xa   :  { %47 = vst.msk [vmem:[#allocation2 + $0x30] sm:$0xff] %vm39_vm2, %v6027_v14  ;;  %v226_v18 = vld [vmem:[%s8755_s0 + $0x78] sm:$0xff]  ;;  %v6220_v19 = vld [vmem:[%s8757_s2] ss:$0 sm:$0xff]  ;;  %v228_v25 = vld [vmem:[%s8755_s0 + $0x88] sm:$0xff] }
   0xb   :  { %48 = vst.msk [vmem:[#allocation2 + $0x38] sm:$0xff] %vm39_vm2, %v6027_v14  ;;  %v227_v21 = vld [vmem:[%s8755_s0 + $0x80] sm:$0xff]  ;;  %v229_v31 = vld [vmem:[%s8755_s0 + $0x90] sm:$0xff]  ;;  %v5450_v33 = vld [vmem:[%s8758_s3 + $0x8] sm:$0xff] }
   0xc   :  { %50 = vst.msk [vmem:[#allocation2 + $0x48] sm:$0xff] %vm39_vm2, %v6027_v14  ;;  %v975_v34 = vld [vmem:[%s8758_s3] sm:$0xff]  ;;  %v230_v35 = vld [vmem:[%s8755_s0 + $0x98] sm:$0xff]  ;;  %1073 = vmatpush.msra.mxu1 %v5450_v33  ;;  %v5483_v36 = vld [vmem:[%s8758_s3 + $0x10] sm:$0xff] }
   0xd   :  { %5387 = vmatmul.msk.f32.gmra.mxu0 %vm281_vm1, %v212_v3  ;;  %51 = vst.msk [vmem:[#allocation2 + $0x50] sm:$0xff] %vm39_vm2, %v6027_v14  ;;  %1186 = vmatpush.msra.mxu2 %v975_v34  ;;  %v231_v41 = vld [vmem:[%s8755_s0 + $0xa0] sm:$0xff]  ;;  %v232_v43 = vld [vmem:[%s8755_s0 + $0xa8] sm:$0xff]  ;;  %v233_v52 = vld [vmem:[%s8755_s0 + $0xb0] sm:$0xff] }
   0xe   :  { %53 = vst.msk [vmem:[#allocation2 + $0x60] sm:$0xff] %vm39_vm2, %v6027_v14  ;;  %1333 = vmatpush.msra.mxu3 %v5483_v36  ;;  %v234_v63 = vld [vmem:[%s8755_s0 + $0xb8] sm:$0xff] }
   0xf   :  { %54 = vst.msk [vmem:[#allocation2 + $0x68] sm:$0xff] %vm39_vm2, %v6027_v14 }
  0x10   :  { %56 = vst.msk [vmem:[#allocation2 + $0x78] sm:$0xff] %vm39_vm2, %v6027_v14  ;;  %v977_v37 = vld [vmem:[#allocation2 + $0x1] ss:$2 sm:$0xff]  ;;  %v944_v38 = vld [vmem:[#allocation2] ss:$2 sm:$0xff] }
  0x11   :  { %57 = vst.msk [vmem:[#allocation2 + $0x80] sm:$0xff] %vm39_vm2, %v6027_v14  ;;  %5451 = vmatmul.msk.f32.vlgmr.msra.gmra.mxu1 %vm39_vm2, %v977_v37  ;;  %5467 = vmatmul.msk.f32.vlgmr.msra.gmra.mxu2 %vm39_vm2, %v944_v38 }
  0x12   :  { %59 = vst.msk [vmem:[#allocation2 + $0x90] sm:$0xff] %vm39_vm2, %v6027_v14 }
  0x13   :  { %60 = vst.msk [vmem:[#allocation2 + $0x98] sm:$0xff] %vm39_vm2, %v6027_v14 }
  0x14   :  { %62 = vst.msk [vmem:[#allocation2 + $0xa8] sm:$0xff] %vm39_vm2, %v6027_v14 }
  0x15   :  { %5388 = vmatmul.msk.f32.gmra.mxu0 %vm281_vm1, %v213_v4  ;;  %63 = vst.msk [vmem:[#allocation2 + $0xb0] sm:$0xff] %vm39_vm2, %v6027_v14 }
  0x16   :  { %65 = vst.msk [vmem:[#allocation2 + $0xc0] sm:$0xff] %vm39_vm2, %v6027_v14 }
  0x17   :  { %66 = vst.msk [vmem:[#allocation2 + $0xc8] sm:$0xff] %vm39_vm2, %v6027_v14 }
  0x18   :  { %68 = vst.msk [vmem:[#allocation2 + $0xd8] sm:$0xff] %vm39_vm2, %v6027_v14 }
  0x19   :  { %69 = vst.msk [vmem:[#allocation2 + $0xe0] sm:$0xff] %vm39_vm2, %v6027_v14 }
  0x1a   :  { %71 = vst.msk [vmem:[#allocation2 + $0xf0] sm:$0xff] %vm39_vm2, %v6027_v14 }
  0x1b   :  { %72 = vst.msk [vmem:[#allocation2 + $0xf8] sm:$0xff] %vm39_vm2, %v6027_v14 }
  0x1c   :  { %74 = vst.msk [vmem:[#allocation2 + $0x108] sm:$0xff] %vm39_vm2, %v6027_v14 }
  0x1d   :  { %5389 = vmatmul.msk.f32.gmra.mxu0 %vm281_vm1, %v214_v5  ;;  %75 = vst.msk [vmem:[#allocation2 + $0x110] sm:$0xff] %vm39_vm2, %v6027_v14 }
  0x1e   :  { %77 = vst.msk [vmem:[#allocation2 + $0x120] sm:$0xff] %vm39_vm2, %v6027_v14 }
  0x1f   :  { %78 = vst.msk [vmem:[#allocation2 + $0x128] sm:$0xff] %vm39_vm2, %v6027_v14 }
  0x20   :  { %80 = vst.msk [vmem:[#allocation2 + $0x138] sm:$0xff] %vm39_vm2, %v6027_v14 }
  0x21   :  { %81 = vst.msk [vmem:[#allocation2 + $0x140] sm:$0xff] %vm39_vm2, %v6027_v14 }
  0x22   :  { %83 = vst.msk [vmem:[#allocation2 + $0x150] sm:$0xff] %vm39_vm2, %v6027_v14 }
  0x23   :  { %84 = vst.msk [vmem:[#allocation2 + $0x158] sm:$0xff] %vm39_vm2, %v6027_v14 }
  0x24   :  { %86 = vst.msk [vmem:[#allocation2 + $0x168] sm:$0xff] %vm39_vm2, %v6027_v14 }
  0x25   :  { %5390 = vmatmul.msk.f32.gmra.mxu0 %vm281_vm1, %v215_v6  ;;  %87 = vst.msk [vmem:[#allocation2 + $0x170] sm:$0xff] %vm39_vm2, %v6027_v14 }
  0x26   :  { %89 = vst.msk [vmem:[#allocation2 + $0x180] sm:$0xff] %vm39_vm2, %v6027_v14 }
  0x27   :  { %90 = vst.msk [vmem:[#allocation2 + $0x188] sm:$0xff] %vm39_vm2, %v6027_v14 }
  0x28   :  { %95 = vst.msk [vmem:[#allocation2 + $0x1b0] sm:$0xff] %vm39_vm2, %v6027_v14 }
  0x29   :  { %96 = vst.msk [vmem:[#allocation2 + $0x1b8] sm:$0xff] %vm39_vm2, %v6027_v14 }
  0x2a   :  { %98 = vst.msk [vmem:[#allocation2 + $0x1c8] sm:$0xff] %vm39_vm2, %v6027_v14 }
  0x2b   :  { %99 = vst.msk [vmem:[#allocation2 + $0x1d0] sm:$0xff] %vm39_vm2, %v6027_v14 }
  0x2c   :  { %101 = vst.msk [vmem:[#allocation2 + $0x1e0] sm:$0xff] %vm39_vm2, %v6027_v14 }
  0x2d   :  { %5391 = vmatmul.msk.f32.gmra.mxu0 %vm281_vm1, %v216_v7  ;;  %102 = vst.msk [vmem:[#allocation2 + $0x1e8] sm:$0xff] %vm39_vm2, %v6027_v14  ;;  %v235_v7 = vld [vmem:[%s8755_s0 + $0xc0] sm:$0xff] }
  0x2e   :  { %104 = vst.msk [vmem:[#allocation2 + $0x1f8] sm:$0xff] %vm39_vm2, %v6027_v14 }
  0x2f   :  { %105 = vst.msk [vmem:[#allocation2 + $0x200] sm:$0xff] %vm39_vm2, %v6027_v14 }
  0x30   :  { %107 = vst.msk [vmem:[#allocation2 + $0x210] sm:$0xff] %vm39_vm2, %v6027_v14 }
  0x31   :  { %108 = vst.msk [vmem:[#allocation2 + $0x218] sm:$0xff] %vm39_vm2, %v6027_v14 }
  0x32   :  { %110 = vst.msk [vmem:[#allocation2 + $0x228] sm:$0xff] %vm39_vm2, %v6027_v14 }
  0x33   :  { %111 = vst.msk [vmem:[#allocation2 + $0x230] sm:$0xff] %vm39_vm2, %v6027_v14 }
  0x34   :  { %113 = vst.msk [vmem:[#allocation2 + $0x240] sm:$0xff] %vm39_vm2, %v6027_v14 }
  0x35   :  { %5392 = vmatmul.msk.f32.gmra.mxu0 %vm281_vm1, %v217_v8  ;;  %114 = vst.msk [vmem:[#allocation2 + $0x248] sm:$0xff] %vm39_vm2, %v6027_v14 }
  0x36   :  { %116 = vst.msk [vmem:[#allocation2 + $0x258] sm:$0xff] %vm39_vm2, %v6027_v14 }
  0x37   :  { %117 = vst.msk [vmem:[#allocation2 + $0x260] sm:$0xff] %vm39_vm2, %v6027_v14 }
  0x38   :  { %119 = vst.msk [vmem:[#allocation2 + $0x270] sm:$0xff] %vm39_vm2, %v6027_v14 }
  0x39   :  { %120 = vst.msk [vmem:[#allocation2 + $0x278] sm:$0xff] %vm39_vm2, %v6027_v14 }
  0x3a   :  { %122 = vst.msk [vmem:[#allocation2 + $0x288] sm:$0xff] %vm39_vm2, %v6027_v14 }
  0x3b   :  { %123 = vst.msk [vmem:[#allocation2 + $0x290] sm:$0xff] %vm39_vm2, %v6027_v14 }
  0x3c   :  { %125 = vst.msk [vmem:[#allocation2 + $0x2a0] sm:$0xff] %vm39_vm2, %v6027_v14 }
  0x3d   :  { %5393 = vmatmul.msk.f32.gmra.mxu0 %vm281_vm1, %v218_v9  ;;  %126 = vst.msk [vmem:[#allocation2 + $0x2a8] sm:$0xff] %vm39_vm2, %v6027_v14 }
  0x3e   :  { %128 = vst.msk [vmem:[#allocation2 + $0x2b8] sm:$0xff] %vm39_vm2, %v6027_v14 }
  0x3f   :  { %129 = vst.msk [vmem:[#allocation2 + $0x2c0] sm:$0xff] %vm39_vm2, %v6027_v14 }
  0x40   :  { %131 = vst.msk [vmem:[#allocation2 + $0x2d0] sm:$0xff] %vm39_vm2, %v6027_v14 }
  0x41   :  { %132 = vst.msk [vmem:[#allocation2 + $0x2d8] sm:$0xff] %vm39_vm2, %v6027_v14 }
  0x42   :  { %134 = vst.msk [vmem:[#allocation2 + $0x2e8] sm:$0xff] %vm39_vm2, %v6027_v14 }
  0x43   :  { %135 = vst.msk [vmem:[#allocation2 + $0x2f0] sm:$0xff] %vm39_vm2, %v6027_v14 }
  0x44   :  { %137 = vst.msk [vmem:[#allocation2 + $0x300] sm:$0xff] %vm39_vm2, %v6027_v14 }
  0x45   :  { %5394 = vmatmul.msk.f32.gmra.mxu0 %vm281_vm1, %v219_v10  ;;  %138 = vst.msk [vmem:[#allocation2 + $0x308] sm:$0xff] %vm39_vm2, %v6027_v14 }
  0x46   :  { %140 = vst.msk [vmem:[#allocation2 + $0x318] sm:$0xff] %vm39_vm2, %v6027_v14 }
  0x47   :  { %141 = vst.msk [vmem:[#allocation2 + $0x320] sm:$0xff] %vm39_vm2, %v6027_v14 }
  0x48   :  { %143 = vst.msk [vmem:[#allocation2 + $0x330] sm:$0xff] %vm39_vm2, %v6027_v14 }
  0x49   :  { %144 = vst.msk [vmem:[#allocation2 + $0x338] sm:$0xff] %vm39_vm2, %v6027_v14 }
  0x4a   :  { %46 = vst.msk [vmem:[#allocation2 + $0x28] sm:$0x3] %vm42_vm4, %v6027_v14 }
  0x4b   :  { %43 = vst.msk [vmem:[#allocation2 + $0x10] sm:$0x3] %vm42_vm4, %v6027_v14 }
  0x4c   :  { %49 = vst.msk [vmem:[#allocation2 + $0x40] sm:$0x3] %vm42_vm4, %v6027_v14 }
  0x4d   :  { %5395 = vmatmul.msk.f32.gmra.mxu0 %vm281_vm1, %v220_v11  ;;  %52 = vst.msk [vmem:[#allocation2 + $0x58] sm:$0x3] %vm42_vm4, %v6027_v14 }
  0x4e   :  { %55 = vst.msk [vmem:[#allocation2 + $0x70] sm:$0x3] %vm42_vm4, %v6027_v14 }
  0x4f   :  { %58 = vst.msk [vmem:[#allocation2 + $0x88] sm:$0x3] %vm42_vm4, %v6027_v14 }
  0x50   :  { %61 = vst.msk [vmem:[#allocation2 + $0xa0] sm:$0x3] %vm42_vm4, %v6027_v14 }
  0x51   :  { %64 = vst.msk [vmem:[#allocation2 + $0xb8] sm:$0x3] %vm42_vm4, %v6027_v14 }
  0x52   :  { %67 = vst.msk [vmem:[#allocation2 + $0xd0] sm:$0x3] %vm42_vm4, %v6027_v14  ;;  %v1237_v39 = vld [vmem:[#allocation2 + $0x2] ss:$2 sm:$0xff] }
  0x53   :  { %70 = vst.msk [vmem:[#allocation2 + $0xe8] sm:$0x3] %vm42_vm4, %v6027_v14  ;;  %5484 = vmatmul.msk.f32.vlgmr.msra.gmra.mxu3 %vm39_vm2, %v1237_v39 }
  0x54   :  { %73 = vst.msk [vmem:[#allocation2 + $0x100] sm:$0x3] %vm42_vm4, %v6027_v14 }
  0x55   :  { %5396 = vmatmul.msk.f32.gmra.mxu0 %vm281_vm1, %v221_v12  ;;  %76 = vst.msk [vmem:[#allocation2 + $0x118] sm:$0x3] %vm42_vm4, %v6027_v14 }
  0x56   :  { %79 = vst.msk [vmem:[#allocation2 + $0x130] sm:$0x3] %vm42_vm4, %v6027_v14 }
  0x57   :  { %82 = vst.msk [vmem:[#allocation2 + $0x148] sm:$0x3] %vm42_vm4, %v6027_v14 }
  0x58   :  { %85 = vst.msk [vmem:[#allocation2 + $0x160] sm:$0x3] %vm42_vm4, %v6027_v14 }
  0x59   :  { %88 = vst.msk [vmem:[#allocation2 + $0x178] sm:$0x3] %vm42_vm4, %v6027_v14 }
  0x5a   :  { %91 = vst.msk [vmem:[#allocation2 + $0x190] sm:$0x3] %vm42_vm4, %v6027_v14 }
  0x5b   :  { %97 = vst.msk [vmem:[#allocation2 + $0x1c0] sm:$0x3] %vm42_vm4, %v6027_v14 }
  0x5c   :  { %100 = vst.msk [vmem:[#allocation2 + $0x1d8] sm:$0x3] %vm42_vm4, %v6027_v14 }
  0x5d   :  { %5397 = vmatmul.msk.f32.gmra.mxu0 %vm281_vm1, %v222_v13  ;;  %103 = vst.msk [vmem:[#allocation2 + $0x1f0] sm:$0x3] %vm42_vm4, %v6027_v14 }
  0x5e   :  { %106 = vst.msk [vmem:[#allocation2 + $0x208] sm:$0x3] %vm42_vm4, %v6027_v14 }
  0x5f   :  { %109 = vst.msk [vmem:[#allocation2 + $0x220] sm:$0x3] %vm42_vm4, %v6027_v14 }
  0x60   :  { %112 = vst.msk [vmem:[#allocation2 + $0x238] sm:$0x3] %vm42_vm4, %v6027_v14 }
  0x61   :  { %115 = vst.msk [vmem:[#allocation2 + $0x250] sm:$0x3] %vm42_vm4, %v6027_v14 }
  0x62   :  { %118 = vst.msk [vmem:[#allocation2 + $0x268] sm:$0x3] %vm42_vm4, %v6027_v14 }
  0x63   :  { %121 = vst.msk [vmem:[#allocation2 + $0x280] sm:$0x3] %vm42_vm4, %v6027_v14 }
  0x64   :  { %124 = vst.msk [vmem:[#allocation2 + $0x298] sm:$0x3] %vm42_vm4, %v6027_v14 }
  0x65   :  { %5398 = vmatmul.msk.f32.gmra.mxu0 %vm281_vm1, %v223_v15  ;;  %127 = vst.msk [vmem:[#allocation2 + $0x2b0] sm:$0x3] %vm42_vm4, %v6027_v14 }
  0x66   :  { %130 = vst.msk [vmem:[#allocation2 + $0x2c8] sm:$0x3] %vm42_vm4, %v6027_v14 }
  0x67   :  { %133 = vst.msk [vmem:[#allocation2 + $0x2e0] sm:$0x3] %vm42_vm4, %v6027_v14 }
  0x68   :  { %136 = vst.msk [vmem:[#allocation2 + $0x2f8] sm:$0x3] %vm42_vm4, %v6027_v14 }
  0x69   :  { %139 = vst.msk [vmem:[#allocation2 + $0x310] sm:$0x3] %vm42_vm4, %v6027_v14 }
  0x6a   :  { %142 = vst.msk [vmem:[#allocation2 + $0x328] sm:$0x3] %vm42_vm4, %v6027_v14 }
  0x6b   :  { %145 = vst.msk [vmem:[#allocation2 + $0x340] sm:$0x3] %vm42_vm4, %v6027_v14 }
  0x6d   :  { %5399 = vmatmul.msk.f32.gmra.mxu0 %vm281_vm1, %v224_v16  ;;  %v236_v16 = vld [vmem:[%s8755_s0 + $0xc8] sm:$0xff] }
  0x75   :  { %5400 = vmatmul.msk.f32.gmra.mxu0 %vm281_vm1, %v225_v17 }
  0x7d   :  { %5401 = vmatmul.msk.f32.gmra.mxu0 %vm281_vm1, %v226_v18 }
  0x82   :  { %v495_v20 = vpop.f32.mrf.mxu0 }
  0x83   :  { %v496_v22 = vadd.f32 %v6220_v19, %v495_v20 }
  0x85   :  { %vm687_vm3 = vcmp.ge.f32.partialorder %v496_v22, 0.0  ;;  %v751_v23 = vmul.f32 0.01, %v496_v22  ;;  %5402 = vmatmul.msk.f32.gmra.mxu0 %vm281_vm1, %v227_v21 }
  0x87   :  { %v815_v24 = vsel %vm687_vm3, %v496_v22, %v751_v23  ;;  %v237_v22 = vld [vmem:[%s8755_s0 + $0xd0] sm:$0xff] }
  0x88   :  { %880 = vst.msk [vmem:[#allocation2 + $0x19] sm:$0xff] %vm39_vm2, %v815_v24 }
  0x8a   :  { %v498_v26 = vpop.f32.mrf.mxu0 }
  0x8b   :  { %v499_v27 = vadd.f32 %v6220_v19, %v498_v26 }
  0x8d   :  { %5403 = vmatmul.msk.f32.gmra.mxu0 %vm281_vm1, %v228_v25  ;;  %v752_v29 = vmul.f32 0.01, %v499_v27  ;;  %vm688_vm5 = vcmp.ge.f32.partialorder %v499_v27, 0.0 }
  0x8f   :  { %v816_v30 = vsel %vm688_vm5, %v499_v27, %v752_v29  ;;  %v238_v27 = vld [vmem:[%s8755_s0 + $0xd8] sm:$0xff] }
  0x90   :  { %881 = vst.msk [vmem:[#allocation2 + $0x21] sm:$0xff] %vm39_vm2, %v816_v30 }
  0x92   :  { %v501_v28 = vpop.f32.mrf.mxu0 }
  0x93   :  { %v502_v44 = vadd.f32 %v6220_v19, %v501_v28 }
  0x95   :  { %5404 = vmatmul.msk.f32.gmra.mxu0 %vm281_vm1, %v229_v31  ;;  %v753_v49 = vmul.f32 0.01, %v502_v44  ;;  %vm689_vm6 = vcmp.ge.f32.partialorder %v502_v44, 0.0 }
  0x97   :  { %v817_v55 = vsel %vm689_vm6, %v502_v44, %v753_v49 }
  0x98   :  { %882 = vst.msk [vmem:[#allocation2 + $0x31] sm:$0xff] %vm39_vm2, %v817_v55  ;;  %v243_v55 = vld [vmem:[%s8755_s0 + $0x100] sm:$0xff] }
  0x9a   :  { %v504_v32 = vpop.f32.mrf.mxu0 }
  0x9b   :  { %v505_v45 = vadd.f32 %v6220_v19, %v504_v32  ;;  %v239_v32 = vld [vmem:[%s8755_s0 + $0xe0] sm:$0xff] }
  0x9d   :  { %5405 = vmatmul.msk.f32.gmra.mxu0 %vm281_vm1, %v230_v35  ;;  %v754_v51 = vmul.f32 0.01, %v505_v45  ;;  %vm690_vm7 = vcmp.ge.f32.partialorder %v505_v45, 0.0 }
  0x9f   :  { %v818_v57 = vsel %vm690_vm7, %v505_v45, %v754_v51  ;;  %v241_v45 = vld [vmem:[%s8755_s0 + $0xf0] sm:$0xff] }
  0xa0   :  { %883 = vst.msk [vmem:[#allocation2 + $0x39] sm:$0xff] %vm39_vm2, %v818_v57 }
  0xa2   :  { %v507_v40 = vpop.f32.mrf.mxu0 }
  0xa3   :  { %v508_v46 = vadd.f32 %v6220_v19, %v507_v40  ;;  %v240_v40 = vld [vmem:[%s8755_s0 + $0xe8] sm:$0xff] }
  0xa5   :  { %5406 = vmatmul.msk.f32.gmra.mxu0 %vm281_vm1, %v231_v41  ;;  %v755_v53 = vmul.f32 0.01, %v508_v46  ;;  %vm691_vm8 = vcmp.ge.f32.partialorder %v508_v46, 0.0 }
  0xa7   :  { %v819_v58 = vsel %vm691_vm8, %v508_v46, %v755_v53  ;;  %v979_v2 = vld [vmem:[#allocation2 + $0x31] ss:$2 sm:$0xff]  ;;  %v946_v3 = vld [vmem:[#allocation2 + $0x30] ss:$2 sm:$0xff] }
  0xa8   :  { %884 = vst.msk [vmem:[#allocation2 + $0x49] sm:$0xff] %vm39_vm2, %v819_v58  ;;  %v1239_v4 = vld [vmem:[#allocation2 + $0x32] ss:$2 sm:$0xff]  ;;  %5452 = vmatmul.msk.f32.gmra.mxu1 %vm39_vm2, %v979_v2  ;;  %5468 = vmatmul.msk.f32.gmra.mxu2 %vm39_vm2, %v946_v3 }
  0xa9   :  { %5485 = vmatmul.msk.f32.gmra.mxu3 %vm39_vm2, %v1239_v4  ;;  %v245_v3 = vld [vmem:[%s8755_s0 + $0x110] sm:$0xff] }
  0xaa   :  { %v510_v42 = vpop.f32.mrf.mxu0 }
  0xab   :  { %v511_v47 = vadd.f32 %v6220_v19, %v510_v42 }
  0xad   :  { %5407 = vmatmul.msk.f32.gmra.mxu0 %vm281_vm1, %v232_v43  ;;  %v756_v54 = vmul.f32 0.01, %v511_v47  ;;  %vm692_vm9 = vcmp.ge.f32.partialorder %v511_v47, 0.0 }
  0xaf   :  { %v820_v59 = vsel %vm692_vm9, %v511_v47, %v756_v54 }
  0xb0   :  { %885 = vst.msk [vmem:[#allocation2 + $0x51] sm:$0xff] %vm39_vm2, %v820_v59 }
  0xb2   :  { %v513_v48 = vpop.f32.mrf.mxu0 }
  0xb3   :  { %v514_v50 = vadd.f32 %v6220_v19, %v513_v48 }
  0xb5   :  { %v757_v56 = vmul.f32 0.01, %v514_v50  ;;  %5408 = vmatmul.msk.f32.gmra.mxu0 %vm281_vm1, %v233_v52  ;;  %vm693_vm10 = vcmp.ge.f32.partialorder %v514_v50, 0.0 }
  0xb7   :  { %v821_v61 = vsel %vm693_vm10, %v514_v50, %v757_v56  ;;  %v242_v50 = vld [vmem:[%s8755_s0 + $0xf8] sm:$0xff] }
  0xb8   :  { %886 = vst.msk [vmem:[#allocation2 + $0x61] sm:$0xff] %vm39_vm2, %v821_v61 }
  0xba   :  { %v516_v60 = vpop.f32.mrf.mxu0 }
  0xbb   :  { %v517_v62 = vadd.f32 %v6220_v19, %v516_v60 }
  0xbd   :  { %vm694_vm11 = vcmp.ge.f32.partialorder %v517_v62, 0.0  ;;  %v758_v0 = vmul.f32 0.01, %v517_v62  ;;  %5409 = vmatmul.msk.f32.gmra.mxu0 %vm281_vm1, %v234_v63  ;;  %v244_v63 = vld [vmem:[%s8755_s0 + $0x108] sm:$0xff] }
  0xbf   :  { %v822_v1 = vsel %vm694_vm11, %v517_v62, %v758_v0 }
  0xc0   :  { %887 = vst.msk [vmem:[#allocation2 + $0x69] sm:$0xff] %vm39_vm2, %v822_v1 }
  0xc2   :  { %v519_v5 = vpop.f32.mrf.mxu0 }
  0xc3   :  { %v520_v6 = vadd.f32 %v6220_v19, %v519_v5 }
  0xc5   :  { %vm695_vm12 = vcmp.ge.f32.partialorder %v520_v6, 0.0  ;;  %v759_v8 = vmul.f32 0.01, %v520_v6  ;;  %5410 = vmatmul.msk.f32.gmra.mxu0 %vm281_vm1, %v235_v7 }
  0xc7   :  { %v823_v9 = vsel %vm695_vm12, %v520_v6, %v759_v8  ;;  %v981_v10 = vld [vmem:[#allocation2 + $0x61] ss:$2 sm:$0xff]  ;;  %v948_v11 = vld [vmem:[#allocation2 + $0x60] ss:$2 sm:$0xff]  ;;  %v246_v8 = vld [vmem:[%s8755_s0 + $0x118] sm:$0xff] }
  0xc8   :  { %888 = vst.msk [vmem:[#allocation2 + $0x79] sm:$0xff] %vm39_vm2, %v823_v9  ;;  %v1241_v12 = vld [vmem:[#allocation2 + $0x62] ss:$2 sm:$0xff]  ;;  %5453 = vmatmul.msk.f32.gmra.mxu1 %vm39_vm2, %v981_v10  ;;  %5469 = vmatmul.msk.f32.gmra.mxu2 %vm39_vm2, %v948_v11 }
  0xc9   :  { %5486 = vmatmul.msk.f32.gmra.mxu3 %vm39_vm2, %v1241_v12 }
  0xca   :  { %v522_v13 = vpop.f32.mrf.mxu0 }
  0xcb   :  { %v523_v15 = vadd.f32 %v6220_v19, %v522_v13  ;;  %v247_v13 = vld [vmem:[%s8755_s0 + $0x120] sm:$0xff] }
  0xcd   :  { %vm696_vm13 = vcmp.ge.f32.partialorder %v523_v15, 0.0  ;;  %v760_v17 = vmul.f32 0.01, %v523_v15  ;;  %5411 = vmatmul.msk.f32.gmra.mxu0 %vm281_vm1, %v236_v16 }
  0xcf   :  { %v824_v18 = vsel %vm696_vm13, %v523_v15, %v760_v17 }
  0xd0   :  { %889 = vst.msk [vmem:[#allocation2 + $0x81] sm:$0xff] %vm39_vm2, %v824_v18 }
  0xd2   :  { %v525_v20 = vpop.f32.mrf.mxu0 }
  0xd3   :  { %v526_v21 = vadd.f32 %v6220_v19, %v525_v20 }
  0xd5   :  { %vm697_vm14 = vcmp.ge.f32.partialorder %v526_v21, 0.0  ;;  %v761_v23 = vmul.f32 0.01, %v526_v21  ;;  %5412 = vmatmul.msk.f32.gmra.mxu0 %vm281_vm1, %v237_v22 }
  0xd7   :  { %v825_v24 = vsel %vm697_vm14, %v526_v21, %v761_v23  ;;  %v248_v23 = vld [vmem:[%s8755_s0 + $0x128] sm:$0xff] }
  0xd8   :  { %890 = vst.msk [vmem:[#allocation2 + $0x91] sm:$0xff] %vm39_vm2, %v825_v24 }
  0xda   :  { %v528_v25 = vpop.f32.mrf.mxu0 }
  0xdb   :  { %v529_v26 = vadd.f32 %v6220_v19, %v528_v25 }
  0xdd   :  { %vm698_vm15 = vcmp.ge.f32.partialorder %v529_v26, 0.0  ;;  %v762_v28 = vmul.f32 0.01, %v529_v26  ;;  %5413 = vmatmul.msk.f32.gmra.mxu0 %vm281_vm1, %v238_v27 }
  0xdf   :  { %v826_v29 = vsel %vm698_vm15, %v529_v26, %v762_v28  ;;  %v249_v28 = vld [vmem:[%s8755_s0 + $0x130] sm:$0xff] }
  0xe0   :  { %891 = vst.msk [vmem:[#allocation2 + $0x99] sm:$0xff] %vm39_vm2, %v826_v29 }
  0xe2   :  { %v531_v30 = vpop.f32.mrf.mxu0 }
  0xe3   :  { %v532_v31 = vadd.f32 %v6220_v19, %v531_v30 }
  0xe5   :  { %vm699_vm0 = vcmp.ge.f32.partialorder %v532_v31, 0.0  ;;  %v763_v33 = vmul.f32 0.01, %v532_v31  ;;  %5414 = vmatmul.msk.f32.gmra.mxu0 %vm281_vm1, %v239_v32 }
  0xe7   :  { %v827_v34 = vsel %vm699_vm0, %v532_v31, %v763_v33  ;;  %v983_v35 = vld [vmem:[#allocation2 + $0x91] ss:$2 sm:$0xff]  ;;  %v950_v36 = vld [vmem:[#allocation2 + $0x90] ss:$2 sm:$0xff] }
  0xe8   :  { %v1243_v37 = vld [vmem:[#allocation2 + $0x92] ss:$2 sm:$0xff]  ;;  %892 = vst.msk [vmem:[#allocation2 + $0xa9] sm:$0xff] %vm39_vm2, %v827_v34  ;;  %5454 = vmatmul.msk.f32.gmra.mxu1 %vm39_vm2, %v983_v35  ;;  %5470 = vmatmul.msk.f32.gmra.mxu2 %vm39_vm2, %v950_v36 }
  0xe9   :  { %5487 = vmatmul.msk.f32.gmra.mxu3 %vm39_vm2, %v1243_v37  ;;  %v250_v33 = vld [vmem:[%s8755_s0 + $0x138] sm:$0xff] }
  0xea   :  { %v534_v38 = vpop.f32.mrf.mxu0 }
  0xeb   :  { %v535_v39 = vadd.f32 %v6220_v19, %v534_v38  ;;  %v251_v38 = vld [vmem:[%s8755_s0 + $0x140] sm:$0xff] }
  0xed   :  { %vm700_vm3 = vcmp.ge.f32.partialorder %v535_v39, 0.0  ;;  %v764_v41 = vmul.f32 0.01, %v535_v39  ;;  %5415 = vmatmul.msk.f32.gmra.mxu0 %vm281_vm1, %v240_v40 }
  0xef   :  { %v828_v42 = vsel %vm700_vm3, %v535_v39, %v764_v41 }
  0xf0   :  { %893 = vst.msk [vmem:[#allocation2 + $0xb1] sm:$0xff] %vm39_vm2, %v828_v42 }
  0xf2   :  { %v537_v43 = vpop.f32.mrf.mxu0 }
  0xf3   :  { %v538_v44 = vadd.f32 %v6220_v19, %v537_v43 }
  0xf5   :  { %vm701_vm4 = vcmp.ge.f32.partialorder %v538_v44, 0.0  ;;  %v765_v46 = vmul.f32 0.01, %v538_v44  ;;  %5416 = vmatmul.msk.f32.gmra.mxu0 %vm281_vm1, %v241_v45 }
  0xf7   :  { %v829_v47 = vsel %vm701_vm4, %v538_v44, %v765_v46  ;;  %v252_v46 = vld [vmem:[%s8755_s0 + $0x148] sm:$0xff] }
  0xf8   :  { %894 = vst.msk [vmem:[#allocation2 + $0xc1] sm:$0xff] %vm39_vm2, %v829_v47 }
  0xfa   :  { %v540_v48 = vpop.f32.mrf.mxu0 }
  0xfb   :  { %v541_v49 = vadd.f32 %v6220_v19, %v540_v48 }
  0xfd   :  { %vm702_vm5 = vcmp.ge.f32.partialorder %v541_v49, 0.0  ;;  %v766_v51 = vmul.f32 0.01, %v541_v49  ;;  %5417 = vmatmul.msk.f32.gmra.mxu0 %vm281_vm1, %v242_v50 }
  0xff   :  { %v830_v52 = vsel %vm702_vm5, %v541_v49, %v766_v51  ;;  %v253_v51 = vld [vmem:[%s8755_s0 + $0x150] sm:$0xff] }
 0x100   :  { %895 = vst.msk [vmem:[#allocation2 + $0xc9] sm:$0xff] %vm39_vm2, %v830_v52 }
 0x102   :  { %v543_v53 = vpop.f32.mrf.mxu0 }
 0x103   :  { %v544_v54 = vadd.f32 %v6220_v19, %v543_v53 }
 0x105   :  { %vm703_vm6 = vcmp.ge.f32.partialorder %v544_v54, 0.0  ;;  %v767_v56 = vmul.f32 0.01, %v544_v54  ;;  %5418 = vmatmul.msk.f32.gmra.mxu0 %vm281_vm1, %v243_v55 }
 0x107   :  { %v831_v57 = vsel %vm703_vm6, %v544_v54, %v767_v56  ;;  %v985_v58 = vld [vmem:[#allocation2 + $0xc1] ss:$2 sm:$0xff]  ;;  %v952_v59 = vld [vmem:[#allocation2 + $0xc0] ss:$2 sm:$0xff]  ;;  %v254_v56 = vld [vmem:[%s8755_s0 + $0x158] sm:$0xff] }
 0x108   :  { %v1245_v60 = vld [vmem:[#allocation2 + $0xc2] ss:$2 sm:$0xff]  ;;  %896 = vst.msk [vmem:[#allocation2 + $0xd9] sm:$0xff] %vm39_vm2, %v831_v57  ;;  %5455 = vmatmul.msk.f32.gmra.mxu1 %vm39_vm2, %v985_v58  ;;  %5471 = vmatmul.msk.f32.gmra.mxu2 %vm39_vm2, %v952_v59 }
 0x109   :  { %5488 = vmatmul.msk.f32.gmra.mxu3 %vm39_vm2, %v1245_v60 }
 0x10a   :  { %v546_v61 = vpop.f32.mrf.mxu0 }
 0x10b   :  { %v547_v62 = vadd.f32 %v6220_v19, %v546_v61  ;;  %v255_v61 = vld [vmem:[%s8755_s0 + $0x160] sm:$0xff] }
 0x10d   :  { %vm704_vm7 = vcmp.ge.f32.partialorder %v547_v62, 0.0  ;;  %v768_v0 = vmul.f32 0.01, %v547_v62  ;;  %5419 = vmatmul.msk.f32.gmra.mxu0 %vm281_vm1, %v244_v63 }
 0x10f   :  { %v832_v1 = vsel %vm704_vm7, %v547_v62, %v768_v0 }
 0x110   :  { %897 = vst.msk [vmem:[#allocation2 + $0xe1] sm:$0xff] %vm39_vm2, %v832_v1 }
 0x112   :  { %v549_v2 = vpop.f32.mrf.mxu0 }
 0x113   :  { %v550_v4 = vadd.f32 %v6220_v19, %v549_v2 }
 0x115   :  { %vm705_vm8 = vcmp.ge.f32.partialorder %v550_v4, 0.0  ;;  %v769_v5 = vmul.f32 0.01, %v550_v4  ;;  %5420 = vmatmul.msk.f32.gmra.mxu0 %vm281_vm1, %v245_v3 }
 0x117   :  { %v833_v6 = vsel %vm705_vm8, %v550_v4, %v769_v5  ;;  %v256_v5 = vld [vmem:[%s8755_s0 + $0x168] sm:$0xff] }
 0x118   :  { %898 = vst.msk [vmem:[#allocation2 + $0xf1] sm:$0xff] %vm39_vm2, %v833_v6 }
 0x11a   :  { %v552_v7 = vpop.f32.mrf.mxu0 }
 0x11b   :  { %v553_v9 = vadd.f32 %v6220_v19, %v552_v7 }
 0x11d   :  { %vm706_vm9 = vcmp.ge.f32.partialorder %v553_v9, 0.0  ;;  %v770_v10 = vmul.f32 0.01, %v553_v9  ;;  %5421 = vmatmul.msk.f32.gmra.mxu0 %vm281_vm1, %v246_v8 }
 0x11f   :  { %v834_v11 = vsel %vm706_vm9, %v553_v9, %v770_v10  ;;  %v257_v10 = vld [vmem:[%s8755_s0 + $0x170] sm:$0xff] }
 0x120   :  { %899 = vst.msk [vmem:[#allocation2 + $0xf9] sm:$0xff] %vm39_vm2, %v834_v11 }
 0x122   :  { %v555_v12 = vpop.f32.mrf.mxu0 }
 0x123   :  { %v556_v15 = vadd.f32 %v6220_v19, %v555_v12 }
 0x125   :  { %vm707_vm10 = vcmp.ge.f32.partialorder %v556_v15, 0.0  ;;  %v771_v16 = vmul.f32 0.01, %v556_v15  ;;  %5422 = vmatmul.msk.f32.gmra.mxu0 %vm281_vm1, %v247_v13 }
 0x127   :  { %v835_v17 = vsel %vm707_vm10, %v556_v15, %v771_v16  ;;  %v987_v18 = vld [vmem:[#allocation2 + $0xf1] ss:$2 sm:$0xff]  ;;  %v954_v20 = vld [vmem:[#allocation2 + $0xf0] ss:$2 sm:$0xff] }
 0x128   :  { %v1247_v21 = vld [vmem:[#allocation2 + $0xf2] ss:$2 sm:$0xff]  ;;  %900 = vst.msk [vmem:[#allocation2 + $0x109] sm:$0xff] %vm39_vm2, %v835_v17  ;;  %5456 = vmatmul.msk.f32.gmra.mxu1 %vm39_vm2, %v987_v18  ;;  %5472 = vmatmul.msk.f32.gmra.mxu2 %vm39_vm2, %v954_v20 }
 0x129   :  { %5489 = vmatmul.msk.f32.gmra.mxu3 %vm39_vm2, %v1247_v21  ;;  %v258_v16 = vld [vmem:[%s8755_s0 + $0x178] sm:$0xff] }
 0x12a   :  { %v558_v22 = vpop.f32.mrf.mxu0  ;;  %v993_v21 = vld [vmem:[#allocation2 + $0x1b1] ss:$2 sm:$0xff] }
 0x12b   :  { %v559_v24 = vadd.f32 %v6220_v19, %v558_v22  ;;  %v960_v22 = vld [vmem:[#allocation2 + $0x1b0] ss:$2 sm:$0xff] }
 0x12d   :  { %vm708_vm11 = vcmp.ge.f32.partialorder %v559_v24, 0.0  ;;  %v772_v25 = vmul.f32 0.01, %v559_v24  ;;  %5423 = vmatmul.msk.f32.gmra.mxu0 %vm281_vm1, %v248_v23  ;;  %v1253_v23 = vld [vmem:[#allocation2 + $0x1b2] ss:$2 sm:$0xff] }
 0x12f   :  { %v836_v26 = vsel %vm708_vm11, %v559_v24, %v772_v25  ;;  %v259_v25 = vld [vmem:[%s8755_s0 + $0x180] sm:$0xff] }
 0x130   :  { %901 = vst.msk [vmem:[#allocation2 + $0x111] sm:$0xff] %vm39_vm2, %v836_v26 }
 0x132   :  { %v561_v27 = vpop.f32.mrf.mxu0 }
 0x133   :  { %v562_v29 = vadd.f32 %v6220_v19, %v561_v27 }
 0x135   :  { %vm709_vm12 = vcmp.ge.f32.partialorder %v562_v29, 0.0  ;;  %v773_v30 = vmul.f32 0.01, %v562_v29  ;;  %5424 = vmatmul.msk.f32.gmra.mxu0 %vm281_vm1, %v249_v28 }
 0x137   :  { %v837_v31 = vsel %vm709_vm12, %v562_v29, %v773_v30  ;;  %v260_v30 = vld [vmem:[%s8755_s0 + $0x188] sm:$0xff] }
 0x138   :  { %902 = vst.msk [vmem:[#allocation2 + $0x121] sm:$0xff] %vm39_vm2, %v837_v31 }
 0x13a   :  { %v564_v32 = vpop.f32.mrf.mxu0 }
 0x13b   :  { %v565_v34 = vadd.f32 %v6220_v19, %v564_v32 }
 0x13d   :  { %vm710_vm13 = vcmp.ge.f32.partialorder %v565_v34, 0.0  ;;  %v774_v35 = vmul.f32 0.01, %v565_v34  ;;  %5425 = vmatmul.msk.f32.gmra.mxu0 %vm281_vm1, %v250_v33 }
 0x13f   :  { %v838_v36 = vsel %vm710_vm13, %v565_v34, %v774_v35  ;;  %v261_v35 = vld [vmem:[%s8755_s0 + $0x190] sm:$0xff] }
 0x140   :  { %903 = vst.msk [vmem:[#allocation2 + $0x129] sm:$0xff] %vm39_vm2, %v838_v36 }
 0x142   :  { %v567_v37 = vpop.f32.mrf.mxu0 }
 0x143   :  { %v568_v39 = vadd.f32 %v6220_v19, %v567_v37 }
 0x145   :  { %vm711_vm14 = vcmp.ge.f32.partialorder %v568_v39, 0.0  ;;  %v775_v40 = vmul.f32 0.01, %v568_v39  ;;  %5426 = vmatmul.msk.f32.gmra.mxu0 %vm281_vm1, %v251_v38 }
 0x147   :  { %v839_v41 = vsel %vm711_vm14, %v568_v39, %v775_v40  ;;  %v989_v42 = vld [vmem:[#allocation2 + $0x121] ss:$2 sm:$0xff]  ;;  %v956_v43 = vld [vmem:[#allocation2 + $0x120] ss:$2 sm:$0xff]  ;;  %v262_v40 = vld [vmem:[%s8755_s0 + $0x198] sm:$0xff] }
 0x148   :  { %v1249_v44 = vld [vmem:[#allocation2 + $0x122] ss:$2 sm:$0xff]  ;;  %904 = vst.msk [vmem:[#allocation2 + $0x139] sm:$0xff] %vm39_vm2, %v839_v41  ;;  %5457 = vmatmul.msk.f32.gmra.mxu1 %vm39_vm2, %v989_v42  ;;  %5473 = vmatmul.msk.f32.gmra.mxu2 %vm39_vm2, %v956_v43 }
 0x149   :  { %5490 = vmatmul.msk.f32.gmra.mxu3 %vm39_vm2, %v1249_v44 }
 0x14a   :  { %v570_v45 = vpop.f32.mrf.mxu0 }
 0x14b   :  { %v571_v47 = vadd.f32 %v6220_v19, %v570_v45  ;;  %v263_v45 = vld [vmem:[%s8755_s0 + $0x1a0] sm:$0xff] }
 0x14d   :  { %vm712_vm15 = vcmp.ge.f32.partialorder %v571_v47, 0.0  ;;  %v776_v48 = vmul.f32 0.01, %v571_v47  ;;  %5427 = vmatmul.msk.f32.gmra.mxu0 %vm281_vm1, %v252_v46 }
 0x14f   :  { %v840_v49 = vsel %vm712_vm15, %v571_v47, %v776_v48 }
 0x150   :  { %905 = vst.msk [vmem:[#allocation2 + $0x141] sm:$0xff] %vm39_vm2, %v840_v49 }
 0x152   :  { %v573_v50 = vpop.f32.mrf.mxu0 }
 0x153   :  { %v574_v52 = vadd.f32 %v6220_v19, %v573_v50 }
 0x155   :  { %vm713_vm0 = vcmp.ge.f32.partialorder %v574_v52, 0.0  ;;  %v777_v53 = vmul.f32 0.01, %v574_v52  ;;  %5428 = vmatmul.msk.f32.gmra.mxu0 %vm281_vm1, %v253_v51 }
 0x157   :  { %v841_v54 = vsel %vm713_vm0, %v574_v52, %v777_v53  ;;  %v264_v53 = vld [vmem:[%s8755_s0 + $0x1a8] sm:$0xff] }
 0x158   :  { %906 = vst.msk [vmem:[#allocation2 + $0x151] sm:$0xff] %vm39_vm2, %v841_v54 }
 0x15a   :  { %v576_v55 = vpop.f32.mrf.mxu0 }
 0x15b   :  { %v577_v57 = vadd.f32 %v6220_v19, %v576_v55 }
 0x15d   :  { %vm714_vm3 = vcmp.ge.f32.partialorder %v577_v57, 0.0  ;;  %v778_v58 = vmul.f32 0.01, %v577_v57  ;;  %5429 = vmatmul.msk.f32.gmra.mxu0 %vm281_vm1, %v254_v56 }
 0x15f   :  { %v842_v59 = vsel %vm714_vm3, %v577_v57, %v778_v58  ;;  %v265_v58 = vld [vmem:[%s8755_s0 + $0x1b0] sm:$0xff] }
 0x160   :  { %907 = vst.msk [vmem:[#allocation2 + $0x159] sm:$0xff] %vm39_vm2, %v842_v59 }
 0x162   :  { %v579_v60 = vpop.f32.mrf.mxu0 }
 0x163   :  { %v580_v62 = vadd.f32 %v6220_v19, %v579_v60 }
 0x165   :  { %vm715_vm4 = vcmp.ge.f32.partialorder %v580_v62, 0.0  ;;  %v779_v63 = vmul.f32 0.01, %v580_v62  ;;  %5430 = vmatmul.msk.f32.gmra.mxu0 %vm281_vm1, %v255_v61 }
 0x167   :  { %v843_v0 = vsel %vm715_vm4, %v580_v62, %v779_v63  ;;  %v991_v1 = vld [vmem:[#allocation2 + $0x151] ss:$2 sm:$0xff]  ;;  %v958_v2 = vld [vmem:[#allocation2 + $0x150] ss:$2 sm:$0xff] }
 0x168   :  { %v1251_v3 = vld [vmem:[#allocation2 + $0x152] ss:$2 sm:$0xff]  ;;  %908 = vst.msk [vmem:[#allocation2 + $0x169] sm:$0xff] %vm39_vm2, %v843_v0  ;;  %5458 = vmatmul.msk.f32.gmra.mxu1 %vm39_vm2, %v991_v1  ;;  %5474 = vmatmul.msk.f32.gmra.mxu2 %vm39_vm2, %v958_v2 }
 0x169   :  { %5491 = vmatmul.msk.f32.gmra.mxu3 %vm39_vm2, %v1251_v3  ;;  %v266_v63 = vld [vmem:[%s8755_s0 + $0x1b8] sm:$0xff] }
 0x16a   :  { %v582_v4 = vpop.f32.mrf.mxu0 }
 0x16b   :  { %v583_v6 = vadd.f32 %v6220_v19, %v582_v4  ;;  %v267_v4 = vld [vmem:[%s8755_s0 + $0x1c0] sm:$0xff] }
 0x16d   :  { %vm716_vm5 = vcmp.ge.f32.partialorder %v583_v6, 0.0  ;;  %v780_v7 = vmul.f32 0.01, %v583_v6  ;;  %5431 = vmatmul.msk.f32.gmra.mxu0 %vm281_vm1, %v256_v5 }
 0x16f   :  { %v844_v8 = vsel %vm716_vm5, %v583_v6, %v780_v7 }
 0x170   :  { %909 = vst.msk [vmem:[#allocation2 + $0x171] sm:$0xff] %vm39_vm2, %v844_v8  ;;  %5459 = vmatmul.msk.f32.gmra.mxu1 %vm39_vm2, %v993_v21  ;;  %5475 = vmatmul.msk.f32.gmra.mxu2 %vm39_vm2, %v960_v22 }
 0x171   :  { %5492 = vmatmul.msk.f32.gmra.mxu3 %vm39_vm2, %v1253_v23 }
 0x172   :  { %v585_v9 = vpop.f32.mrf.mxu0 }
 0x173   :  { %v586_v11 = vadd.f32 %v6220_v19, %v585_v9 }
 0x175   :  { %vm717_vm6 = vcmp.ge.f32.partialorder %v586_v11, 0.0  ;;  %v781_v12 = vmul.f32 0.01, %v586_v11  ;;  %5432 = vmatmul.msk.f32.gmra.mxu0 %vm281_vm1, %v257_v10 }
 0x177   :  { %v845_v13 = vsel %vm717_vm6, %v586_v11, %v781_v12  ;;  %v268_v12 = vld [vmem:[%s8755_s0 + $0x1c8] sm:$0xff] }
 0x178   :  { %910 = vst.msk [vmem:[#allocation2 + $0x181] sm:$0xff] %vm39_vm2, %v845_v13 }
 0x17a   :  { %v588_v15 = vpop.f32.mrf.mxu0 }
 0x17b   :  { %v589_v17 = vadd.f32 %v6220_v19, %v588_v15 }
 0x17d   :  { %vm718_vm7 = vcmp.ge.f32.partialorder %v589_v17, 0.0  ;;  %v782_v18 = vmul.f32 0.01, %v589_v17  ;;  %5433 = vmatmul.msk.f32.gmra.mxu0 %vm281_vm1, %v258_v16 }
 0x17f   :  { %v846_v20 = vsel %vm718_vm7, %v589_v17, %v782_v18  ;;  %v5517_v17 = vld [vmem:[%s8758_s3 + $0x20] sm:$0xff] }
 0x180   :  { %911 = vst.msk [vmem:[#allocation2 + $0x189] sm:$0xff] %vm39_vm2, %v846_v20  ;;  %1658 = vmatpush.msrb.mxu2 %v5517_v17  ;;  %v269_v20 = vld [vmem:[%s8755_s0 + $0x1d0] sm:$0xff]  ;;  %v271_v17 = vld [vmem:[%s8755_s0 + $0x1e0] sm:$0xff] }
 0x182   :  { %v591_v24 = vpop.f32.mrf.mxu0 }
 0x183   :  { %v592_v26 = vadd.f32 %v6220_v19, %v591_v24  ;;  %v5534_v24 = vld [vmem:[%s8758_s3 + $0x28] sm:$0xff] }
 0x184   :  { %1821 = vmatpush.msrb.mxu3 %v5534_v24 }
 0x185   :  { %vm719_vm8 = vcmp.ge.f32.partialorder %v592_v26, 0.0  ;;  %v783_v27 = vmul.f32 0.01, %v592_v26  ;;  %5434 = vmatmul.msk.f32.gmra.mxu0 %vm281_vm1, %v259_v25  ;;  %v5500_v25 = vld [vmem:[%s8758_s3 + $0x18] sm:$0xff] }
 0x186   :  { %1495 = vmatpush.msrb.mxu1 %v5500_v25 }
 0x187   :  { %v847_v28 = vsel %vm719_vm8, %v592_v26, %v783_v27  ;;  %v270_v27 = vld [vmem:[%s8755_s0 + $0x1d8] sm:$0xff] }
 0x188   :  { %912 = vst.msk [vmem:[#allocation2 + $0x1c9] sm:$0xff] %vm39_vm2, %v847_v28 }
 0x18a   :  { %v594_v29 = vpop.f32.mrf.mxu0 }
 0x18b   :  { %v595_v31 = vadd.f32 %v6220_v19, %v594_v29 }
 0x18d   :  { %vm720_vm9 = vcmp.ge.f32.partialorder %v595_v31, 0.0  ;;  %v784_v32 = vmul.f32 0.01, %v595_v31  ;;  %5435 = vmatmul.msk.f32.gmra.mxu0 %vm281_vm1, %v260_v30 }
 0x18f   :  { %v848_v33 = vsel %vm720_vm9, %v595_v31, %v784_v32 }
 0x190   :  { %913 = vst.msk [vmem:[#allocation2 + $0x1d1] sm:$0xff] %vm39_vm2, %v848_v33 }
 0x192   :  { %v597_v34 = vpop.f32.mrf.mxu0 }
 0x193   :  { %v598_v36 = vadd.f32 %v6220_v19, %v597_v34 }
 0x195   :  { %vm721_vm10 = vcmp.ge.f32.partialorder %v598_v36, 0.0  ;;  %v785_v37 = vmul.f32 0.01, %v598_v36  ;;  %5436 = vmatmul.msk.f32.gmra.mxu0 %vm281_vm1, %v261_v35 }
 0x197   :  { %v849_v38 = vsel %vm721_vm10, %v598_v36, %v785_v37 }
 0x198   :  { %914 = vst.msk [vmem:[#allocation2 + $0x1e1] sm:$0xff] %vm39_vm2, %v849_v38 }
 0x19a   :  { %v600_v39 = vpop.f32.mrf.mxu0 }
 0x19b   :  { %v601_v41 = vadd.f32 %v6220_v19, %v600_v39  ;;  %v6691_v39 = vld [vmem:[%s8757_s2] ss:$0 sm:$0xff] }
 0x19d   :  { %vm722_vm11 = vcmp.ge.f32.partialorder %v601_v41, 0.0  ;;  %v786_v42 = vmul.f32 0.01, %v601_v41  ;;  %5437 = vmatmul.msk.f32.gmra.mxu0 %vm281_vm1, %v262_v40 }
 0x19f   :  { %v850_v43 = vsel %vm722_vm11, %v601_v41, %v786_v42 }
 0x1a0   :  { %915 = vst.msk [vmem:[#allocation2 + $0x1e9] sm:$0xff] %vm39_vm2, %v850_v43 }
 0x1a2   :  { %v603_v44 = vpop.f32.mrf.mxu0 }
 0x1a3   :  { %v604_v46 = vadd.f32 %v6220_v19, %v603_v44 }
 0x1a5   :  { %vm723_vm12 = vcmp.ge.f32.partialorder %v604_v46, 0.0  ;;  %v787_v47 = vmul.f32 0.01, %v604_v46  ;;  %5438 = vmatmul.msk.f32.gmra.mxu0 %vm281_vm1, %v263_v45 }
 0x1a7   :  { %v851_v48 = vsel %vm723_vm12, %v604_v46, %v787_v47  ;;  %v995_v49 = vld [vmem:[#allocation2 + $0x1e1] ss:$2 sm:$0xff]  ;;  %v962_v50 = vld [vmem:[#allocation2 + $0x1e0] ss:$2 sm:$0xff] }
 0x1a8   :  { %v1255_v51 = vld [vmem:[#allocation2 + $0x1e2] ss:$2 sm:$0xff]  ;;  %916 = vst.msk [vmem:[#allocation2 + $0x1f9] sm:$0xff] %vm39_vm2, %v851_v48  ;;  %5460 = vmatmul.msk.f32.gmra.mxu1 %vm39_vm2, %v995_v49  ;;  %5476 = vmatmul.msk.f32.gmra.mxu2 %vm39_vm2, %v962_v50 }
 0x1a9   :  { %5493 = vmatmul.msk.f32.gmra.mxu3 %vm39_vm2, %v1255_v51 }
 0x1aa   :  { %v606_v52 = vpop.f32.mrf.mxu0 }
 0x1ab   :  { %v607_v54 = vadd.f32 %v6220_v19, %v606_v52 }
 0x1ad   :  { %vm724_vm13 = vcmp.ge.f32.partialorder %v607_v54, 0.0  ;;  %v788_v55 = vmul.f32 0.01, %v607_v54  ;;  %5439 = vmatmul.msk.f32.gmra.mxu0 %vm281_vm1, %v264_v53 }
 0x1af   :  { %v852_v56 = vsel %vm724_vm13, %v607_v54, %v788_v55 }
 0x1b0   :  { %917 = vst.msk [vmem:[#allocation2 + $0x201] sm:$0xff] %vm39_vm2, %v852_v56 }
 0x1b2   :  { %v609_v57 = vpop.f32.mrf.mxu0 }
 0x1b3   :  { %v610_v59 = vadd.f32 %v6220_v19, %v609_v57 }
 0x1b5   :  { %vm725_vm14 = vcmp.ge.f32.partialorder %v610_v59, 0.0  ;;  %v789_v60 = vmul.f32 0.01, %v610_v59  ;;  %5440 = vmatmul.msk.f32.gmra.mxu0 %vm281_vm1, %v265_v58 }
 0x1b7   :  { %v853_v61 = vsel %vm725_vm14, %v610_v59, %v789_v60 }
 0x1b8   :  { %918 = vst.msk [vmem:[#allocation2 + $0x211] sm:$0xff] %vm39_vm2, %v853_v61 }
 0x1ba   :  { %v612_v62 = vpop.f32.mrf.mxu0 }
 0x1bb   :  { %v613_v0 = vadd.f32 %v6220_v19, %v612_v62 }
 0x1bd   :  { %vm726_vm15 = vcmp.ge.f32.partialorder %v613_v0, 0.0  ;;  %v790_v1 = vmul.f32 0.01, %v613_v0  ;;  %5441 = vmatmul.msk.f32.gmra.mxu0 %vm281_vm1, %v266_v63 }
 0x1bf   :  { %v854_v2 = vsel %vm726_vm15, %v613_v0, %v790_v1 }
 0x1c0   :  { %919 = vst.msk [vmem:[#allocation2 + $0x219] sm:$0xff] %vm39_vm2, %v854_v2 }
 0x1c2   :  { %v615_v3 = vpop.f32.mrf.mxu0 }
 0x1c3   :  { %v616_v5 = vadd.f32 %v6220_v19, %v615_v3 }
 0x1c5   :  { %vm727_vm0 = vcmp.ge.f32.partialorder %v616_v5, 0.0  ;;  %v791_v6 = vmul.f32 0.01, %v616_v5  ;;  %5442 = vmatmul.msk.f32.gmra.mxu0 %vm281_vm1, %v267_v4 }
 0x1c7   :  { %v855_v7 = vsel %vm727_vm0, %v616_v5, %v791_v6  ;;  %v997_v8 = vld [vmem:[#allocation2 + $0x211] ss:$2 sm:$0xff]  ;;  %v964_v9 = vld [vmem:[#allocation2 + $0x210] ss:$2 sm:$0xff] }
 0x1c8   :  { %v1257_v10 = vld [vmem:[#allocation2 + $0x212] ss:$2 sm:$0xff]  ;;  %920 = vst.msk [vmem:[#allocation2 + $0x229] sm:$0xff] %vm39_vm2, %v855_v7  ;;  %5461 = vmatmul.msk.f32.gmra.mxu1 %vm39_vm2, %v997_v8  ;;  %5477 = vmatmul.msk.f32.gmra.mxu2 %vm39_vm2, %v964_v9 }
 0x1c9   :  { %5494 = vmatmul.msk.f32.gmra.mxu3 %vm39_vm2, %v1257_v10 }
 0x1ca   :  { %v618_v11 = vpop.f32.mrf.mxu0 }
 0x1cb   :  { %v619_v13 = vadd.f32 %v6220_v19, %v618_v11 }
 0x1cd   :  { %vm728_vm3 = vcmp.ge.f32.partialorder %v619_v13, 0.0  ;;  %v792_v15 = vmul.f32 0.01, %v619_v13  ;;  %5443 = vmatmul.msk.f32.gmra.mxu0 %vm281_vm1, %v268_v12 }
 0x1cf   :  { %v856_v16 = vsel %vm728_vm3, %v619_v13, %v792_v15 }
 0x1d0   :  { %921 = vst.msk [vmem:[#allocation2 + $0x231] sm:$0xff] %vm39_vm2, %v856_v16 }
 0x1d2   :  { %v621_v18 = vpop.f32.mrf.mxu0 }
 0x1d3   :  { %v622_v21 = vadd.f32 %v6220_v19, %v621_v18 }
 0x1d5   :  { %vm729_vm4 = vcmp.ge.f32.partialorder %v622_v21, 0.0  ;;  %v793_v22 = vmul.f32 0.01, %v622_v21  ;;  %5444 = vmatmul.msk.f32.gmra.mxu0 %vm281_vm1, %v269_v20 }
 0x1d7   :  { %v857_v23 = vsel %vm729_vm4, %v622_v21, %v793_v22 }
 0x1d8   :  { %922 = vst.msk [vmem:[#allocation2 + $0x241] sm:$0xff] %vm39_vm2, %v857_v23  ;;  %v272_v23 = vld [vmem:[%s8755_s0 + $0x1e8] sm:$0xff] }
 0x1da   :  { %v624_v26 = vpop.f32.mrf.mxu0 }
 0x1db   :  { %v625_v28 = vadd.f32 %v6220_v19, %v624_v26 }
 0x1dd   :  { %vm730_vm5 = vcmp.ge.f32.partialorder %v625_v28, 0.0  ;;  %v794_v29 = vmul.f32 0.01, %v625_v28  ;;  %5445 = vmatmul.msk.f32.gmra.mxu0 %vm281_vm1, %v270_v27 }
 0x1df   :  { %v858_v30 = vsel %vm730_vm5, %v625_v28, %v794_v29 }
 0x1e0   :  { %923 = vst.msk [vmem:[#allocation2 + $0x249] sm:$0xff] %vm39_vm2, %v858_v30 }
 0x1e2   :  { %v627_v31 = vpop.f32.mrf.mxu0 }
 0x1e3   :  { %v628_v32 = vadd.f32 %v6220_v19, %v627_v31 }
 0x1e5   :  { %vm731_vm6 = vcmp.ge.f32.partialorder %v628_v32, 0.0  ;;  %v795_v33 = vmul.f32 0.01, %v628_v32  ;;  %5446 = vmatmul.msk.f32.gmra.mxu0 %vm281_vm1, %v271_v17  ;;  %v1733_v17 = vld [vmem:[#allocation2 + $0xda] ss:$2 sm:$0xff] }
 0x1e7   :  { %v859_v34 = vsel %vm731_vm6, %v628_v32, %v795_v33  ;;  %v999_v35 = vld [vmem:[#allocation2 + $0x241] ss:$2 sm:$0xff]  ;;  %v966_v36 = vld [vmem:[#allocation2 + $0x240] ss:$2 sm:$0xff] }
 0x1e8   :  { %v1259_v37 = vld [vmem:[#allocation2 + $0x242] ss:$2 sm:$0xff]  ;;  %924 = vst.msk [vmem:[#allocation2 + $0x259] sm:$0xff] %vm39_vm2, %v859_v34  ;;  %5462 = vmatmul.msk.f32.gmra.mxu1 %vm39_vm2, %v999_v35  ;;  %5478 = vmatmul.msk.f32.gmra.mxu2 %vm39_vm2, %v966_v36 }
 0x1e9   :  { %5495 = vmatmul.msk.f32.gmra.mxu3 %vm39_vm2, %v1259_v37 }
 0x1ea   :  { %v630_v38 = vpop.f32.mrf.mxu0 }
 0x1eb   :  { %v631_v19 = vadd.f32 %v6691_v39, %v630_v38 }
 0x1ed   :  { %vm732_vm7 = vcmp.ge.f32.partialorder %v631_v19, 0.0  ;;  %v796_v40 = vmul.f32 0.01, %v631_v19  ;;  %5447 = vmatmul.msk.f32.gmra.mxu0 %vm281_vm1, %v272_v23  ;;  %v1572_v23 = vld [vmem:[#allocation2 + $0x109] ss:$2 sm:$0xff] }
 0x1ef   :  { %v860_v41 = vsel %vm732_vm7, %v631_v19, %v796_v40  ;;  %v5568_v19 = vld [vmem:[%s8758_s3 + $0x38] sm:$0xff]  ;;  %v5585_v40 = vld [vmem:[%s8758_s3 + $0x40] sm:$0xff] }
 0x1f0   :  { %925 = vst.msk [vmem:[#allocation2 + $0x261] sm:$0xff] %vm39_vm2, %v860_v41  ;;  %v5551_v41 = vld [vmem:[%s8758_s3 + $0x30] sm:$0xff]  ;;  %2147 = vmatpush.msra.mxu2 %v5568_v19  ;;  %2310 = vmatpush.msra.mxu3 %v5585_v40 }
 0x1f1   :  { %1984 = vmatpush.msra.mxu1 %v5551_v41  ;;  %v1415_v41 = vld [vmem:[#allocation2 + $0x1c8] ss:$2 sm:$0xff] }
 0x1f2   :  { %v633_v42 = vpop.f32.mrf.mxu0 }
 0x1f3   :  { %v634_v43 = vadd.f32 %v6691_v39, %v633_v42 }
 0x1f5   :  { %vm733_vm8 = vcmp.ge.f32.partialorder %v634_v43, 0.0  ;;  %v797_v44 = vmul.f32 0.01, %v634_v43 }
 0x1f7   :  { %v861_v45 = vsel %vm733_vm8, %v634_v43, %v797_v44 }
 0x1f8   :  { %926 = vst.msk [vmem:[#allocation2 + $0x271] sm:$0xff] %vm39_vm2, %v861_v45 }
 0x1fa   :  { %v636_v46 = vpop.f32.mrf.mxu0 }
 0x1fb   :  { %v637_v47 = vadd.f32 %v6691_v39, %v636_v46 }
 0x1fd   :  { %vm734_vm9 = vcmp.ge.f32.partialorder %v637_v47, 0.0  ;;  %v798_v48 = vmul.f32 0.01, %v637_v47 }
 0x1ff   :  { %v862_v49 = vsel %vm734_vm9, %v637_v47, %v798_v48 }
 0x200   :  { %927 = vst.msk [vmem:[#allocation2 + $0x279] sm:$0xff] %vm39_vm2, %v862_v49 }
 0x202   :  { %v639_v50 = vpop.f32.mrf.mxu0 }
 0x203   :  { %v640_v51 = vadd.f32 %v6691_v39, %v639_v50 }
 0x205   :  { %vm735_vm10 = vcmp.ge.f32.partialorder %v640_v51, 0.0  ;;  %v799_v52 = vmul.f32 0.01, %v640_v51 }
 0x207   :  { %v863_v53 = vsel %vm735_vm10, %v640_v51, %v799_v52  ;;  %v1001_v54 = vld [vmem:[#allocation2 + $0x271] ss:$2 sm:$0xff]  ;;  %v968_v55 = vld [vmem:[#allocation2 + $0x270] ss:$2 sm:$0xff] }
 0x208   :  { %v1261_v56 = vld [vmem:[#allocation2 + $0x272] ss:$2 sm:$0xff]  ;;  %928 = vst.msk [vmem:[#allocation2 + $0x289] sm:$0xff] %vm39_vm2, %v863_v53  ;;  %5463 = vmatmul.msk.f32.gmra.mxu1 %vm39_vm2, %v1001_v54  ;;  %5479 = vmatmul.msk.f32.gmra.mxu2 %vm39_vm2, %v968_v55  ;;  %v6751_v53 = vpop.f32.mrf.mxu1  ;;  %v6754_v54 = vpop.f32.mrf.mxu2 }
 0x209   :  { %5496 = vmatmul.msk.f32.gmra.mxu3 %vm39_vm2, %v1261_v56  ;;  %v1399_v55 = vld [vmem:[#allocation2 + $0x18] ss:$2 sm:$0xff]  ;;  %v1562_v56 = vld [vmem:[#allocation2 + $0x19] ss:$2 sm:$0xff] }
 0x20a   :  { %v642_v57 = vpop.f32.mrf.mxu0 }
 0x20b   :  { %v643_v58 = vadd.f32 %v6691_v39, %v642_v57  ;;  %v6756_v57 = vpop.f32.mrf.mxu3 }
 0x20d   :  { %vm736_vm11 = vcmp.ge.f32.partialorder %v643_v58, 0.0  ;;  %v800_v59 = vmul.f32 0.01, %v643_v58 }
 0x20f   :  { %v864_v60 = vsel %vm736_vm11, %v643_v58, %v800_v59  ;;  %v1725_v58 = vld [vmem:[#allocation2 + $0x1a] ss:$2 sm:$0xff]  ;;  %vm149_vm11 = vcmask 130048  }
 0x210   :  { %929 = vst.msk [vmem:[#allocation2 + $0x291] sm:$0xff] %vm39_vm2, %v864_v60  ;;  %v6761_v59 = vpop.f32.mrf.mxu1  ;;  %v1401_v60 = vld [vmem:[#allocation2 + $0x48] ss:$2 sm:$0xff] }
 0x211   :  { %154 = vst.msk [vmem:[#allocation3 + $0x18] sm:$0xff] %vm149_vm11, %v6027_v14 }
 0x212   :  { %v645_v61 = vpop.f32.mrf.mxu0  ;;  %155 = vst.msk [vmem:[#allocation3 + $0x20] sm:$0xff] %vm149_vm11, %v6027_v14 }
 0x213   :  { %v646_v62 = vadd.f32 %v6691_v39, %v645_v61  ;;  %v1564_v61 = vld [vmem:[#allocation2 + $0x49] ss:$2 sm:$0xff]  ;;  %150 = vst.msk [vmem:[#allocation3] sm:$0xff] %vm149_vm11, %v6027_v14 }
 0x214   :  { %151 = vst.msk [vmem:[#allocation3 + $0x8] sm:$0xff] %vm149_vm11, %v6027_v14 }
 0x215   :  { %vm737_vm12 = vcmp.ge.f32.partialorder %v646_v62, 0.0  ;;  %v801_v63 = vmul.f32 0.01, %v646_v62  ;;  %157 = vst.msk [vmem:[#allocation3 + $0x30] sm:$0xff] %vm149_vm11, %v6027_v14 }
 0x216   :  { %158 = vst.msk [vmem:[#allocation3 + $0x38] sm:$0xff] %vm149_vm11, %v6027_v14 }
 0x217   :  { %v865_v0 = vsel %vm737_vm12, %v646_v62, %v801_v63  ;;  %v1727_v62 = vld [vmem:[#allocation2 + $0x4a] ss:$2 sm:$0xff]  ;;  %v6765_v63 = vpop.f32.mrf.mxu2  ;;  %160 = vst.msk [vmem:[#allocation3 + $0x48] sm:$0xff] %vm149_vm11, %v6027_v14  ;;  %vm152_vm12 = vcmask 123904  }
 0x218   :  { %930 = vst.msk [vmem:[#allocation2 + $0x2a1] sm:$0xff] %vm39_vm2, %v865_v0  ;;  %v6768_v0 = vpop.f32.mrf.mxu3 }
 0x219   :  { %161 = vst.msk [vmem:[#allocation3 + $0x50] sm:$0xff] %vm149_vm11, %v6027_v14 }
 0x21a   :  { %v648_v1 = vpop.f32.mrf.mxu0  ;;  %163 = vst.msk [vmem:[#allocation3 + $0x60] sm:$0xff] %vm149_vm11, %v6027_v14 }
 0x21b   :  { %v649_v2 = vadd.f32 %v6691_v39, %v648_v1  ;;  %v6770_v1 = vpop.f32.mrf.mxu1  ;;  %164 = vst.msk [vmem:[#allocation3 + $0x68] sm:$0xff] %vm149_vm11, %v6027_v14 }
 0x21c   :  { %166 = vst.msk [vmem:[#allocation3 + $0x78] sm:$0xff] %vm149_vm11, %v6027_v14 }
 0x21d   :  { %vm738_vm13 = vcmp.ge.f32.partialorder %v649_v2, 0.0  ;;  %v802_v3 = vmul.f32 0.01, %v649_v2  ;;  %167 = vst.msk [vmem:[#allocation3 + $0x80] sm:$0xff] %vm149_vm11, %v6027_v14 }
 0x21e   :  { %169 = vst.msk [vmem:[#allocation3 + $0x90] sm:$0xff] %vm149_vm11, %v6027_v14 }
 0x21f   :  { %v866_v4 = vsel %vm738_vm13, %v649_v2, %v802_v3  ;;  %v1403_v2 = vld [vmem:[#allocation2 + $0x78] ss:$2 sm:$0xff]  ;;  %v1566_v3 = vld [vmem:[#allocation2 + $0x79] ss:$2 sm:$0xff]  ;;  %170 = vst.msk [vmem:[#allocation3 + $0x98] sm:$0xff] %vm149_vm11, %v6027_v14 }
 0x220   :  { %931 = vst.msk [vmem:[#allocation2 + $0x2a9] sm:$0xff] %vm39_vm2, %v866_v4  ;;  %v1729_v4 = vld [vmem:[#allocation2 + $0x7a] ss:$2 sm:$0xff] }
 0x221   :  { %172 = vst.msk [vmem:[#allocation3 + $0xa8] sm:$0xff] %vm149_vm11, %v6027_v14 }
 0x222   :  { %v651_v5 = vpop.f32.mrf.mxu0  ;;  %173 = vst.msk [vmem:[#allocation3 + $0xb0] sm:$0xff] %vm149_vm11, %v6027_v14 }
 0x223   :  { %v652_v6 = vadd.f32 %v6691_v39, %v651_v5  ;;  %v6774_v5 = vpop.f32.mrf.mxu2  ;;  %175 = vst.msk [vmem:[#allocation3 + $0xc0] sm:$0xff] %vm149_vm11, %v6027_v14 }
 0x224   :  { %176 = vst.msk [vmem:[#allocation3 + $0xc8] sm:$0xff] %vm149_vm11, %v6027_v14 }
 0x225   :  { %vm739_vm14 = vcmp.ge.f32.partialorder %v652_v6, 0.0  ;;  %v803_v7 = vmul.f32 0.01, %v652_v6  ;;  %181 = vst.msk [vmem:[#allocation3 + $0xf0] sm:$0xff] %vm149_vm11, %v6027_v14 }
 0x226   :  { %182 = vst.msk [vmem:[#allocation3 + $0xf8] sm:$0xff] %vm149_vm11, %v6027_v14 }
 0x227   :  { %v867_v8 = vsel %vm739_vm14, %v652_v6, %v803_v7  ;;  %v1003_v9 = vld [vmem:[#allocation2 + $0x2a1] ss:$2 sm:$0xff]  ;;  %v970_v10 = vld [vmem:[#allocation2 + $0x2a0] ss:$2 sm:$0xff]  ;;  %v6777_v6 = vpop.f32.mrf.mxu3  ;;  %v6779_v7 = vpop.f32.mrf.mxu1  ;;  %184 = vst.msk [vmem:[#allocation3 + $0x108] sm:$0xff] %vm149_vm11, %v6027_v14 }
 0x228   :  { %v1263_v11 = vld [vmem:[#allocation2 + $0x2a2] ss:$2 sm:$0xff]  ;;  %932 = vst.msk [vmem:[#allocation2 + $0x2b9] sm:$0xff] %vm39_vm2, %v867_v8  ;;  %5464 = vmatmul.msk.f32.gmra.mxu1 %vm39_vm2, %v1003_v9  ;;  %5480 = vmatmul.msk.f32.gmra.mxu2 %vm39_vm2, %v970_v10  ;;  %v1568_v9 = vld [vmem:[#allocation2 + $0xa9] ss:$2 sm:$0xff] }
 0x229   :  { %5497 = vmatmul.msk.f32.gmra.mxu3 %vm39_vm2, %v1263_v11  ;;  %v1405_v8 = vld [vmem:[#allocation2 + $0xa8] ss:$2 sm:$0xff]  ;;  %185 = vst.msk [vmem:[#allocation3 + $0x110] sm:$0xff] %vm149_vm11, %v6027_v14 }
 0x22a   :  { %v654_v12 = vpop.f32.mrf.mxu0  ;;  %v1731_v10 = vld [vmem:[#allocation2 + $0xaa] ss:$2 sm:$0xff]  ;;  %187 = vst.msk [vmem:[#allocation3 + $0x120] sm:$0xff] %vm149_vm11, %v6027_v14 }
 0x22b   :  { %v655_v13 = vadd.f32 %v6691_v39, %v654_v12  ;;  %v6783_v11 = vpop.f32.mrf.mxu2  ;;  %188 = vst.msk [vmem:[#allocation3 + $0x128] sm:$0xff] %vm149_vm11, %v6027_v14 }
 0x22c   :  { %190 = vst.msk [vmem:[#allocation3 + $0x138] sm:$0xff] %vm149_vm11, %v6027_v14 }
 0x22d   :  { %vm740_vm15 = vcmp.ge.f32.partialorder %v655_v13, 0.0  ;;  %v804_v15 = vmul.f32 0.01, %v655_v13  ;;  %191 = vst.msk [vmem:[#allocation3 + $0x140] sm:$0xff] %vm149_vm11, %v6027_v14 }
 0x22e   :  { %193 = vst.msk [vmem:[#allocation3 + $0x150] sm:$0xff] %vm149_vm11, %v6027_v14 }
 0x22f   :  { %v868_v16 = vsel %vm740_vm15, %v655_v13, %v804_v15  ;;  %v6786_v12 = vpop.f32.mrf.mxu3  ;;  %v6788_v13 = vpop.f32.mrf.mxu1  ;;  %v1407_v15 = vld [vmem:[#allocation2 + $0xd8] ss:$2 sm:$0xff]  ;;  %194 = vst.msk [vmem:[#allocation3 + $0x158] sm:$0xff] %vm149_vm11, %v6027_v14 }
 0x230   :  { %933 = vst.msk [vmem:[#allocation2 + $0x2c1] sm:$0xff] %vm39_vm2, %v868_v16  ;;  %v1570_v16 = vld [vmem:[#allocation2 + $0xd9] ss:$2 sm:$0xff] }
 0x231   :  { %196 = vst.msk [vmem:[#allocation3 + $0x168] sm:$0xff] %vm149_vm11, %v6027_v14 }
 0x232   :  { %v657_v18 = vpop.f32.mrf.mxu0  ;;  %197 = vst.msk [vmem:[#allocation3 + $0x170] sm:$0xff] %vm149_vm11, %v6027_v14 }
 0x233   :  { %v658_v20 = vadd.f32 %v6691_v39, %v657_v18  ;;  %v6792_v18 = vpop.f32.mrf.mxu2  ;;  %199 = vst.msk [vmem:[#allocation3 + $0x180] sm:$0xff] %vm149_vm11, %v6027_v14 }
 0x234   :  { %200 = vst.msk [vmem:[#allocation3 + $0x188] sm:$0xff] %vm149_vm11, %v6027_v14 }
 0x235   :  { %vm741_vm0 = vcmp.ge.f32.partialorder %v658_v20, 0.0  ;;  %v805_v21 = vmul.f32 0.01, %v658_v20  ;;  %202 = vst.msk [vmem:[#allocation3 + $0x198] sm:$0xff] %vm149_vm11, %v6027_v14 }
 0x236   :  { %203 = vst.msk [vmem:[#allocation3 + $0x1a0] sm:$0xff] %vm149_vm11, %v6027_v14 }
 0x237   :  { %v869_v22 = vsel %vm741_vm0, %v658_v20, %v805_v21  ;;  %v6795_v20 = vpop.f32.mrf.mxu3  ;;  %v6797_v21 = vpop.f32.mrf.mxu1  ;;  %205 = vst.msk [vmem:[#allocation3 + $0x1b0] sm:$0xff] %vm149_vm11, %v6027_v14 }
 0x238   :  { %934 = vst.msk [vmem:[#allocation2 + $0x2d1] sm:$0xff] %vm39_vm2, %v869_v22  ;;  %v1409_v22 = vld [vmem:[#allocation2 + $0x108] ss:$2 sm:$0xff] }
 0x239   :  { %206 = vst.msk [vmem:[#allocation3 + $0x1b8] sm:$0xff] %vm149_vm11, %v6027_v14 }
 0x23a   :  { %v660_v24 = vpop.f32.mrf.mxu0  ;;  %153 = vst.msk [vmem:[#allocation3 + $0x10] sm:$0x3] %vm152_vm12, %v6027_v14 }
 0x23b   :  { %v661_v25 = vadd.f32 %v6691_v39, %v660_v24  ;;  %v1735_v24 = vld [vmem:[#allocation2 + $0x10a] ss:$2 sm:$0xff]  ;;  %156 = vst.msk [vmem:[#allocation3 + $0x28] sm:$0x3] %vm152_vm12, %v6027_v14 }
 0x23c   :  { %159 = vst.msk [vmem:[#allocation3 + $0x40] sm:$0x3] %vm152_vm12, %v6027_v14 }
 0x23d   :  { %vm742_vm3 = vcmp.ge.f32.partialorder %v661_v25, 0.0  ;;  %v806_v26 = vmul.f32 0.01, %v661_v25  ;;  %162 = vst.msk [vmem:[#allocation3 + $0x58] sm:$0x3] %vm152_vm12, %v6027_v14 }
 0x23e   :  { %165 = vst.msk [vmem:[#allocation3 + $0x70] sm:$0x3] %vm152_vm12, %v6027_v14 }
 0x23f   :  { %v870_v27 = vsel %vm742_vm3, %v661_v25, %v806_v26  ;;  %v6801_v25 = vpop.f32.mrf.mxu2  ;;  %v6804_v26 = vpop.f32.mrf.mxu3  ;;  %168 = vst.msk [vmem:[#allocation3 + $0x88] sm:$0x3] %vm152_vm12, %v6027_v14 }
 0x240   :  { %935 = vst.msk [vmem:[#allocation2 + $0x2d9] sm:$0xff] %vm39_vm2, %v870_v27  ;;  %v6806_v27 = vpop.f32.mrf.mxu1 }
 0x241   :  { %171 = vst.msk [vmem:[#allocation3 + $0xa0] sm:$0x3] %vm152_vm12, %v6027_v14 }
 0x242   :  { %v663_v28 = vpop.f32.mrf.mxu0  ;;  %174 = vst.msk [vmem:[#allocation3 + $0xb8] sm:$0x3] %vm152_vm12, %v6027_v14 }
 0x243   :  { %v664_v29 = vadd.f32 %v6691_v39, %v663_v28  ;;  %v1411_v28 = vld [vmem:[#allocation2 + $0x138] ss:$2 sm:$0xff]  ;;  %177 = vst.msk [vmem:[#allocation3 + $0xd0] sm:$0x3] %vm152_vm12, %v6027_v14 }
 0x244   :  { %183 = vst.msk [vmem:[#allocation3 + $0x100] sm:$0x3] %vm152_vm12, %v6027_v14 }
 0x245   :  { %vm743_vm4 = vcmp.ge.f32.partialorder %v664_v29, 0.0  ;;  %v807_v30 = vmul.f32 0.01, %v664_v29  ;;  %186 = vst.msk [vmem:[#allocation3 + $0x118] sm:$0x3] %vm152_vm12, %v6027_v14 }
 0x246   :  { %189 = vst.msk [vmem:[#allocation3 + $0x130] sm:$0x3] %vm152_vm12, %v6027_v14 }
 0x247   :  { %v871_v31 = vsel %vm743_vm4, %v664_v29, %v807_v30  ;;  %v1005_v32 = vld [vmem:[#allocation2 + $0x2d1] ss:$2 sm:$0xff]  ;;  %v972_v33 = vld [vmem:[#allocation2 + $0x2d0] ss:$2 sm:$0xff]  ;;  %192 = vst.msk [vmem:[#allocation3 + $0x148] sm:$0x3] %vm152_vm12, %v6027_v14 }
 0x248   :  { %v1265_v34 = vld [vmem:[#allocation2 + $0x2d2] ss:$2 sm:$0xff]  ;;  %936 = vst.msk [vmem:[#allocation2 + $0x2e9] sm:$0xff] %vm39_vm2, %v871_v31  ;;  %5465 = vmatmul.msk.f32.gmra.mxu1 %vm39_vm2, %v1005_v32  ;;  %5481 = vmatmul.msk.f32.gmra.mxu2 %vm39_vm2, %v972_v33  ;;  %v1574_v29 = vld [vmem:[#allocation2 + $0x139] ss:$2 sm:$0xff]  ;;  %v6810_v31 = vpop.f32.mrf.mxu2  ;;  %v6813_v32 = vpop.f32.mrf.mxu3 }
 0x249   :  { %5498 = vmatmul.msk.f32.gmra.mxu3 %vm39_vm2, %v1265_v34  ;;  %v1737_v30 = vld [vmem:[#allocation2 + $0x13a] ss:$2 sm:$0xff]  ;;  %v6815_v33 = vpop.f32.mrf.mxu1  ;;  %195 = vst.msk [vmem:[#allocation3 + $0x160] sm:$0x3] %vm152_vm12, %v6027_v14 }
 0x24a   :  { %v666_v35 = vpop.f32.mrf.mxu0  ;;  %v1413_v34 = vld [vmem:[#allocation2 + $0x168] ss:$2 sm:$0xff]  ;;  %198 = vst.msk [vmem:[#allocation3 + $0x178] sm:$0x3] %vm152_vm12, %v6027_v14 }
 0x24b   :  { %v667_v36 = vadd.f32 %v6691_v39, %v666_v35  ;;  %v1576_v35 = vld [vmem:[#allocation2 + $0x169] ss:$2 sm:$0xff]  ;;  %201 = vst.msk [vmem:[#allocation3 + $0x190] sm:$0x3] %vm152_vm12, %v6027_v14 }
 0x24c   :  { %204 = vst.msk [vmem:[#allocation3 + $0x1a8] sm:$0x3] %vm152_vm12, %v6027_v14 }
 0x24d   :  { %vm744_vm5 = vcmp.ge.f32.partialorder %v667_v36, 0.0  ;;  %v808_v37 = vmul.f32 0.01, %v667_v36  ;;  %207 = vst.msk [vmem:[#allocation3 + $0x1c0] sm:$0x3] %vm152_vm12, %v6027_v14 }
 0x24f   :  { %v872_v38 = vsel %vm744_vm5, %v667_v36, %v808_v37  ;;  %v1739_v36 = vld [vmem:[#allocation2 + $0x16a] ss:$2 sm:$0xff] }
 0x250   :  { %937 = vst.msk [vmem:[#allocation2 + $0x2f1] sm:$0xff] %vm39_vm2, %v872_v38  ;;  %v6819_v37 = vpop.f32.mrf.mxu2  ;;  %v6822_v38 = vpop.f32.mrf.mxu3 }
 0x251   :  { %v6824_v19 = vpop.f32.mrf.mxu1 }
 0x252   :  { %v669_v42 = vpop.f32.mrf.mxu0 }
 0x253   :  { %v670_v43 = vadd.f32 %v6691_v39, %v669_v42  ;;  %v1578_v42 = vld [vmem:[#allocation2 + $0x1c9] ss:$2 sm:$0xff] }
 0x255   :  { %vm745_vm6 = vcmp.ge.f32.partialorder %v670_v43, 0.0  ;;  %v809_v44 = vmul.f32 0.01, %v670_v43 }
 0x257   :  { %v873_v45 = vsel %vm745_vm6, %v670_v43, %v809_v44  ;;  %v1741_v44 = vld [vmem:[#allocation2 + $0x1ca] ss:$2 sm:$0xff] }
 0x258   :  { %938 = vst.msk [vmem:[#allocation2 + $0x301] sm:$0xff] %vm39_vm2, %v873_v45  ;;  %v6829_v45 = vpop.f32.mrf.mxu2 }
 0x25a   :  { %v672_v46 = vpop.f32.mrf.mxu0 }
 0x25b   :  { %v673_v47 = vadd.f32 %v6691_v39, %v672_v46 }
 0x25d   :  { %vm746_vm7 = vcmp.ge.f32.partialorder %v673_v47, 0.0  ;;  %v810_v48 = vmul.f32 0.01, %v673_v47 }
 0x25f   :  { %v874_v49 = vsel %vm746_vm7, %v673_v47, %v810_v48  ;;  %v273_v47 = vld [vmem:[%s8755_s0 + $0x1f0] sm:$0xff]  ;;  %v6835_v48 = vpop.f32.mrf.mxu3 }
 0x260   :  { %939 = vst.msk [vmem:[#allocation2 + $0x309] sm:$0xff] %vm39_vm2, %v874_v49  ;;  %5448 = vmatmul.msk.f32.gmra.mxu0 %vm281_vm1, %v273_v47  ;;  %v1751_v47 = vld [vmem:[#allocation2 + $0x2ba] ss:$2 sm:$0xff] }
 0x262   :  { %v675_v40 = vpop.f32.mrf.mxu0 }
 0x263   :  { %v676_v43 = vadd.f32 %v6691_v39, %v675_v40  ;;  %v1749_v40 = vld [vmem:[#allocation2 + $0x28a] ss:$2 sm:$0xff] }
 0x265   :  { %vm747_vm8 = vcmp.ge.f32.partialorder %v676_v43, 0.0  ;;  %v811_v46 = vmul.f32 0.01, %v676_v43 }
 0x267   :  { %v1007_v50 = vld [vmem:[#allocation2 + $0x301] ss:$2 sm:$0xff]  ;;  %v974_v51 = vld [vmem:[#allocation2 + $0x300] ss:$2 sm:$0xff]  ;;  %v875_v49 = vsel %vm747_vm8, %v676_v43, %v811_v46 }
 0x268   :  { %v1267_v52 = vld [vmem:[#allocation2 + $0x302] ss:$2 sm:$0xff]  ;;  %5466 = vmatmul.msk.f32.gmra.mxu1 %vm39_vm2, %v1007_v50  ;;  %5482 = vmatmul.msk.f32.gmra.mxu2 %vm39_vm2, %v974_v51  ;;  %940 = vst.msk [vmem:[#allocation2 + $0x319] sm:$0xff] %vm39_vm2, %v875_v49  ;;  %v6839_v50 = vpop.f32.mrf.mxu1  ;;  %v1588_v46 = vld [vmem:[#allocation2 + $0x2b9] ss:$2 sm:$0xff] }
 0x269   :  { %5499 = vmatmul.msk.f32.gmra.mxu3 %vm39_vm2, %v1267_v52  ;;  %v1417_v52 = vld [vmem:[#allocation2 + $0x1f8] ss:$2 sm:$0xff] }
 0x26a   :  { %v678_v51 = vpop.f32.mrf.mxu0 }
 0x270   :  { %5501 = vmatmul.msk.f32.vlgmr.msrb.gmra.mxu1 %vm39_vm2, %v1399_v55  ;;  %5518 = vmatmul.msk.f32.vlgmr.msrb.gmra.mxu2 %vm39_vm2, %v1562_v56  ;;  %v1580_v55 = vld [vmem:[#allocation2 + $0x1f9] ss:$2 sm:$0xff]  ;;  %v679_v56 = vadd.f32 %v6691_v39, %v678_v51 }
 0x271   :  { %5535 = vmatmul.msk.f32.vlgmr.msrb.gmra.mxu3 %vm39_vm2, %v1725_v58  ;;  %v1743_v58 = vld [vmem:[#allocation2 + $0x1fa] ss:$2 sm:$0xff] }
 0x272   :  { %vm748_vm9 = vcmp.ge.f32.partialorder %v679_v56, 0.0 }
 0x278   :  { %5502 = vmatmul.msk.f32.gmra.mxu1 %vm39_vm2, %v1401_v60  ;;  %5519 = vmatmul.msk.f32.gmra.mxu2 %vm39_vm2, %v1564_v61  ;;  %v812_v60 = vmul.f32 0.01, %v679_v56  ;;  %v274_v61 = vld [vmem:[%s8755_s0 + $0x1f8] sm:$0xff] }
 0x279   :  { %5536 = vmatmul.msk.f32.gmra.mxu3 %vm39_vm2, %v1727_v62  ;;  %5449 = vmatmul.msk.f32.gmra.mxu0 %vm281_vm1, %v274_v61  ;;  %v6849_v62 = vpop.f32.mrf.mxu2 }
 0x280   :  { %5503 = vmatmul.msk.f32.gmra.mxu1 %vm39_vm2, %v1403_v2  ;;  %5520 = vmatmul.msk.f32.gmra.mxu2 %vm39_vm2, %v1566_v3  ;;  %v876_v2 = vsel %vm748_vm9, %v679_v56, %v812_v60  ;;  %v6851_v3 = vpop.f32.mrf.mxu3  ;;  %v1590_v56 = vld [vmem:[#allocation2 + $0x2e9] ss:$2 sm:$0xff] }
 0x281   :  { %5537 = vmatmul.msk.f32.gmra.mxu3 %vm39_vm2, %v1729_v4  ;;  %941 = vst.msk [vmem:[#allocation2 + $0x321] sm:$0xff] %vm39_vm2, %v876_v2  ;;  %v6854_v4 = vpop.f32.mrf.mxu1 }
 0x288   :  { %5504 = vmatmul.msk.f32.gmra.mxu1 %vm39_vm2, %v1405_v8  ;;  %5521 = vmatmul.msk.f32.gmra.mxu2 %vm39_vm2, %v1568_v9  ;;  %v1419_v8 = vld [vmem:[#allocation2 + $0x228] ss:$2 sm:$0xff]  ;;  %v1582_v9 = vld [vmem:[#allocation2 + $0x229] ss:$2 sm:$0xff] }
 0x289   :  { %5538 = vmatmul.msk.f32.gmra.mxu3 %vm39_vm2, %v1731_v10  ;;  %v1745_v10 = vld [vmem:[#allocation2 + $0x22a] ss:$2 sm:$0xff] }
 0x290   :  { %5505 = vmatmul.msk.f32.gmra.mxu1 %vm39_vm2, %v1407_v15  ;;  %5522 = vmatmul.msk.f32.gmra.mxu2 %vm39_vm2, %v1570_v16  ;;  %v6859_v15 = vpop.f32.mrf.mxu2  ;;  %v6861_v16 = vpop.f32.mrf.mxu3 }
 0x291   :  { %5539 = vmatmul.msk.f32.gmra.mxu3 %vm39_vm2, %v1733_v17  ;;  %v6863_v17 = vpop.f32.mrf.mxu1 }
 0x298   :  { %5506 = vmatmul.msk.f32.gmra.mxu1 %vm39_vm2, %v1409_v22  ;;  %5523 = vmatmul.msk.f32.gmra.mxu2 %vm39_vm2, %v1572_v23  ;;  %v1421_v22 = vld [vmem:[#allocation2 + $0x258] ss:$2 sm:$0xff]  ;;  %v1584_v23 = vld [vmem:[#allocation2 + $0x259] ss:$2 sm:$0xff] }
 0x299   :  { %5540 = vmatmul.msk.f32.gmra.mxu3 %vm39_vm2, %v1735_v24  ;;  %v1747_v24 = vld [vmem:[#allocation2 + $0x25a] ss:$2 sm:$0xff] }
 0x2a0   :  { %5507 = vmatmul.msk.f32.gmra.mxu1 %vm39_vm2, %v1411_v28  ;;  %5524 = vmatmul.msk.f32.gmra.mxu2 %vm39_vm2, %v1574_v29  ;;  %v6868_v28 = vpop.f32.mrf.mxu2  ;;  %v6870_v29 = vpop.f32.mrf.mxu3 }
 0x2a1   :  { %5541 = vmatmul.msk.f32.gmra.mxu3 %vm39_vm2, %v1737_v30  ;;  %v6872_v30 = vpop.f32.mrf.mxu1 }
 0x2a8   :  { %5508 = vmatmul.msk.f32.gmra.mxu1 %vm39_vm2, %v1413_v34  ;;  %5525 = vmatmul.msk.f32.gmra.mxu2 %vm39_vm2, %v1576_v35  ;;  %v5702_v34 = vld [vmem:[%s8762_s7 + $0xe0] sm:$0xff]  ;;  %v1423_v35 = vld [vmem:[#allocation2 + $0x288] ss:$2 sm:$0xff] }
 0x2a9   :  { %5542 = vmatmul.msk.f32.gmra.mxu3 %vm39_vm2, %v1739_v36  ;;  %v1586_v36 = vld [vmem:[#allocation2 + $0x289] ss:$2 sm:$0xff]  ;;  %3371 = vmatpush.msrb.mxu0 %v5702_v34  ;;  %v6884_v43 = vpop.f32.mrf.mxu1 }
 0x2b0   :  { %5509 = vmatmul.msk.f32.gmra.mxu1 %vm39_vm2, %v1415_v41  ;;  %5526 = vmatmul.msk.f32.gmra.mxu2 %vm39_vm2, %v1578_v42  ;;  %v6880_v41 = vpop.f32.mrf.mxu2  ;;  %v6882_v42 = vpop.f32.mrf.mxu3 }
 0x2b1   :  { %5543 = vmatmul.msk.f32.gmra.mxu3 %vm39_vm2, %v1741_v44  ;;  %v1425_v44 = vld [vmem:[#allocation2 + $0x2b8] ss:$2 sm:$0xff] }
 0x2b8   :  { %5510 = vmatmul.msk.f32.gmra.mxu1 %vm39_vm2, %v1417_v52  ;;  %5527 = vmatmul.msk.f32.gmra.mxu2 %vm39_vm2, %v1580_v55  ;;  %v6889_v49 = vpop.f32.mrf.mxu2  ;;  %v6891_v51 = vpop.f32.mrf.mxu3  ;;  %v1427_v55 = vld [vmem:[#allocation2 + $0x2e8] ss:$2 sm:$0xff] }
 0x2b9   :  { %5544 = vmatmul.msk.f32.gmra.mxu3 %vm39_vm2, %v1743_v58  ;;  %v1753_v58 = vld [vmem:[#allocation2 + $0x2ea] ss:$2 sm:$0xff] }
 0x2c0   :  { %5511 = vmatmul.msk.f32.gmra.mxu1 %vm39_vm2, %v1419_v8  ;;  %5528 = vmatmul.msk.f32.gmra.mxu2 %vm39_vm2, %v1582_v9  ;;  %v1429_v8 = vld [vmem:[#allocation2 + $0x318] ss:$2 sm:$0xff]  ;;  %v1592_v9 = vld [vmem:[#allocation2 + $0x319] ss:$2 sm:$0xff] }
 0x2c1   :  { %5545 = vmatmul.msk.f32.gmra.mxu3 %vm39_vm2, %v1745_v10  ;;  %v1755_v10 = vld [vmem:[#allocation2 + $0x31a] ss:$2 sm:$0xff] }
 0x2c5   :  { %v6893_v52 = vpop.f32.mrf.mxu1 }
 0x2c8   :  { %5512 = vmatmul.msk.f32.gmra.mxu1 %vm39_vm2, %v1421_v22  ;;  %5529 = vmatmul.msk.f32.gmra.mxu2 %vm39_vm2, %v1584_v23  ;;  %v1189_v23 = vadd.f32 %v6754_v54, %v6751_v53  ;;  %v1192_v53 = vadd.f32 %v6765_v63, %v6761_v59  ;;  %v1195_v59 = vadd.f32 %v6774_v5, %v6770_v1 }
 0x2c9   :  { %5546 = vmatmul.msk.f32.gmra.mxu3 %vm39_vm2, %v1747_v24  ;;  %v1198_v1 = vadd.f32 %v6783_v11, %v6779_v7  ;;  %v1201_v7 = vadd.f32 %v6792_v18, %v6788_v13  ;;  %v1204_v13 = vadd.f32 %v6801_v25, %v6797_v21  ;;  %v2224_v21 = vld [vmem:[#allocation2 + $0x122] ss:$2 sm:$0xff]  ;;  %v5603_v25 = vld [vmem:[%s8760_s5 + $0x18] sm:$0xff] }
 0x2ca   :  { %2535 = vmatpush.msrb.mxu1 %v5603_v25 }
 0x2cb   :  { %v6898_v60 = vpop.f32.mrf.mxu2 }
 0x2cc   :  { %v6900_v61 = vpop.f32.mrf.mxu3 }
 0x2d0   :  { %5513 = vmatmul.msk.f32.gmra.mxu1 %vm39_vm2, %v1423_v35  ;;  %5530 = vmatmul.msk.f32.gmra.mxu2 %vm39_vm2, %v1586_v36 }
 0x2d1   :  { %5547 = vmatmul.msk.f32.gmra.mxu3 %vm39_vm2, %v1749_v40  ;;  %v1888_v40 = vld [vmem:[#allocation2 + $0x30] ss:$2 sm:$0xff] }
 0x2d8   :  { %5514 = vmatmul.msk.f32.gmra.mxu1 %vm39_vm2, %v1425_v44  ;;  %5531 = vmatmul.msk.f32.gmra.mxu2 %vm39_vm2, %v1588_v46  ;;  %v2051_v44 = vld [vmem:[#allocation2 + $0x31] ss:$2 sm:$0xff]  ;;  %v1383_v46 = vadd.f32 %v6756_v57, %v1189_v23  ;;  %v1384_v57 = vadd.f32 %v6768_v0, %v1192_v53  ;;  %v1385_v0 = vadd.f32 %v6777_v6, %v1195_v59 }
 0x2d9   :  { %5548 = vmatmul.msk.f32.gmra.mxu3 %vm39_vm2, %v1751_v47  ;;  %v2214_v47 = vld [vmem:[#allocation2 + $0x32] ss:$2 sm:$0xff]  ;;  %v1386_v6 = vadd.f32 %v6786_v12, %v1198_v1  ;;  %v1387_v12 = vadd.f32 %v6795_v20, %v1201_v7  ;;  %v2477_v20 = vld [vmem:[%s8760_s5 + $0x8] sm:$0xff]  ;;  %v2063_v7 = vld [vmem:[#allocation2 + $0x151] ss:$2 sm:$0xff] }
 0x2da   :  { %v1898_v1 = vld [vmem:[#allocation2 + $0x120] ss:$2 sm:$0xff]  ;;  %2600 = vmatpush.msrb.mxu2 %v2477_v20 }
 0x2e0   :  { %5515 = vmatmul.msk.f32.gmra.mxu1 %vm39_vm2, %v1427_v55  ;;  %5532 = vmatmul.msk.f32.gmra.mxu2 %vm39_vm2, %v1590_v56 }
 0x2e1   :  { %5549 = vmatmul.msk.f32.gmra.mxu3 %vm39_vm2, %v1753_v58 }
 0x2e5   :  { %v1120_v2 = vpop.f32.mrf.mxu1 }
 0x2e8   :  { %5516 = vmatmul.msk.f32.gmra.mxu1 %vm39_vm2, %v1429_v8  ;;  %5533 = vmatmul.msk.f32.gmra.mxu2 %vm39_vm2, %v1592_v9  ;;  %v1890_v9 = vld [vmem:[#allocation2 + $0x60] ss:$2 sm:$0xff] }
 0x2e9   :  { %5550 = vmatmul.msk.f32.gmra.mxu3 %vm39_vm2, %v1755_v10  ;;  %v2053_v10 = vld [vmem:[#allocation2 + $0x61] ss:$2 sm:$0xff] }
 0x2eb   :  { %v1233_v22 = vpop.f32.mrf.mxu2 }
 0x2ec   :  { %v1234_v24 = vadd.f32 %v1233_v22, %v1120_v2  ;;  %v1380_v34 = vpop.f32.mrf.mxu3  ;;  %v2216_v22 = vld [vmem:[#allocation2 + $0x62] ss:$2 sm:$0xff] }
 0x2ed   :  { %v1497_v35 = vpop.f32.mrf.mxu1 }
 0x2ee   :  { %v6907_v36 = vadd.f32 %v1380_v34, %v1234_v24  ;;  %v1545_v55 = vadd.f32 %v1497_v35, %v1383_v46  ;;  %v2055_v46 = vld [vmem:[#allocation2 + $0x91] ss:$2 sm:$0xff] }
 0x2f0   :  { %8767 = vst [vmem:[#allocation8_spill] sm:$0xff] %v6907_v36  ;;  %5552 = vmatmul.msk.f32.vlgmr.msra.gmra.mxu1 %vm39_vm2, %v1888_v40  ;;  %5569 = vmatmul.msk.f32.vlgmr.msra.gmra.mxu2 %vm39_vm2, %v2051_v44  ;;  %v1892_v44 = vld [vmem:[#allocation2 + $0x90] ss:$2 sm:$0xff] }
 0x2f1   :  { %5586 = vmatmul.msk.f32.vlgmr.msra.gmra.mxu3 %vm39_vm2, %v2214_v47  ;;  %v2218_v47 = vld [vmem:[#allocation2 + $0x92] ss:$2 sm:$0xff] }
 0x2f3   :  { %v1660_v56 = vpop.f32.mrf.mxu2 }
 0x2f4   :  { %v1708_v54 = vadd.f32 %v1660_v56, %v1545_v55  ;;  %v1823_v58 = vpop.f32.mrf.mxu3 }
 0x2f5   :  { %v1500_v2 = vpop.f32.mrf.mxu1 }
 0x2f6   :  { %v6915_v8 = vadd.f32 %v1823_v58, %v1708_v54  ;;  %v1546_v23 = vadd.f32 %v1500_v2, %v1384_v57  ;;  %v1894_v2 = vld [vmem:[#allocation2 + $0xc0] ss:$2 sm:$0xff] }
 0x2f8   :  { %5553 = vmatmul.msk.f32.gmra.mxu1 %vm39_vm2, %v1890_v9  ;;  %5570 = vmatmul.msk.f32.gmra.mxu2 %vm39_vm2, %v2053_v10  ;;  %v2057_v9 = vld [vmem:[#allocation2 + $0xc1] ss:$2 sm:$0xff]  ;;  %v2220_v10 = vld [vmem:[#allocation2 + $0xc2] ss:$2 sm:$0xff] }
 0x2f9   :  { %5587 = vmatmul.msk.f32.gmra.mxu3 %vm39_vm2, %v2216_v22 }
 0x2fb   :  { %v1663_v24 = vpop.f32.mrf.mxu2 }
 0x2fc   :  { %v1709_v63 = vadd.f32 %v1663_v24, %v1546_v23  ;;  %v1826_v34 = vpop.f32.mrf.mxu3 }
 0x2fd   :  { %v1503_v35 = vpop.f32.mrf.mxu1 }
 0x2fe   :  { %v6923_v40 = vadd.f32 %v1826_v34, %v1709_v63  ;;  %v1547_v55 = vadd.f32 %v1503_v35, %v1385_v0  ;;  %v1896_v63 = vld [vmem:[#allocation2 + $0xf0] ss:$2 sm:$0xff]  ;;  %v2059_v34 = vld [vmem:[#allocation2 + $0xf1] ss:$2 sm:$0xff] }
 0x2ff   :  { %v2222_v35 = vld [vmem:[#allocation2 + $0xf2] ss:$2 sm:$0xff] }
 0x300   :  { %5554 = vmatmul.msk.f32.gmra.mxu1 %vm39_vm2, %v1892_v44  ;;  %5571 = vmatmul.msk.f32.gmra.mxu2 %vm39_vm2, %v2055_v46 }
 0x301   :  { %5588 = vmatmul.msk.f32.gmra.mxu3 %vm39_vm2, %v2218_v47 }
 0x303   :  { %v1666_v56 = vpop.f32.mrf.mxu2 }
 0x304   :  { %v1710_v5 = vadd.f32 %v1666_v56, %v1547_v55  ;;  %v1829_v53 = vpop.f32.mrf.mxu3  ;;  %v5621_v56 = vld [vmem:[%s8760_s5 + $0x28] sm:$0xff] }
 0x305   :  { %v1506_v54 = vpop.f32.mrf.mxu1  ;;  %2684 = vmatpush.msrb.mxu3 %v5621_v56  ;;  %v1904_v56 = vld [vmem:[#allocation2 + $0x1e0] ss:$2 sm:$0xff] }
 0x306   :  { %v6931_v58 = vadd.f32 %v1829_v53, %v1710_v5  ;;  %v1548_v57 = vadd.f32 %v1506_v54, %v1386_v6  ;;  %v2061_v5 = vld [vmem:[#allocation2 + $0x121] ss:$2 sm:$0xff]  ;;  %v1388_v53 = vadd.f32 %v6804_v26, %v1204_v13  ;;  %v2228_v13 = vld [vmem:[#allocation2 + $0x182] ss:$2 sm:$0xff] }
 0x308   :  { %5555 = vmatmul.msk.f32.gmra.mxu1 %vm39_vm2, %v1894_v2  ;;  %5572 = vmatmul.msk.f32.gmra.mxu2 %vm39_vm2, %v2057_v9  ;;  %v1207_v9 = vadd.f32 %v6810_v31, %v6806_v27  ;;  %v1210_v27 = vadd.f32 %v6819_v37, %v6815_v33 }
 0x309   :  { %5589 = vmatmul.msk.f32.gmra.mxu3 %vm39_vm2, %v2220_v10 }
 0x30b   :  { %v1669_v22 = vpop.f32.mrf.mxu2 }
 0x30c   :  { %v1711_v11 = vadd.f32 %v1669_v22, %v1548_v57  ;;  %v1832_v23 = vpop.f32.mrf.mxu3  ;;  %v1900_v22 = vld [vmem:[#allocation2 + $0x150] ss:$2 sm:$0xff] }
 0x30d   :  { %v1509_v24 = vpop.f32.mrf.mxu1 }
 0x30e   :  { %v6939_v59 = vadd.f32 %v1832_v23, %v1711_v11  ;;  %v1549_v44 = vadd.f32 %v1509_v24, %v1387_v12  ;;  %v1389_v11 = vadd.f32 %v6813_v32, %v1207_v9  ;;  %v2226_v23 = vld [vmem:[#allocation2 + $0x152] ss:$2 sm:$0xff]  ;;  %v1390_v32 = vadd.f32 %v6822_v38, %v1210_v27  ;;  %v2230_v38 = vld [vmem:[#allocation2 + $0x1e2] ss:$2 sm:$0xff] }
 0x310   :  { %5556 = vmatmul.msk.f32.gmra.mxu1 %vm39_vm2, %v1896_v63  ;;  %5573 = vmatmul.msk.f32.gmra.mxu2 %vm39_vm2, %v2059_v34 }
 0x311   :  { %5590 = vmatmul.msk.f32.gmra.mxu3 %vm39_vm2, %v2222_v35 }
 0x313   :  { %v1672_v46 = vpop.f32.mrf.mxu2 }
 0x314   :  { %v1712_v18 = vadd.f32 %v1672_v46, %v1549_v44  ;;  %v1835_v0 = vpop.f32.mrf.mxu3  ;;  %v1902_v44 = vld [vmem:[#allocation2 + $0x180] ss:$2 sm:$0xff]  ;;  %v2065_v46 = vld [vmem:[#allocation2 + $0x181] ss:$2 sm:$0xff] }
 0x315   :  { %v1512_v47 = vpop.f32.mrf.mxu1 }
 0x316   :  { %v6947_v55 = vadd.f32 %v1835_v0, %v1712_v18  ;;  %v1550_v54 = vadd.f32 %v1512_v47, %v1388_v53 }
 0x318   :  { %5557 = vmatmul.msk.f32.gmra.mxu1 %vm39_vm2, %v1898_v1  ;;  %5574 = vmatmul.msk.f32.gmra.mxu2 %vm39_vm2, %v2061_v5  ;;  %v2067_v1 = vld [vmem:[#allocation2 + $0x1e1] ss:$2 sm:$0xff]  ;;  %v681_v5 = vpop.f32.mrf.mxu0 }
 0x319   :  { %5591 = vmatmul.msk.f32.gmra.mxu3 %vm39_vm2, %v2224_v21  ;;  %v682_v53 = vadd.f32 %v6691_v39, %v681_v5  ;;  %v2238_v5 = vld [vmem:[#allocation2 + $0x2a2] ss:$2 sm:$0xff] }
 0x31b   :  { %v1675_v2 = vpop.f32.mrf.mxu2  ;;  %vm749_vm1 = vcmp.ge.f32.partialorder %v682_v53, 0.0 }
 0x31c   :  { %v1713_v6 = vadd.f32 %v1675_v2, %v1550_v54  ;;  %v1838_v10 = vpop.f32.mrf.mxu3  ;;  %v813_v54 = vmul.f32 0.01, %v682_v53 }
 0x31d   :  { %v1515_v26 = vpop.f32.mrf.mxu1 }
 0x31e   :  { %v6964_v57 = vadd.f32 %v1838_v10, %v1713_v6  ;;  %v1551_v24 = vadd.f32 %v1515_v26, %v1389_v11  ;;  %v877_v9 = vsel %vm749_vm1, %v682_v53, %v813_v54  ;;  %v1906_v6 = vld [vmem:[#allocation2 + $0x210] ss:$2 sm:$0xff]  ;;  %v2069_v10 = vld [vmem:[#allocation2 + $0x211] ss:$2 sm:$0xff] }
 0x31f   :  { %942 = vst.msk [vmem:[#allocation2 + $0x331] sm:$0xff] %vm39_vm2, %v877_v9  ;;  %v2232_v26 = vld [vmem:[#allocation2 + $0x212] ss:$2 sm:$0xff] }
 0x320   :  { %5558 = vmatmul.msk.f32.gmra.mxu1 %vm39_vm2, %v1900_v22  ;;  %5575 = vmatmul.msk.f32.gmra.mxu2 %vm39_vm2, %v2063_v7  ;;  %v684_v22 = vpop.f32.mrf.mxu0 }
 0x321   :  { %5592 = vmatmul.msk.f32.gmra.mxu3 %vm39_vm2, %v2226_v23  ;;  %v685_v7 = vadd.f32 %v6691_v39, %v684_v22 }
 0x323   :  { %v1678_v63 = vpop.f32.mrf.mxu2  ;;  %vm750_vm10 = vcmp.ge.f32.partialorder %v685_v7, 0.0 }
 0x324   :  { %v1714_v31 = vadd.f32 %v1678_v63, %v1551_v24  ;;  %v1841_v34 = vpop.f32.mrf.mxu3  ;;  %v814_v24 = vmul.f32 0.01, %v685_v7 }
 0x325   :  { %v1518_v12 = vpop.f32.mrf.mxu1 }
 0x326   :  { %v6972_v35 = vadd.f32 %v1841_v34, %v1714_v31  ;;  %v1552_v18 = vadd.f32 %v1518_v12, %v1390_v32  ;;  %v878_v27 = vsel %vm750_vm10, %v685_v7, %v814_v24  ;;  %v1908_v31 = vld [vmem:[#allocation2 + $0x240] ss:$2 sm:$0xff]  ;;  %v2071_v34 = vld [vmem:[#allocation2 + $0x241] ss:$2 sm:$0xff]  ;;  %v1910_v32 = vld [vmem:[#allocation2 + $0x270] ss:$2 sm:$0xff] }
 0x327   :  { %943 = vst.msk [vmem:[#allocation2 + $0x339] sm:$0xff] %vm39_vm2, %v878_v27  ;;  %v2234_v12 = vld [vmem:[#allocation2 + $0x242] ss:$2 sm:$0xff] }
 0x328   :  { %5559 = vmatmul.msk.f32.gmra.mxu1 %vm39_vm2, %v1902_v44  ;;  %5576 = vmatmul.msk.f32.gmra.mxu2 %vm39_vm2, %v2065_v46  ;;  %v2476_v27 = vld [vmem:[%s8760_s5] sm:$0xff] }
 0x329   :  { %5593 = vmatmul.msk.f32.gmra.mxu3 %vm39_vm2, %v2228_v13  ;;  %v2073_v13 = vld [vmem:[#allocation2 + $0x271] ss:$2 sm:$0xff]  ;;  %2601 = vmatpush.msrb.mxu2 %v2476_v27 }
 0x32b   :  { %v1681_v0 = vpop.f32.mrf.mxu2 }
 0x32c   :  { %v1715_v47 = vadd.f32 %v1681_v0, %v1552_v18  ;;  %v1844_v33 = vpop.f32.mrf.mxu3  ;;  %v2236_v18 = vld [vmem:[#allocation2 + $0x272] ss:$2 sm:$0xff] }
 0x32d   :  { %v6978_v37 = vpop.f32.mrf.mxu1 }
 0x32e   :  { %v6980_v20 = vadd.f32 %v1844_v33, %v1715_v47 }
 0x330   :  { %5560 = vmatmul.msk.f32.gmra.mxu1 %vm39_vm2, %v1904_v56  ;;  %5577 = vmatmul.msk.f32.gmra.mxu2 %vm39_vm2, %v2067_v1  ;;  %v5698_v56 = vld [vmem:[%s8762_s7 + $0xc0] sm:$0xff] }
 0x331   :  { %5594 = vmatmul.msk.f32.gmra.mxu3 %vm39_vm2, %v2230_v38  ;;  %v1912_v1 = vld [vmem:[#allocation2 + $0x2a0] ss:$2 sm:$0xff]  ;;  %v2075_v38 = vld [vmem:[#allocation2 + $0x2a1] ss:$2 sm:$0xff]  ;;  %3372 = vmatpush.msrb.mxu0 %v5698_v56 }
 0x333   :  { %v6986_v21 = vpop.f32.mrf.mxu2 }
 0x334   :  { %v6988_v25 = vpop.f32.mrf.mxu3 }
 0x335   :  { %v6990_v2 = vpop.f32.mrf.mxu1 }
 0x338   :  { %5561 = vmatmul.msk.f32.gmra.mxu1 %vm39_vm2, %v1906_v6  ;;  %5578 = vmatmul.msk.f32.gmra.mxu2 %vm39_vm2, %v2069_v10  ;;  %v1914_v6 = vld [vmem:[#allocation2 + $0x2d0] ss:$2 sm:$0xff]  ;;  %v2077_v10 = vld [vmem:[#allocation2 + $0x2d1] ss:$2 sm:$0xff] }
 0x339   :  { %5595 = vmatmul.msk.f32.gmra.mxu3 %vm39_vm2, %v2232_v26  ;;  %v2240_v26 = vld [vmem:[#allocation2 + $0x2d2] ss:$2 sm:$0xff] }
 0x33b   :  { %v6997_v11 = vpop.f32.mrf.mxu2 }
 0x33c   :  { %v6999_v23 = vpop.f32.mrf.mxu3 }
 0x33d   :  { %v7001_v63 = vpop.f32.mrf.mxu1 }
 0x340   :  { %5562 = vmatmul.msk.f32.gmra.mxu1 %vm39_vm2, %v1908_v31  ;;  %5579 = vmatmul.msk.f32.gmra.mxu2 %vm39_vm2, %v2071_v34  ;;  %v5620_v31 = vld [vmem:[%s8760_s5 + $0x20] sm:$0xff]  ;;  %v5602_v34 = vld [vmem:[%s8760_s5 + $0x10] sm:$0xff] }
 0x341   :  { %5596 = vmatmul.msk.f32.gmra.mxu3 %vm39_vm2, %v2234_v12  ;;  %v1916_v12 = vld [vmem:[#allocation2 + $0x300] ss:$2 sm:$0xff]  ;;  %2536 = vmatpush.msrb.mxu1 %v5602_v34 }
 0x342   :  { %2685 = vmatpush.msrb.mxu3 %v5620_v31  ;;  %v2479_v31 = vld [vmem:[#allocation3 + $0x1] ss:$2 sm:$0xff]  ;;  %v2461_v34 = vld [vmem:[#allocation3] ss:$2 sm:$0xff] }
 0x343   :  { %v7007_v39 = vpop.f32.mrf.mxu2 }
 0x344   :  { %v7009_v44 = vpop.f32.mrf.mxu3 }
 0x345   :  { %v7011_v46 = vpop.f32.mrf.mxu1 }
 0x348   :  { %5563 = vmatmul.msk.f32.gmra.mxu1 %vm39_vm2, %v1910_v32  ;;  %5580 = vmatmul.msk.f32.gmra.mxu2 %vm39_vm2, %v2073_v13  ;;  %v2079_v32 = vld [vmem:[#allocation2 + $0x301] ss:$2 sm:$0xff]  ;;  %v2242_v13 = vld [vmem:[#allocation2 + $0x302] ss:$2 sm:$0xff] }
 0x349   :  { %5597 = vmatmul.msk.f32.gmra.mxu3 %vm39_vm2, %v2236_v18 }
 0x34b   :  { %v7016_v0 = vpop.f32.mrf.mxu2 }
 0x34c   :  { %v7018_v47 = vpop.f32.mrf.mxu3 }
 0x34d   :  { %v7020_v33 = vpop.f32.mrf.mxu1 }
 0x350   :  { %5564 = vmatmul.msk.f32.gmra.mxu1 %vm39_vm2, %v1912_v1  ;;  %5581 = vmatmul.msk.f32.gmra.mxu2 %vm39_vm2, %v2075_v38  ;;  %v1918_v38 = vld [vmem:[#allocation2 + $0x330] ss:$2 sm:$0xff] }
 0x351   :  { %5598 = vmatmul.msk.f32.gmra.mxu3 %vm39_vm2, %v2238_v5  ;;  %v2081_v5 = vld [vmem:[#allocation2 + $0x331] ss:$2 sm:$0xff] }
 0x353   :  { %v7028_v53 = vpop.f32.mrf.mxu2 }
 0x354   :  { %v7030_v54 = vpop.f32.mrf.mxu3 }
 0x355   :  { %v7032_v9 = vpop.f32.mrf.mxu1 }
 0x358   :  { %5565 = vmatmul.msk.f32.gmra.mxu1 %vm39_vm2, %v1914_v6  ;;  %5582 = vmatmul.msk.f32.gmra.mxu2 %vm39_vm2, %v2077_v10  ;;  %v2244_v6 = vld [vmem:[#allocation2 + $0x332] ss:$2 sm:$0xff] }
 0x359   :  { %5599 = vmatmul.msk.f32.gmra.mxu3 %vm39_vm2, %v2240_v26 }
 0x35b   :  { %v7049_v22 = vpop.f32.mrf.mxu2 }
 0x35c   :  { %v7053_v7 = vpop.f32.mrf.mxu3 }
 0x35d   :  { %v7057_v24 = vpop.f32.mrf.mxu1 }
 0x360   :  { %5566 = vmatmul.msk.f32.gmra.mxu1 %vm39_vm2, %v1916_v12  ;;  %5583 = vmatmul.msk.f32.gmra.mxu2 %vm39_vm2, %v2079_v32 }
 0x361   :  { %5600 = vmatmul.msk.f32.gmra.mxu3 %vm39_vm2, %v2242_v13 }
 0x363   :  { %v7083_v18 = vpop.f32.mrf.mxu2 }
 0x364   :  { %v7087_v56 = vpop.f32.mrf.mxu3 }
 0x365   :  { %8768 = vst [vmem:[#allocation9_spill] sm:$0xff] %v7087_v56  ;;  %v7091_v1 = vpop.f32.mrf.mxu1 }
 0x366   :  { %8769 = vst [vmem:[#allocation10_spill] sm:$0xff] %v7091_v1 }
 0x368   :  { %5567 = vmatmul.msk.f32.gmra.mxu1 %vm39_vm2, %v1918_v38  ;;  %5584 = vmatmul.msk.f32.gmra.mxu2 %vm39_vm2, %v2081_v5  ;;  %v7132_v5 = vld [vmem:[%s8759_s4] ss:$0 sm:$0xff] }
 0x369   :  { %5601 = vmatmul.msk.f32.gmra.mxu3 %vm39_vm2, %v2244_v6 }
 0x36b   :  { %v7104_v10 = vpop.f32.mrf.mxu2 }
 0x36c   :  { %8770 = vst [vmem:[#allocation11_spill] sm:$0xff] %v7104_v10  ;;  %v7108_v26 = vpop.f32.mrf.mxu3 }
 0x36d   :  { %8771 = vst [vmem:[#allocation12_spill] sm:$0xff] %v7108_v26  ;;  %v1986_v27 = vpop.f32.mrf.mxu1 }
 0x36e   :  { %v2034_v12 = vadd.f32 %v1986_v27, %v6915_v8 }
 0x370   :  { %5604 = vmatmul.msk.f32.vlgmr.msrb.gmra.mxu1 %vm149_vm11, %v2479_v31  ;;  %5612 = vmatmul.msk.f32.vlgmr.msrb.gmra.mxu2 %vm149_vm11, %v2461_v34 }
 0x373   :  { %v2149_v32 = vpop.f32.mrf.mxu2 }
 0x374   :  { %v2197_v13 = vadd.f32 %v2149_v32, %v2034_v12  ;;  %v2312_v38 = vpop.f32.mrf.mxu3 }
 0x375   :  { %v1989_v8 = vpop.f32.mrf.mxu1 }
 0x376   :  { %v2360_v6 = vadd.f32 %v2312_v38, %v2197_v13  ;;  %v2035_v34 = vadd.f32 %v1989_v8, %v6923_v40 }
 0x378   :  { %v2380_v27 = vadd.f32 %v7132_v5, %v2360_v6 }
 0x37a   :  { %vm2396_vm2 = vcmp.ge.f32.partialorder %v2380_v27, 0.0  ;;  %v2412_v31 = vmul.f32 0.01, %v2380_v27 }
 0x37b   :  { %v2152_v12 = vpop.f32.mrf.mxu2 }
 0x37c   :  { %v2428_v32 = vsel %vm2396_vm2, %v2380_v27, %v2412_v31  ;;  %v2198_v13 = vadd.f32 %v2152_v12, %v2035_v34  ;;  %v2315_v38 = vpop.f32.mrf.mxu3  ;;  %v2628_v12 = vld [vmem:[#allocation3 + $0x2] ss:$2 sm:$0xff] }
 0x37d   :  { %2445 = vst.msk [vmem:[#allocation3 + $0x19] sm:$0xff] %vm149_vm11, %v2428_v32  ;;  %v1992_v6 = vpop.f32.mrf.mxu1  ;;  %5622 = vmatmul.msk.f32.vlgmr.msrb.gmra.mxu3 %vm149_vm11, %v2628_v12 }
 0x37e   :  { %v2361_v26 = vadd.f32 %v2315_v38, %v2198_v13  ;;  %v2036_v40 = vadd.f32 %v1992_v6, %v6931_v58 }
 0x380   :  { %v2381_v10 = vadd.f32 %v7132_v5, %v2361_v26 }
 0x382   :  { %vm2397_vm13 = vcmp.ge.f32.partialorder %v2381_v10, 0.0  ;;  %v2413_v1 = vmul.f32 0.01, %v2381_v10 }
 0x383   :  { %v2155_v8 = vpop.f32.mrf.mxu2 }
 0x384   :  { %v2429_v27 = vsel %vm2397_vm13, %v2381_v10, %v2413_v1  ;;  %v2199_v31 = vadd.f32 %v2155_v8, %v2036_v40  ;;  %v2318_v34 = vpop.f32.mrf.mxu3 }
 0x385   :  { %2446 = vst.msk [vmem:[#allocation3 + $0x31] sm:$0xff] %vm149_vm11, %v2429_v27  ;;  %v1995_v26 = vpop.f32.mrf.mxu1 }
 0x386   :  { %v2362_v32 = vadd.f32 %v2318_v34, %v2199_v31  ;;  %v2037_v10 = vadd.f32 %v1995_v26, %v6939_v59 }
 0x388   :  { %v2382_v58 = vadd.f32 %v7132_v5, %v2362_v32 }
 0x38a   :  { %vm2398_vm14 = vcmp.ge.f32.partialorder %v2382_v58, 0.0  ;;  %v2414_v1 = vmul.f32 0.01, %v2382_v58 }
 0x38b   :  { %v2158_v13 = vpop.f32.mrf.mxu2 }
 0x38c   :  { %v2430_v38 = vsel %vm2398_vm14, %v2382_v58, %v2414_v1  ;;  %v2200_v6 = vadd.f32 %v2158_v13, %v2037_v10  ;;  %v2321_v40 = vpop.f32.mrf.mxu3  ;;  %v2481_v8 = vld [vmem:[#allocation3 + $0x31] ss:$2 sm:$0xff]  ;;  %v2463_v27 = vld [vmem:[#allocation3 + $0x30] ss:$2 sm:$0xff]  ;;  %vm3306_vm14 = vcmask 261120  }
 0x38d   :  { %2447 = vst.msk [vmem:[#allocation3 + $0x49] sm:$0xff] %vm149_vm11, %v2430_v38  ;;  %v1998_v31 = vpop.f32.mrf.mxu1  ;;  %5605 = vmatmul.msk.f32.gmra.mxu1 %vm149_vm11, %v2481_v8  ;;  %5613 = vmatmul.msk.f32.gmra.mxu2 %vm149_vm11, %v2463_v27  ;;  %v2630_v59 = vld [vmem:[#allocation3 + $0x32] ss:$2 sm:$0xff] }
 0x38e   :  { %v2363_v34 = vadd.f32 %v2321_v40, %v2200_v6  ;;  %5623 = vmatmul.msk.f32.gmra.mxu3 %vm149_vm11, %v2630_v59  ;;  %v2038_v32 = vadd.f32 %v1998_v31, %v6947_v55 }
 0x390   :  { %v2383_v26 = vadd.f32 %v7132_v5, %v2363_v34 }
 0x392   :  { %vm2399_vm15 = vcmp.ge.f32.partialorder %v2383_v26, 0.0  ;;  %v2415_v12 = vmul.f32 0.01, %v2383_v26 }
 0x393   :  { %v2161_v58 = vpop.f32.mrf.mxu2 }
 0x394   :  { %v2431_v1 = vsel %vm2399_vm15, %v2383_v26, %v2415_v12  ;;  %v2201_v10 = vadd.f32 %v2161_v58, %v2038_v32  ;;  %v2324_v13 = vpop.f32.mrf.mxu3  ;;  %v5641_v12 = vld [vmem:[%s8760_s5 + $0x48] sm:$0xff]  ;;  %v5631_v32 = vld [vmem:[%s8760_s5 + $0x38] sm:$0xff] }
 0x395   :  { %2448 = vst.msk [vmem:[#allocation3 + $0x61] sm:$0xff] %vm149_vm11, %v2431_v1  ;;  %v2001_v38 = vpop.f32.mrf.mxu1  ;;  %2867 = vmatpush.msra.mxu2 %v5641_v12  ;;  %2775 = vmatpush.msra.mxu1 %v5631_v32 }
 0x396   :  { %v2364_v6 = vadd.f32 %v2324_v13, %v2201_v10  ;;  %v2039_v27 = vadd.f32 %v2001_v38, %v6964_v57  ;;  %v5651_v57 = vld [vmem:[%s8760_s5 + $0x58] sm:$0xff]  ;;  %v1213_v38 = vadd.f32 %v6829_v45, %v6824_v19  ;;  %v1216_v19 = vadd.f32 %v6849_v62, %v6839_v50 }
 0x397   :  { %2959 = vmatpush.msra.mxu3 %v5651_v57 }
 0x398   :  { %v2384_v40 = vadd.f32 %v7132_v5, %v2364_v6  ;;  %v1392_v50 = vadd.f32 %v6851_v3, %v1216_v19 }
 0x39a   :  { %vm2400_vm0 = vcmp.ge.f32.partialorder %v2384_v40, 0.0  ;;  %v2416_v8 = vmul.f32 0.01, %v2384_v40 }
 0x39b   :  { %v2164_v59 = vpop.f32.mrf.mxu2 }
 0x39c   :  { %v2432_v34 = vsel %vm2400_vm0, %v2384_v40, %v2416_v8  ;;  %v2202_v55 = vadd.f32 %v2164_v59, %v2039_v27  ;;  %v2327_v31 = vpop.f32.mrf.mxu3  ;;  %v2483_v36 = vld [vmem:[#allocation3 + $0x61] ss:$2 sm:$0xff]  ;;  %v2465_v14 = vld [vmem:[#allocation3 + $0x60] ss:$2 sm:$0xff]  ;;  %v1391_v59 = vadd.f32 %v6835_v48, %v1213_v38  ;;  %v2469_v38 = vld [vmem:[#allocation3 + $0xf0] ss:$2 sm:$0xff] }
 0x39d   :  { %v2632_v56 = vld [vmem:[#allocation3 + $0x62] ss:$2 sm:$0xff]  ;;  %2449 = vst.msk [vmem:[#allocation3 + $0x79] sm:$0xff] %vm149_vm11, %v2432_v34  ;;  %v2004_v26 = vpop.f32.mrf.mxu1  ;;  %5606 = vmatmul.msk.f32.gmra.mxu1 %vm149_vm11, %v2483_v36  ;;  %5614 = vmatmul.msk.f32.gmra.mxu2 %vm149_vm11, %v2465_v14 }
 0x39e   :  { %v2365_v58 = vadd.f32 %v2327_v31, %v2202_v55  ;;  %5624 = vmatmul.msk.f32.gmra.mxu3 %vm149_vm11, %v2632_v56  ;;  %v2040_v10 = vadd.f32 %v2004_v26, %v6972_v35  ;;  %v1553_v55 = vadd.f32 %v6978_v37, %v1391_v59 }
 0x3a0   :  { %v2385_v36 = vadd.f32 %v7132_v5, %v2365_v58  ;;  %v1716_v45 = vadd.f32 %v6986_v21, %v1553_v55  ;;  %v2487_v21 = vld [vmem:[#allocation3 + $0xf1] ss:$2 sm:$0xff] }
 0x3a2   :  { %vm2401_vm3 = vcmp.ge.f32.partialorder %v2385_v36, 0.0  ;;  %v2417_v1 = vmul.f32 0.01, %v2385_v36  ;;  %v1879_v62 = vadd.f32 %v6988_v25, %v1716_v45 }
 0x3a3   :  { %v2167_v13 = vpop.f32.mrf.mxu2 }
 0x3a4   :  { %v2433_v6 = vsel %vm2401_vm3, %v2385_v36, %v2417_v1  ;;  %v2203_v40 = vadd.f32 %v2167_v13, %v2040_v10  ;;  %v2330_v8 = vpop.f32.mrf.mxu3  ;;  %v1554_v1 = vadd.f32 %v6990_v2, %v1392_v50  ;;  %v1225_v50 = vadd.f32 %v6880_v41, %v6872_v30 }
 0x3a5   :  { %2450 = vst.msk [vmem:[#allocation3 + $0x91] sm:$0xff] %vm149_vm11, %v2433_v6  ;;  %v2007_v27 = vpop.f32.mrf.mxu1 }
 0x3a6   :  { %v2366_v56 = vadd.f32 %v2330_v8, %v2203_v40  ;;  %v2041_v35 = vadd.f32 %v2007_v27, %v6980_v20  ;;  %v2636_v40 = vld [vmem:[#allocation3 + $0xf2] ss:$2 sm:$0xff]  ;;  %v1219_v8 = vadd.f32 %v6859_v15, %v6854_v4  ;;  %v1717_v27 = vadd.f32 %v6997_v11, %v1554_v1 }
 0x3a8   :  { %v2386_v34 = vadd.f32 %v7132_v5, %v2366_v56  ;;  %v1880_v55 = vadd.f32 %v6999_v23, %v1717_v27  ;;  %v5640_v23 = vld [vmem:[%s8760_s5 + $0x40] sm:$0xff] }
 0x3a9   :  { %2868 = vmatpush.msra.mxu2 %v5640_v23 }
 0x3aa   :  { %vm2402_vm4 = vcmp.ge.f32.partialorder %v2386_v34, 0.0  ;;  %v2418_v31 = vmul.f32 0.01, %v2386_v34 }
 0x3ab   :  { %v2170_v14 = vpop.f32.mrf.mxu2 }
 0x3ac   :  { %v2434_v26 = vsel %vm2402_vm4, %v2386_v34, %v2418_v31  ;;  %v2204_v12 = vadd.f32 %v2170_v14, %v2041_v35  ;;  %v2333_v57 = vpop.f32.mrf.mxu3  ;;  %v2485_v32 = vld [vmem:[#allocation3 + $0x91] ss:$2 sm:$0xff]  ;;  %v2467_v58 = vld [vmem:[#allocation3 + $0x90] ss:$2 sm:$0xff]  ;;  %v1393_v34 = vadd.f32 %v6861_v16, %v1219_v8  ;;  %v1222_v14 = vadd.f32 %v6868_v28, %v6863_v17 }
 0x3ad   :  { %v2634_v48 = vld [vmem:[#allocation3 + $0x92] ss:$2 sm:$0xff]  ;;  %2451 = vst.msk [vmem:[#allocation3 + $0xa9] sm:$0xff] %vm149_vm11, %v2434_v26  ;;  %v2010_v36 = vpop.f32.mrf.mxu1  ;;  %5607 = vmatmul.msk.f32.gmra.mxu1 %vm149_vm11, %v2485_v32  ;;  %5615 = vmatmul.msk.f32.gmra.mxu2 %vm149_vm11, %v2467_v58 }
 0x3ae   :  { %v2367_v37 = vadd.f32 %v2333_v57, %v2204_v12  ;;  %5625 = vmatmul.msk.f32.gmra.mxu3 %vm149_vm11, %v2634_v48  ;;  %v2042_v13 = vadd.f32 %v2010_v36, %v1879_v62  ;;  %v1555_v15 = vadd.f32 %v7001_v63, %v1393_v34  ;;  %v5650_v63 = vld [vmem:[%s8760_s5 + $0x50] sm:$0xff] }
 0x3af   :  { %v5630_v17 = vld [vmem:[%s8760_s5 + $0x30] sm:$0xff]  ;;  %2960 = vmatpush.msra.mxu3 %v5650_v63 }
 0x3b0   :  { %v2387_v20 = vadd.f32 %v7132_v5, %v2367_v37  ;;  %v1718_v19 = vadd.f32 %v7007_v39, %v1555_v15  ;;  %2776 = vmatpush.msra.mxu1 %v5630_v17  ;;  %v1394_v39 = vadd.f32 %v6870_v29, %v1222_v14  ;;  %v5671_v14 = vld [vmem:[%s8760_s5 + $0x78] sm:$0xff] }
 0x3b1   :  { %3143 = vmatpush.msrb.mxu2 %v5671_v14 }
 0x3b2   :  { %vm2403_vm5 = vcmp.ge.f32.partialorder %v2387_v20, 0.0  ;;  %v2419_v10 = vmul.f32 0.01, %v2387_v20  ;;  %v1881_v57 = vadd.f32 %v7009_v44, %v1718_v19  ;;  %v1556_v58 = vadd.f32 %v7011_v46, %v1394_v39 }
 0x3b3   :  { %v2173_v6 = vpop.f32.mrf.mxu2 }
 0x3b4   :  { %v2435_v56 = vsel %vm2403_vm5, %v2387_v20, %v2419_v10  ;;  %v2205_v3 = vadd.f32 %v2173_v6, %v2042_v13  ;;  %v2336_v59 = vpop.f32.mrf.mxu3  ;;  %v1719_v62 = vadd.f32 %v7016_v0, %v1556_v58  ;;  %v1395_v10 = vadd.f32 %v6882_v42, %v1225_v50  ;;  %v2817_v14 = vld [vmem:[#allocation3 + $0xa9] ss:$2 sm:$0xff] }
 0x3b5   :  { %2452 = vst.msk [vmem:[#allocation3 + $0xc1] sm:$0xff] %vm149_vm11, %v2435_v56  ;;  %v2013_v25 = vpop.f32.mrf.mxu1  ;;  %5608 = vmatmul.msk.f32.gmra.mxu1 %vm149_vm11, %v2487_v21  ;;  %5616 = vmatmul.msk.f32.gmra.mxu2 %vm149_vm11, %v2469_v38  ;;  %v1228_v0 = vadd.f32 %v6889_v49, %v6884_v43 }
 0x3b6   :  { %v2368_v2 = vadd.f32 %v2336_v59, %v2205_v3  ;;  %5626 = vmatmul.msk.f32.gmra.mxu3 %vm149_vm11, %v2636_v40  ;;  %v2043_v31 = vadd.f32 %v2013_v25, %v1880_v55  ;;  %v1882_v46 = vadd.f32 %v7018_v47, %v1719_v62  ;;  %v1557_v38 = vadd.f32 %v7020_v33, %v1395_v10 }
 0x3b7   :  { %v1396_v43 = vadd.f32 %v6891_v51, %v1228_v0 }
 0x3b8   :  { %v2388_v4 = vadd.f32 %v7132_v5, %v2368_v2  ;;  %v1720_v40 = vadd.f32 %v7028_v53, %v1557_v38 }
 0x3b9   :  { %v1558_v25 = vadd.f32 %v7032_v9, %v1396_v43 }
 0x3ba   :  { %vm2404_vm6 = vcmp.ge.f32.partialorder %v2388_v4, 0.0  ;;  %v2420_v11 = vmul.f32 0.01, %v2388_v4  ;;  %v1883_v49 = vadd.f32 %v7030_v54, %v1720_v40  ;;  %v5694_v54 = vld [vmem:[%s8762_s7 + $0xa0] sm:$0xff] }
 0x3bb   :  { %v2176_v35 = vpop.f32.mrf.mxu2  ;;  %v1721_v15 = vadd.f32 %v7049_v22, %v1558_v25  ;;  %3373 = vmatpush.msrb.mxu0 %v5694_v54  ;;  %v2719_v25 = vld [vmem:[#allocation3 + $0x18] ss:$2 sm:$0xff] }
 0x3bc   :  { %v2436_v45 = vsel %vm2404_vm6, %v2388_v4, %v2420_v11  ;;  %v2206_v26 = vadd.f32 %v2176_v35, %v2043_v31  ;;  %v2339_v12 = vpop.f32.mrf.mxu3  ;;  %v1231_v4 = vadd.f32 %v6898_v60, %v6893_v52  ;;  %v5681_v52 = vld [vmem:[%s8760_s5 + $0x88] sm:$0xff]  ;;  %vm3355_vm6 = vcmask 1041409  }
 0x3bd   :  { %2453 = vst.msk [vmem:[#allocation3 + $0x109] sm:$0xff] %vm149_vm11, %v2436_v45  ;;  %v2016_v16 = vpop.f32.mrf.mxu1  ;;  %v5661_v60 = vld [vmem:[%s8760_s5 + $0x68] sm:$0xff]  ;;  %3235 = vmatpush.msrb.mxu3 %v5681_v52  ;;  %v1884_v19 = vadd.f32 %v7053_v7, %v1721_v15 }
 0x3be   :  { %v2369_v28 = vadd.f32 %v2339_v12, %v2206_v26  ;;  %v2044_v36 = vadd.f32 %v2016_v16, %v1881_v57  ;;  %v1397_v22 = vadd.f32 %v6900_v61, %v1231_v4  ;;  %3051 = vmatpush.msrb.mxu1 %v5661_v60  ;;  %v5660_v4 = vld [vmem:[%s8760_s5 + $0x60] sm:$0xff]  ;;  %v2721_v15 = vld [vmem:[#allocation3 + $0x48] ss:$2 sm:$0xff] }
 0x3bf   :  { %v2907_v54 = vld [vmem:[#allocation3 + $0x7a] ss:$2 sm:$0xff]  ;;  %v2909_v52 = vld [vmem:[#allocation3 + $0xaa] ss:$2 sm:$0xff] }
 0x3c0   :  { %v2389_v32 = vadd.f32 %v7132_v5, %v2369_v28  ;;  %v1559_v26 = vadd.f32 %v7057_v24, %v1397_v22  ;;  %v8772_v24 = vld [vmem:[#allocation9_spill] sm:$0xff]  ;;  %3052 = vmatpush.msrb.mxu1 %v5660_v4 }
 0x3c2   :  { %vm2405_vm7 = vcmp.ge.f32.partialorder %v2389_v32, 0.0  ;;  %v2421_v48 = vmul.f32 0.01, %v2389_v32  ;;  %v1722_v63 = vadd.f32 %v7083_v18, %v1559_v26 }
 0x3c3   :  { %v2179_v37 = vpop.f32.mrf.mxu2 }
 0x3c4   :  { %v2437_v20 = vsel %vm2405_vm7, %v2389_v32, %v2421_v48  ;;  %v2207_v21 = vadd.f32 %v2179_v37, %v2044_v36  ;;  %v2342_v1 = vpop.f32.mrf.mxu3  ;;  %v1885_v48 = vadd.f32 %v8772_v24, %v1722_v63  ;;  %v8773_v36 = vld [vmem:[#allocation8_spill] sm:$0xff]  ;;  %v8774_v37 = vld [vmem:[#allocation10_spill] sm:$0xff] }
 0x3c5   :  { %2454 = vst.msk [vmem:[#allocation3 + $0x121] sm:$0xff] %vm149_vm11, %v2437_v20  ;;  %v2019_v29 = vpop.f32.mrf.mxu1  ;;  %v1560_v50 = vadd.f32 %v8774_v37, %v8773_v36  ;;  %v2727_v60 = vld [vmem:[#allocation3 + $0x108] ss:$2 sm:$0xff]  ;;  %v2819_v22 = vld [vmem:[#allocation3 + $0x109] ss:$2 sm:$0xff] }
 0x3c6   :  { %v2370_v44 = vadd.f32 %v2342_v1, %v2207_v21  ;;  %v2045_v30 = vadd.f32 %v2019_v29, %v1882_v46  ;;  %v8775_v1 = vld [vmem:[#allocation11_spill] sm:$0xff]  ;;  %v3181_v37 = vld [vmem:[#allocation3 + $0x62] ss:$2 sm:$0xff] }
 0x3c7   :  { %v1723_v29 = vadd.f32 %v8775_v1, %v1560_v50  ;;  %v3179_v24 = vld [vmem:[#allocation3 + $0x32] ss:$2 sm:$0xff]  ;;  %v3089_v36 = vld [vmem:[#allocation3 + $0x61] ss:$2 sm:$0xff]  ;;  %v3091_v1 = vld [vmem:[#allocation3 + $0x91] ss:$2 sm:$0xff] }
 0x3c8   :  { %v2390_v13 = vadd.f32 %v7132_v5, %v2370_v44 }
 0x3ca   :  { %vm2406_vm8 = vcmp.ge.f32.partialorder %v2390_v13, 0.0  ;;  %v2422_v6 = vmul.f32 0.01, %v2390_v13 }
 0x3cb   :  { %v2182_v41 = vpop.f32.mrf.mxu2 }
 0x3cc   :  { %v2438_v8 = vsel %vm2406_vm8, %v2390_v13, %v2422_v6  ;;  %v2208_v27 = vadd.f32 %v2182_v41, %v2045_v30  ;;  %v2345_v56 = vpop.f32.mrf.mxu3  ;;  %v2489_v3 = vld [vmem:[#allocation3 + $0x121] ss:$2 sm:$0xff]  ;;  %v2471_v42 = vld [vmem:[#allocation3 + $0x120] ss:$2 sm:$0xff] }
 0x3cd   :  { %v2638_v59 = vld [vmem:[#allocation3 + $0x122] ss:$2 sm:$0xff]  ;;  %2455 = vst.msk [vmem:[#allocation3 + $0x139] sm:$0xff] %vm149_vm11, %v2438_v8  ;;  %v2022_v47 = vpop.f32.mrf.mxu1  ;;  %5609 = vmatmul.msk.f32.gmra.mxu1 %vm149_vm11, %v2489_v3  ;;  %5617 = vmatmul.msk.f32.gmra.mxu2 %vm149_vm11, %v2471_v42 }
 0x3ce   :  { %v2371_v33 = vadd.f32 %v2345_v56, %v2208_v27  ;;  %5627 = vmatmul.msk.f32.gmra.mxu3 %vm149_vm11, %v2638_v59  ;;  %v2046_v34 = vadd.f32 %v2022_v47, %v1883_v49  ;;  %v8776_v6 = vld [vmem:[#allocation12_spill] sm:$0xff] }
 0x3cf   :  { %v1886_v30 = vadd.f32 %v8776_v6, %v1723_v29  ;;  %v3183_v29 = vld [vmem:[#allocation3 + $0x92] ss:$2 sm:$0xff]  ;;  %v3185_v6 = vld [vmem:[#allocation3 + $0xc2] ss:$2 sm:$0xff] }
 0x3d0   :  { %v2391_v53 = vadd.f32 %v7132_v5, %v2371_v33 }
 0x3d2   :  { %vm2407_vm9 = vcmp.ge.f32.partialorder %v2391_v53, 0.0  ;;  %v2423_v2 = vmul.f32 0.01, %v2391_v53 }
 0x3d3   :  { %v2185_v55 = vpop.f32.mrf.mxu2 }
 0x3d4   :  { %v2439_v11 = vsel %vm2407_vm9, %v2391_v53, %v2423_v2  ;;  %v2209_v31 = vadd.f32 %v2185_v55, %v2046_v34  ;;  %v2348_v35 = vpop.f32.mrf.mxu3  ;;  %v2811_v2 = vld [vmem:[#allocation3 + $0x19] ss:$2 sm:$0xff]  ;;  %v2903_v34 = vld [vmem:[#allocation3 + $0x1a] ss:$2 sm:$0xff]  ;;  %v5670_v55 = vld [vmem:[%s8760_s5 + $0x70] sm:$0xff] }
 0x3d5   :  { %2456 = vst.msk [vmem:[#allocation3 + $0x151] sm:$0xff] %vm149_vm11, %v2439_v11  ;;  %v2025_v51 = vpop.f32.mrf.mxu1  ;;  %3144 = vmatpush.msrb.mxu2 %v5670_v55  ;;  %v2813_v11 = vld [vmem:[#allocation3 + $0x49] ss:$2 sm:$0xff]  ;;  %v2821_v26 = vld [vmem:[#allocation3 + $0x139] ss:$2 sm:$0xff] }
 0x3d6   :  { %v2372_v9 = vadd.f32 %v2348_v35, %v2209_v31  ;;  %v2047_v16 = vadd.f32 %v2025_v51, %v1884_v19  ;;  %v2905_v31 = vld [vmem:[#allocation3 + $0x4a] ss:$2 sm:$0xff]  ;;  %v2815_v51 = vld [vmem:[#allocation3 + $0x79] ss:$2 sm:$0xff] }
 0x3d7   :  { %v2723_v35 = vld [vmem:[#allocation3 + $0x78] ss:$2 sm:$0xff] }
 0x3d8   :  { %v2392_v45 = vadd.f32 %v7132_v5, %v2372_v9  ;;  %v2725_v9 = vld [vmem:[#allocation3 + $0xa8] ss:$2 sm:$0xff] }
 0x3d9   :  { %v2911_v19 = vld [vmem:[#allocation3 + $0x10a] ss:$2 sm:$0xff] }
 0x3da   :  { %vm2408_vm1 = vcmp.ge.f32.partialorder %v2392_v45, 0.0  ;;  %v2424_v12 = vmul.f32 0.01, %v2392_v45 }
 0x3db   :  { %v2188_v23 = vpop.f32.mrf.mxu2 }
 0x3dc   :  { %v2440_v17 = vsel %vm2408_vm1, %v2392_v45, %v2424_v12  ;;  %v2210_v28 = vadd.f32 %v2188_v23, %v2047_v16  ;;  %v2351_v39 = vpop.f32.mrf.mxu3  ;;  %v2491_v57 = vld [vmem:[#allocation3 + $0x151] ss:$2 sm:$0xff]  ;;  %v2473_v32 = vld [vmem:[#allocation3 + $0x150] ss:$2 sm:$0xff] }
 0x3dd   :  { %v2640_v58 = vld [vmem:[#allocation3 + $0x152] ss:$2 sm:$0xff]  ;;  %2457 = vst.msk [vmem:[#allocation3 + $0x169] sm:$0xff] %vm149_vm11, %v2440_v17  ;;  %v2028_v61 = vpop.f32.mrf.mxu1  ;;  %5610 = vmatmul.msk.f32.gmra.mxu1 %vm149_vm11, %v2491_v57  ;;  %5618 = vmatmul.msk.f32.gmra.mxu2 %vm149_vm11, %v2473_v32 }
 0x3de   :  { %v2373_v7 = vadd.f32 %v2351_v39, %v2210_v28  ;;  %5628 = vmatmul.msk.f32.gmra.mxu3 %vm149_vm11, %v2640_v58  ;;  %v2048_v20 = vadd.f32 %v2028_v61, %v1885_v48  ;;  %v2729_v45 = vld [vmem:[#allocation3 + $0x138] ss:$2 sm:$0xff]  ;;  %v3087_v61 = vld [vmem:[#allocation3 + $0x31] ss:$2 sm:$0xff] }
 0x3df   :  { %v2913_v12 = vld [vmem:[#allocation3 + $0x13a] ss:$2 sm:$0xff] }
 0x3e0   :  { %v2393_v18 = vadd.f32 %v7132_v5, %v2373_v7  ;;  %v2995_v58 = vld [vmem:[#allocation3 + $0x30] ss:$2 sm:$0xff] }
 0x3e2   :  { %vm2409_vm10 = vcmp.ge.f32.partialorder %v2393_v18, 0.0  ;;  %v2425_v62 = vmul.f32 0.01, %v2393_v18 }
 0x3e3   :  { %v2191_v21 = vpop.f32.mrf.mxu2 }
 0x3e4   :  { %v2441_v44 = vsel %vm2409_vm10, %v2393_v18, %v2425_v62  ;;  %v2211_v10 = vadd.f32 %v2191_v21, %v2048_v20  ;;  %v2354_v46 = vpop.f32.mrf.mxu3  ;;  %v2731_v16 = vld [vmem:[#allocation3 + $0x168] ss:$2 sm:$0xff]  ;;  %v2823_v23 = vld [vmem:[#allocation3 + $0x169] ss:$2 sm:$0xff] }
 0x3e5   :  { %2458 = vst.msk [vmem:[#allocation3 + $0x181] sm:$0xff] %vm149_vm11, %v2441_v44  ;;  %v2031_v38 = vpop.f32.mrf.mxu1  ;;  %v2915_v63 = vld [vmem:[#allocation3 + $0x16a] ss:$2 sm:$0xff] }
 0x3e6   :  { %v2374_v13 = vadd.f32 %v2354_v46, %v2211_v10  ;;  %v2049_v40 = vadd.f32 %v2031_v38, %v1886_v30  ;;  %v2997_v18 = vld [vmem:[#allocation3 + $0x60] ss:$2 sm:$0xff]  ;;  %v2999_v21 = vld [vmem:[#allocation3 + $0x90] ss:$2 sm:$0xff]  ;;  %v3093_v38 = vld [vmem:[#allocation3 + $0xc1] ss:$2 sm:$0xff] }
 0x3e8   :  { %v2394_v41 = vadd.f32 %v7132_v5, %v2374_v13  ;;  %v3001_v13 = vld [vmem:[#allocation3 + $0xc0] ss:$2 sm:$0xff] }
 0x3ea   :  { %vm2410_vm2 = vcmp.ge.f32.partialorder %v2394_v41, 0.0  ;;  %v2426_v0 = vmul.f32 0.01, %v2394_v41 }
 0x3eb   :  { %v2194_v8 = vpop.f32.mrf.mxu2 }
 0x3ec   :  { %v2442_v27 = vsel %vm2410_vm2, %v2394_v41, %v2426_v0  ;;  %v2212_v56 = vadd.f32 %v2194_v8, %v2049_v40  ;;  %v2357_v3 = vpop.f32.mrf.mxu3  ;;  %v2493_v42 = vld [vmem:[#allocation3 + $0x181] ss:$2 sm:$0xff]  ;;  %v2475_v59 = vld [vmem:[#allocation3 + $0x180] ss:$2 sm:$0xff] }
 0x3ed   :  { %v2642_v47 = vld [vmem:[#allocation3 + $0x182] ss:$2 sm:$0xff]  ;;  %2459 = vst.msk [vmem:[#allocation3 + $0x199] sm:$0xff] %vm149_vm11, %v2442_v27  ;;  %5611 = vmatmul.msk.f32.gmra.mxu1 %vm149_vm11, %v2493_v42  ;;  %5619 = vmatmul.msk.f32.gmra.mxu2 %vm149_vm11, %v2475_v59  ;;  %v7353_v57 = vpop.f32.mrf.mxu1  ;;  %v3095_v27 = vld [vmem:[#allocation3 + $0x121] ss:$2 sm:$0xff] }
 0x3ee   :  { %v2375_v33 = vadd.f32 %v2357_v3, %v2212_v56  ;;  %5629 = vmatmul.msk.f32.gmra.mxu3 %vm149_vm11, %v2642_v47  ;;  %v5690_v41 = vld [vmem:[%s8762_s7 + $0x80] sm:$0xff]  ;;  %v3005_v47 = vld [vmem:[#allocation3 + $0x150] ss:$2 sm:$0xff] }
 0x3ef   :  { %3374 = vmatpush.msrb.mxu0 %v5690_v41  ;;  %v3003_v8 = vld [vmem:[#allocation3 + $0x120] ss:$2 sm:$0xff] }
 0x3f0   :  { %v2395_v43 = vadd.f32 %v7132_v5, %v2375_v33  ;;  %v5680_v5 = vld [vmem:[%s8760_s5 + $0x80] sm:$0xff]  ;;  %v3097_v33 = vld [vmem:[#allocation3 + $0x151] ss:$2 sm:$0xff] }
 0x3f1   :  { %3236 = vmatpush.msrb.mxu3 %v5680_v5  ;;  %v3187_v56 = vld [vmem:[#allocation3 + $0x122] ss:$2 sm:$0xff] }
 0x3f2   :  { %vm2411_vm13 = vcmp.ge.f32.partialorder %v2395_v43, 0.0  ;;  %v2427_v49 = vmul.f32 0.01, %v2395_v43  ;;  %v3191_v55 = vld [vmem:[#allocation3 + $0x182] ss:$2 sm:$0xff] }
 0x3f3   :  { %v7356_v32 = vpop.f32.mrf.mxu2 }
 0x3f4   :  { %v2443_v53 = vsel %vm2411_vm13, %v2395_v43, %v2427_v49  ;;  %v2733_v17 = vld [vmem:[#allocation3 + $0x198] ss:$2 sm:$0xff]  ;;  %v2825_v28 = vld [vmem:[#allocation3 + $0x199] ss:$2 sm:$0xff] }
 0x3f5   :  { %2460 = vst.msk [vmem:[#allocation3 + $0x1b1] sm:$0xff] %vm149_vm11, %v2443_v53  ;;  %5632 = vmatmul.msk.f32.vlgmr.msra.gmra.mxu1 %vm149_vm11, %v2719_v25  ;;  %5642 = vmatmul.msk.f32.vlgmr.msra.gmra.mxu2 %vm149_vm11, %v2811_v2  ;;  %v2917_v39 = vld [vmem:[#allocation3 + $0x19a] ss:$2 sm:$0xff] }
 0x3f6   :  { %5652 = vmatmul.msk.f32.vlgmr.msra.gmra.mxu3 %vm149_vm11, %v2903_v34  ;;  %v3189_v43 = vld [vmem:[#allocation3 + $0x152] ss:$2 sm:$0xff]  ;;  %v3099_v34 = vld [vmem:[#allocation3 + $0x181] ss:$2 sm:$0xff] }
 0x3f7   :  { %v3007_v2 = vld [vmem:[#allocation3 + $0x180] ss:$2 sm:$0xff] }
 0x3fd   :  { %5633 = vmatmul.msk.f32.gmra.mxu1 %vm149_vm11, %v2721_v15  ;;  %5643 = vmatmul.msk.f32.gmra.mxu2 %vm149_vm11, %v2813_v11  ;;  %v3009_v11 = vld [vmem:[#allocation3 + $0x1b0] ss:$2 sm:$0xff] }
 0x3fe   :  { %5653 = vmatmul.msk.f32.gmra.mxu3 %vm149_vm11, %v2905_v31  ;;  %v3101_v31 = vld [vmem:[#allocation3 + $0x1b1] ss:$2 sm:$0xff] }
 0x400   :  { %v7358_v7 = vpop.f32.mrf.mxu3 }
 0x405   :  { %5634 = vmatmul.msk.f32.gmra.mxu1 %vm149_vm11, %v2723_v35  ;;  %5644 = vmatmul.msk.f32.gmra.mxu2 %vm149_vm11, %v2815_v51  ;;  %v3193_v35 = vld [vmem:[#allocation3 + $0x1b2] ss:$2 sm:$0xff] }
 0x406   :  { %5654 = vmatmul.msk.f32.gmra.mxu3 %vm149_vm11, %v2907_v54 }
 0x40a   :  { %v7363_v48 = vpop.f32.mrf.mxu1 }
 0x40d   :  { %5635 = vmatmul.msk.f32.gmra.mxu1 %vm149_vm11, %v2725_v9  ;;  %5645 = vmatmul.msk.f32.gmra.mxu2 %vm149_vm11, %v2817_v14 }
 0x40e   :  { %5655 = vmatmul.msk.f32.gmra.mxu3 %vm149_vm11, %v2909_v52 }
 0x410   :  { %v7367_v50 = vpop.f32.mrf.mxu2 }
 0x411   :  { %v7370_v62 = vpop.f32.mrf.mxu3 }
 0x415   :  { %5636 = vmatmul.msk.f32.gmra.mxu1 %vm149_vm11, %v2727_v60  ;;  %5646 = vmatmul.msk.f32.gmra.mxu2 %vm149_vm11, %v2819_v22 }
 0x416   :  { %5656 = vmatmul.msk.f32.gmra.mxu3 %vm149_vm11, %v2911_v19 }
 0x41a   :  { %v7372_v20 = vpop.f32.mrf.mxu1 }
 0x41d   :  { %5637 = vmatmul.msk.f32.gmra.mxu1 %vm149_vm11, %v2729_v45  ;;  %5647 = vmatmul.msk.f32.gmra.mxu2 %vm149_vm11, %v2821_v26 }
 0x41e   :  { %5657 = vmatmul.msk.f32.gmra.mxu3 %vm149_vm11, %v2913_v12 }
 0x420   :  { %v7376_v44 = vpop.f32.mrf.mxu2 }
 0x421   :  { %v7379_v10 = vpop.f32.mrf.mxu3 }
 0x425   :  { %5638 = vmatmul.msk.f32.gmra.mxu1 %vm149_vm11, %v2731_v16  ;;  %5648 = vmatmul.msk.f32.gmra.mxu2 %vm149_vm11, %v2823_v23 }
 0x426   :  { %5658 = vmatmul.msk.f32.gmra.mxu3 %vm149_vm11, %v2915_v63 }
 0x42a   :  { %v7381_v46 = vpop.f32.mrf.mxu1 }
 0x42d   :  { %5639 = vmatmul.msk.f32.gmra.mxu1 %vm149_vm11, %v2733_v17  ;;  %5649 = vmatmul.msk.f32.gmra.mxu2 %vm149_vm11, %v2825_v28 }
 0x42e   :  { %5659 = vmatmul.msk.f32.gmra.mxu3 %vm149_vm11, %v2917_v39 }
 0x430   :  { %v7385_v30 = vpop.f32.mrf.mxu2 }
 0x431   :  { %v7391_v0 = vpop.f32.mrf.mxu3 }
 0x432   :  { %v7393_v40 = vpop.f32.mrf.mxu1 }
 0x435   :  { %5662 = vmatmul.msk.f32.vlgmr.msrb.gmra.mxu1 %vm149_vm11, %v2995_v58  ;;  %5672 = vmatmul.msk.f32.vlgmr.msrb.gmra.mxu2 %vm149_vm11, %v3087_v61 }
 0x436   :  { %5682 = vmatmul.msk.f32.vlgmr.msrb.gmra.mxu3 %vm149_vm11, %v3179_v24 }
 0x438   :  { %v7397_v3 = vpop.f32.mrf.mxu2 }
 0x439   :  { %v7400_v42 = vpop.f32.mrf.mxu3 }
 0x43d   :  { %5663 = vmatmul.msk.f32.gmra.mxu1 %vm149_vm11, %v2997_v18  ;;  %5673 = vmatmul.msk.f32.gmra.mxu2 %vm149_vm11, %v3089_v36 }
 0x43e   :  { %5683 = vmatmul.msk.f32.gmra.mxu3 %vm149_vm11, %v3181_v37  ;;  %v2604_v37 = vadd.f32 %v7356_v32, %v7353_v57 }
 0x445   :  { %5664 = vmatmul.msk.f32.gmra.mxu1 %vm149_vm11, %v2999_v21  ;;  %5674 = vmatmul.msk.f32.gmra.mxu2 %vm149_vm11, %v3091_v1 }
 0x446   :  { %5684 = vmatmul.msk.f32.gmra.mxu3 %vm149_vm11, %v3183_v29  ;;  %v2711_v29 = vadd.f32 %v7358_v7, %v2604_v37 }
 0x44a   :  { %v7402_v59 = vpop.f32.mrf.mxu1 }
 0x44d   :  { %5665 = vmatmul.msk.f32.gmra.mxu1 %vm149_vm11, %v3001_v13  ;;  %5675 = vmatmul.msk.f32.gmra.mxu2 %vm149_vm11, %v3093_v38 }
 0x44e   :  { %5685 = vmatmul.msk.f32.gmra.mxu3 %vm149_vm11, %v3185_v6  ;;  %v2607_v6 = vadd.f32 %v7367_v50, %v7363_v48  ;;  %v7466_v48 = vld [vmem:[%s8761_s6] ss:$0 sm:$0xff] }
 0x450   :  { %v7407_v49 = vpop.f32.mrf.mxu2 }
 0x451   :  { %v7409_v53 = vpop.f32.mrf.mxu3 }
 0x455   :  { %5666 = vmatmul.msk.f32.gmra.mxu1 %vm149_vm11, %v3003_v8  ;;  %5676 = vmatmul.msk.f32.gmra.mxu2 %vm149_vm11, %v3095_v27 }
 0x456   :  { %5686 = vmatmul.msk.f32.gmra.mxu3 %vm149_vm11, %v3187_v56  ;;  %v2712_v56 = vadd.f32 %v7370_v62, %v2607_v6 }
 0x45a   :  { %v7411_v25 = vpop.f32.mrf.mxu1 }
 0x45d   :  { %5667 = vmatmul.msk.f32.gmra.mxu1 %vm149_vm11, %v3005_v47  ;;  %5677 = vmatmul.msk.f32.gmra.mxu2 %vm149_vm11, %v3097_v33  ;;  %v2610_v33 = vadd.f32 %v7376_v44, %v7372_v20 }
 0x45e   :  { %5687 = vmatmul.msk.f32.gmra.mxu3 %vm149_vm11, %v3189_v43 }
 0x460   :  { %v7416_v5 = vpop.f32.mrf.mxu2 }
 0x461   :  { %v7418_v4 = vpop.f32.mrf.mxu3 }
 0x465   :  { %5668 = vmatmul.msk.f32.gmra.mxu1 %vm149_vm11, %v3007_v2  ;;  %5678 = vmatmul.msk.f32.gmra.mxu2 %vm149_vm11, %v3099_v34 }
 0x466   :  { %5688 = vmatmul.msk.f32.gmra.mxu3 %vm149_vm11, %v3191_v55 }
 0x46a   :  { %v7420_v15 = vpop.f32.mrf.mxu1 }
 0x46d   :  { %5669 = vmatmul.msk.f32.gmra.mxu1 %vm149_vm11, %v3009_v11  ;;  %5679 = vmatmul.msk.f32.gmra.mxu2 %vm149_vm11, %v3101_v31  ;;  %v2713_v11 = vadd.f32 %v7379_v10, %v2610_v33  ;;  %v5727_v10 = vld [vmem:[%s8762_s7 + $0x168] sm:$0xff] }
 0x46e   :  { %5689 = vmatmul.msk.f32.gmra.mxu3 %vm149_vm11, %v3193_v35  ;;  %3582 = vmatpush.msra.mxu2 %v5727_v10 }
 0x470   :  { %v7425_v51 = vpop.f32.mrf.mxu2 }
 0x471   :  { %v7427_v54 = vpop.f32.mrf.mxu3 }
 0x472   :  { %v2778_v9 = vpop.f32.mrf.mxu1 }
 0x473   :  { %v2802_v13 = vadd.f32 %v2778_v9, %v2711_v29 }
 0x478   :  { %v2870_v14 = vpop.f32.mrf.mxu2 }
 0x479   :  { %v2962_v52 = vpop.f32.mrf.mxu3  ;;  %v2894_v41 = vadd.f32 %v2870_v14, %v2802_v13  ;;  %v2613_v14 = vadd.f32 %v7385_v30, %v7381_v46 }
 0x47a   :  { %v2781_v60 = vpop.f32.mrf.mxu1 }
 0x47b   :  { %v2986_v47 = vadd.f32 %v2962_v52, %v2894_v41  ;;  %v2803_v57 = vadd.f32 %v2781_v60, %v2712_v56  ;;  %v2714_v46 = vadd.f32 %v7391_v0, %v2613_v14  ;;  %v2616_v56 = vadd.f32 %v7397_v3, %v7393_v40  ;;  %v5726_v0 = vld [vmem:[%s8762_s7 + $0x160] sm:$0xff] }
 0x47c   :  { %3562 = vmatpush.msra.mxu1 %v5726_v0  ;;  %v5734_v0 = vld [vmem:[%s8762_s7 + $0x180] sm:$0xff] }
 0x480   :  { %v2873_v22 = vpop.f32.mrf.mxu2 }
 0x481   :  { %v2965_v19 = vpop.f32.mrf.mxu3  ;;  %v2895_v7 = vadd.f32 %v2873_v22, %v2803_v57 }
 0x482   :  { %v2784_v45 = vpop.f32.mrf.mxu1 }
 0x483   :  { %v2987_v62 = vadd.f32 %v2965_v19, %v2895_v7  ;;  %v2804_v35 = vadd.f32 %v2784_v45, %v2713_v11  ;;  %v5728_v19 = vld [vmem:[%s8762_s7 + $0x170] sm:$0xff] }
 0x484   :  { %3602 = vmatpush.msra.mxu3 %v5728_v19 }
 0x488   :  { %v2876_v26 = vpop.f32.mrf.mxu2 }
 0x489   :  { %v2968_v12 = vpop.f32.mrf.mxu3  ;;  %v2896_v52 = vadd.f32 %v2876_v26, %v2804_v35  ;;  %v5719_v35 = vld [vmem:[%s8762_s7 + $0x128] sm:$0xff] }
 0x48a   :  { %v2787_v16 = vpop.f32.mrf.mxu1 }
 0x48b   :  { %v2988_v30 = vadd.f32 %v2968_v12, %v2896_v52  ;;  %v2805_v13 = vadd.f32 %v2787_v16, %v2714_v46  ;;  %v2715_v16 = vadd.f32 %v7400_v42, %v2616_v56  ;;  %v5699_v46 = vld [vmem:[%s8762_s7 + $0xc8] sm:$0xff]  ;;  %v5742_v56 = vld [vmem:[%s8762_s7 + $0x1c0] sm:$0xff] }
 0x490   :  { %v2879_v23 = vpop.f32.mrf.mxu2 }
 0x491   :  { %v7429_v63 = vpop.f32.mrf.mxu3 }
 0x492   :  { %v7431_v17 = vpop.f32.mrf.mxu1 }
 0x493   :  { %v2806_v40 = vadd.f32 %v7431_v17, %v2715_v16  ;;  %v5723_v17 = vld [vmem:[%s8762_s7 + $0x148] sm:$0xff] }
 0x494   :  { %3583 = vmatpush.msra.mxu2 %v5723_v17 }
 0x496   :  { %3584 = vmatpush.msra.mxu2 %v5719_v35 }
 0x498   :  { %v7433_v28 = vpop.f32.mrf.mxu2 }
 0x499   :  { %v7435_v39 = vpop.f32.mrf.mxu3 }
 0x49a   :  { %v7437_v58 = vpop.f32.mrf.mxu1 }
 0x4a0   :  { %v7439_v61 = vpop.f32.mrf.mxu2 }
 0x4a1   :  { %v7441_v24 = vpop.f32.mrf.mxu3 }
 0x4a2   :  { %v7443_v18 = vpop.f32.mrf.mxu1 }
 0x4a8   :  { %v7445_v36 = vpop.f32.mrf.mxu2 }
 0x4a9   :  { %v7449_v21 = vpop.f32.mrf.mxu3 }
 0x4aa   :  { %v7451_v1 = vpop.f32.mrf.mxu1 }
 0x4b0   :  { %v7454_v38 = vpop.f32.mrf.mxu2 }
 0x4b1   :  { %v7458_v8 = vpop.f32.mrf.mxu3 }
 0x4b2   :  { %v3054_v27 = vpop.f32.mrf.mxu1 }
 0x4b3   :  { %v3078_v32 = vadd.f32 %v3054_v27, %v2986_v47  ;;  %v2897_v47 = vadd.f32 %v2879_v23, %v2805_v13 }
 0x4b5   :  { %v2989_v7 = vadd.f32 %v7429_v63, %v2897_v47  ;;  %v5722_v63 = vld [vmem:[%s8762_s7 + $0x140] sm:$0xff]  ;;  %v5695_v47 = vld [vmem:[%s8762_s7 + $0xa8] sm:$0xff] }
 0x4b6   :  { %3563 = vmatpush.msra.mxu1 %v5722_v63 }
 0x4b8   :  { %v3146_v43 = vpop.f32.mrf.mxu2 }
 0x4b9   :  { %v3170_v2 = vadd.f32 %v3146_v43, %v3078_v32  ;;  %v3238_v34 = vpop.f32.mrf.mxu3 }
 0x4ba   :  { %v3057_v50 = vpop.f32.mrf.mxu1 }
 0x4bb   :  { %v3262_v55 = vadd.f32 %v3238_v34, %v3170_v2  ;;  %v3079_v20 = vadd.f32 %v3057_v50, %v2987_v62  ;;  %v2619_v50 = vadd.f32 %v7407_v49, %v7402_v59  ;;  %v5724_v59 = vld [vmem:[%s8762_s7 + $0x150] sm:$0xff] }
 0x4bc   :  { %3603 = vmatpush.msra.mxu3 %v5724_v59 }
 0x4bd   :  { %v3274_v31 = vadd.f32 %v7466_v48, %v3262_v55  ;;  %v2898_v55 = vadd.f32 %v7433_v28, %v2806_v40  ;;  %v5718_v28 = vld [vmem:[%s8762_s7 + $0x120] sm:$0xff]  ;;  %v2716_v14 = vadd.f32 %v7409_v53, %v2619_v50  ;;  %v5747_v53 = vld [vmem:[%s8762_s7 + $0x1e8] sm:$0xff]  ;;  %v5736_v40 = vld [vmem:[%s8762_s7 + $0x190] sm:$0xff] }
 0x4be   :  { %3564 = vmatpush.msra.mxu1 %v5718_v28 }
 0x4bf   :  { %vm3282_vm11 = vcmp.ge.f32.partialorder %v3274_v31, 0.0  ;;  %v3290_v9 = vmul.f32 0.01, %v3274_v31  ;;  %v2990_v52 = vadd.f32 %v7435_v39, %v2898_v55  ;;  %v5748_v39 = vld [vmem:[%s8762_s7 + $0x1f0] sm:$0xff]  ;;  %v2807_v10 = vadd.f32 %v7437_v58, %v2716_v14 }
 0x4c0   :  { %v3149_v44 = vpop.f32.mrf.mxu2 }
 0x4c1   :  { %v3298_v60 = vsel %vm3282_vm11, %v3274_v31, %v3290_v9  ;;  %v3171_v22 = vadd.f32 %v3149_v44, %v3079_v20  ;;  %v3241_v37 = vpop.f32.mrf.mxu3  ;;  %v5720_v9 = vld [vmem:[%s8762_s7 + $0x130] sm:$0xff]  ;;  %v5714_v20 = vld [vmem:[%s8762_s7 + $0x100] sm:$0xff]  ;;  %v5715_v44 = vld [vmem:[%s8762_s7 + $0x108] sm:$0xff]  ;;  %v2899_v13 = vadd.f32 %v7439_v61, %v2807_v10 }
 0x4c2   :  { %3307 = vst.msk [vmem:[#allocation4] sm:$0xff] %vm3306_vm14, %v3298_v60  ;;  %v3060_v29 = vpop.f32.mrf.mxu1  ;;  %3604 = vmatpush.msra.mxu3 %v5720_v9  ;;  %3565 = vmatpush.msra.mxu1 %v5714_v20 }
 0x4c3   :  { %v3263_v45 = vadd.f32 %v3241_v37, %v3171_v22  ;;  %v3080_v41 = vadd.f32 %v3060_v29, %v2988_v30  ;;  %v5716_v22 = vld [vmem:[%s8762_s7 + $0x110] sm:$0xff]  ;;  %v5703_v37 = vld [vmem:[%s8762_s7 + $0xe8] sm:$0xff]  ;;  %v5746_v29 = vld [vmem:[%s8762_s7 + $0x1e0] sm:$0xff]  ;;  %3585 = vmatpush.msra.mxu2 %v5715_v44  ;;  %v2622_v30 = vadd.f32 %v7416_v5, %v7411_v25  ;;  %v2991_v16 = vadd.f32 %v7441_v24, %v2899_v13 }
 0x4c4   :  { %3391 = vmatpush.msra.mxu0 %v5703_v37  ;;  %3605 = vmatpush.msra.mxu3 %v5716_v22  ;;  %v5743_v25 = vld [vmem:[%s8762_s7 + $0x1c8] sm:$0xff]  ;;  %v5744_v5 = vld [vmem:[%s8762_s7 + $0x1d0] sm:$0xff] }
 0x4c5   :  { %v3275_v26 = vadd.f32 %v7466_v48, %v3263_v45  ;;  %3671 = vmatpush.msrb.mxu1 %v5746_v29  ;;  %3691 = vmatpush.msrb.mxu2 %v5747_v53  ;;  %v5766_v29 = vld [vmem:[%s8762_s7 + $0x260] sm:$0xff]  ;;  %v5763_v13 = vld [vmem:[%s8762_s7 + $0x248] sm:$0xff] }
 0x4c6   :  { %3711 = vmatpush.msrb.mxu3 %v5748_v39  ;;  %3392 = vmatpush.msra.mxu0 %v5699_v46  ;;  %v5762_v46 = vld [vmem:[%s8762_s7 + $0x240] sm:$0xff] }
 0x4c7   :  { %vm3283_vm15 = vcmp.ge.f32.partialorder %v3275_v26, 0.0  ;;  %v3291_v6 = vmul.f32 0.01, %v3275_v26  ;;  %3672 = vmatpush.msrb.mxu1 %v5742_v56  ;;  %3692 = vmatpush.msrb.mxu2 %v5743_v25  ;;  %v5758_v56 = vld [vmem:[%s8762_s7 + $0x220] sm:$0xff] }
 0x4c8   :  { %v3152_v27 = vpop.f32.mrf.mxu2  ;;  %3712 = vmatpush.msrb.mxu3 %v5744_v5  ;;  %3393 = vmatpush.msra.mxu0 %v5695_v47  ;;  %v5760_v47 = vld [vmem:[%s8762_s7 + $0x230] sm:$0xff] }
 0x4c9   :  { %v3299_v57 = vsel %vm3283_vm15, %v3275_v26, %v3291_v6  ;;  %v3172_v32 = vadd.f32 %v3152_v27, %v3080_v41  ;;  %v3244_v33 = vpop.f32.mrf.mxu3 }
 0x4ca   :  { %3308 = vst.msk [vmem:[#allocation4 + $0x8] sm:$0xff] %vm3306_vm14, %v3299_v57  ;;  %v3063_v43 = vpop.f32.mrf.mxu1  ;;  %v5738_v57 = vld [vmem:[%s8762_s7 + $0x1a0] sm:$0xff] }
 0x4cb   :  { %v3264_v12 = vadd.f32 %v3244_v33, %v3172_v32  ;;  %v3081_v23 = vadd.f32 %v3063_v43, %v2989_v7  ;;  %v5739_v32 = vld [vmem:[%s8762_s7 + $0x1a8] sm:$0xff]  ;;  %v5740_v33 = vld [vmem:[%s8762_s7 + $0x1b0] sm:$0xff]  ;;  %3673 = vmatpush.msrb.mxu1 %v5738_v57 }
 0x4cc   :  { %v5691_v43 = vld [vmem:[%s8762_s7 + $0x88] sm:$0xff]  ;;  %3693 = vmatpush.msrb.mxu2 %v5739_v32  ;;  %3713 = vmatpush.msrb.mxu3 %v5740_v33  ;;  %v3634_v33 = vld [vmem:[#allocation4 + $0x3] sm:$0x1] }
 0x4cd   :  { %v3276_v2 = vadd.f32 %v7466_v48, %v3264_v12  ;;  %v2717_v12 = vadd.f32 %v7418_v4, %v2622_v30  ;;  %3394 = vmatpush.msra.mxu0 %v5691_v43  ;;  %3674 = vmatpush.msrb.mxu1 %v5734_v0  ;;  %v5692_v0 = vld [vmem:[%s8762_s7 + $0x90] sm:$0xff] }
 0x4ce   :  { %3714 = vmatpush.msrb.mxu3 %v5736_v40 }
 0x4cf   :  { %vm3284_vm0 = vcmp.ge.f32.partialorder %v3276_v2, 0.0  ;;  %v3292_v3 = vmul.f32 0.01, %v3276_v2 }
 0x4d0   :  { %v3155_v34 = vpop.f32.mrf.mxu2 }
 0x4d1   :  { %v3300_v11 = vsel %vm3284_vm0, %v3276_v2, %v3292_v3  ;;  %v3173_v62 = vadd.f32 %v3155_v34, %v3081_v23  ;;  %v3247_v31 = vpop.f32.mrf.mxu3  ;;  %v5735_v2 = vld [vmem:[%s8762_s7 + $0x188] sm:$0xff]  ;;  %v2808_v3 = vadd.f32 %v7443_v18, %v2717_v12  ;;  %v2625_v34 = vadd.f32 %v7425_v51, %v7420_v15  ;;  %v5754_v12 = vld [vmem:[%s8762_s7 + $0x200] sm:$0xff] }
 0x4d2   :  { %3309 = vst.msk [vmem:[#allocation4 + $0x10] sm:$0xff] %vm3306_vm14, %v3300_v11  ;;  %v3066_v42 = vpop.f32.mrf.mxu1  ;;  %3694 = vmatpush.msrb.mxu2 %v5735_v2  ;;  %v5756_v2 = vld [vmem:[%s8762_s7 + $0x210] sm:$0xff] }
 0x4d3   :  { %v3265_v49 = vadd.f32 %v3247_v31, %v3173_v62  ;;  %v3082_v45 = vadd.f32 %v3066_v42, %v2990_v52  ;;  %v2900_v50 = vadd.f32 %v7445_v36, %v2808_v3  ;;  %v2718_v18 = vadd.f32 %v7427_v54, %v2625_v34  ;;  %v3333_v52 = vld [vmem:[#allocation4 + $0x1] sm:$0x1] }
 0x4d4   :  { %v5786_v3 = vld [vmem:[%s8762_s7 + $0x2e0] sm:$0xff] }
 0x4d5   :  { %v3277_v60 = vadd.f32 %v7466_v48, %v3265_v49  ;;  %v2992_v63 = vadd.f32 %v7449_v21, %v2900_v50  ;;  %v2809_v59 = vadd.f32 %v7451_v1, %v2718_v18  ;;  %v5701_v50 = vld [vmem:[%s8762_s7 + $0xd8] sm:$0xff] }
 0x4d7   :  { %vm3285_vm3 = vcmp.ge.f32.partialorder %v3277_v60, 0.0  ;;  %v3293_v19 = vmul.f32 0.01, %v3277_v60  ;;  %v2901_v36 = vadd.f32 %v7454_v38, %v2809_v59  ;;  %v5704_v38 = vld [vmem:[%s8762_s7 + $0xf0] sm:$0xff]  ;;  %v5779_v59 = vld [vmem:[%s8762_s7 + $0x2a8] sm:$0xff] }
 0x4d8   :  { %v3158_v26 = vpop.f32.mrf.mxu2 }
 0x4d9   :  { %v3301_v6 = vsel %vm3285_vm3, %v3277_v60, %v3293_v19  ;;  %v3174_v41 = vadd.f32 %v3158_v26, %v3082_v45  ;;  %v3250_v58 = vpop.f32.mrf.mxu3  ;;  %v3525_v60 = vld [vmem:[#allocation4 + $0x2] sm:$0x1]  ;;  %v2993_v53 = vadd.f32 %v7458_v8, %v2901_v36  ;;  %v5767_v19 = vld [vmem:[%s8762_s7 + $0x268] sm:$0xff]  ;;  %v5768_v45 = vld [vmem:[%s8762_s7 + $0x270] sm:$0xff] }
 0x4da   :  { %3310 = vst.msk [vmem:[#allocation4 + $0x18] sm:$0xff] %vm3306_vm14, %v3301_v6  ;;  %v3069_v27 = vpop.f32.mrf.mxu1  ;;  %v5700_v8 = vld [vmem:[%s8762_s7 + $0xd0] sm:$0xff]  ;;  %v5774_v36 = vld [vmem:[%s8762_s7 + $0x280] sm:$0xff] }
 0x4db   :  { %v3266_v61 = vadd.f32 %v3250_v58, %v3174_v41  ;;  %v3083_v23 = vadd.f32 %v3069_v27, %v2991_v16  ;;  %v5764_v6 = vld [vmem:[%s8762_s7 + $0x250] sm:$0xff] }
 0x4dc   :  { %v5696_v27 = vld [vmem:[%s8762_s7 + $0xb0] sm:$0xff] }
 0x4dd   :  { %v3278_v7 = vadd.f32 %v7466_v48, %v3266_v61  ;;  %v5759_v61 = vld [vmem:[%s8762_s7 + $0x228] sm:$0xff] }
 0x4df   :  { %vm3286_vm4 = vcmp.ge.f32.partialorder %v3278_v7, 0.0  ;;  %v3294_v4 = vmul.f32 0.01, %v3278_v7 }
 0x4e0   :  { %v3161_v24 = vpop.f32.mrf.mxu2 }
 0x4e1   :  { %v3302_v55 = vsel %vm3286_vm4, %v3278_v7, %v3294_v4  ;;  %v3175_v11 = vadd.f32 %v3161_v24, %v3083_v23  ;;  %v3253_v62 = vpop.f32.mrf.mxu3  ;;  %v5755_v7 = vld [vmem:[%s8762_s7 + $0x208] sm:$0xff]  ;;  %v5788_v24 = vld [vmem:[%s8762_s7 + $0x2f0] sm:$0xff] }
 0x4e2   :  { %3311 = vst.msk [vmem:[#allocation4 + $0x20] sm:$0xff] %vm3306_vm14, %v3302_v55  ;;  %v3072_v31 = vpop.f32.mrf.mxu1  ;;  %v5787_v23 = vld [vmem:[%s8762_s7 + $0x2e8] sm:$0xff]  ;;  %v5782_v55 = vld [vmem:[%s8762_s7 + $0x2c0] sm:$0xff] }
 0x4e3   :  { %v3267_v42 = vadd.f32 %v3253_v62, %v3175_v11  ;;  %v3084_v15 = vadd.f32 %v3072_v31, %v2992_v63  ;;  %v5783_v62 = vld [vmem:[%s8762_s7 + $0x2c8] sm:$0xff]  ;;  %v5784_v31 = vld [vmem:[%s8762_s7 + $0x2d0] sm:$0xff]  ;;  %v5697_v63 = vld [vmem:[%s8762_s7 + $0xb8] sm:$0xff] }
 0x4e5   :  { %v3279_v17 = vadd.f32 %v7466_v48, %v3267_v42  ;;  %v3744_v42 = vld [vmem:[#allocation4 + $0x8] sm:$0x1] }
 0x4e7   :  { %vm3287_vm5 = vcmp.ge.f32.partialorder %v3279_v17, 0.0  ;;  %v3295_v49 = vmul.f32 0.01, %v3279_v17 }
 0x4e8   :  { %v3164_v51 = vpop.f32.mrf.mxu2 }
 0x4e9   :  { %v3303_v28 = vsel %vm3287_vm5, %v3279_v17, %v3295_v49  ;;  %v3176_v35 = vadd.f32 %v3164_v51, %v3084_v15  ;;  %v3256_v9 = vpop.f32.mrf.mxu3  ;;  %v3334_v20 = vld [vmem:[#allocation4 + $0x21] sm:$0x1]  ;;  %v3526_v44 = vld [vmem:[#allocation4 + $0x22] sm:$0x1]  ;;  %v3635_v10 = vld [vmem:[#allocation4 + $0x23] sm:$0x1] }
 0x4ea   :  { %3312 = vst.msk [vmem:[#allocation4 + $0x28] sm:$0xff] %vm3306_vm14, %v3303_v28  ;;  %v3354_v54 = vrot.slane %v3334_v20, 7  ;;  %v3546_v21 = vrot.slane %v3526_v44, 7  ;;  %v3075_v1 = vpop.f32.mrf.mxu1  ;;  %v3655_v58 = vrot.slane %v3635_v10, 7  ;;  %v5778_v17 = vld [vmem:[%s8762_s7 + $0x2a0] sm:$0xff]  ;;  %v5780_v49 = vld [vmem:[%s8762_s7 + $0x2b0] sm:$0xff] }
 0x4eb   :  { %v3268_v14 = vadd.f32 %v3256_v9, %v3176_v35  ;;  %v3085_v26 = vadd.f32 %v3075_v1, %v2993_v53  ;;  %v5693_v51 = vld [vmem:[%s8762_s7 + $0x98] sm:$0xff]  ;;  %v5775_v28 = vld [vmem:[%s8762_s7 + $0x288] sm:$0xff]  ;;  %v5776_v35 = vld [vmem:[%s8762_s7 + $0x290] sm:$0xff] }
 0x4ec   :  { %v7593_v22 = vsel %vm3355_vm6, %v3354_v54, %v3333_v52  ;;  %v7596_v37 = vsel %vm3355_vm6, %v3546_v21, %v3525_v60  ;;  %v7646_v43 = vsel %vm3355_vm6, %v3655_v58, %v3634_v33  ;;  %v3329_v9 = vld [vmem:[%s8762_s7 + $0x60] sm:$0xff]  ;;  %v5807_v54 = vld [vmem:[%s8762_s7 + $0x368] sm:$0xff]  ;;  %v5808_v21 = vld [vmem:[%s8762_s7 + $0x370] sm:$0xff] }
 0x4ed   :  { %v3280_v39 = vadd.f32 %v7466_v48, %v3268_v14  ;;  %5706 = vmatmul.msk.f32.vlgmr.msrb.gmra.mxu0 %vm3306_vm14, %v7593_v22  ;;  %5730 = vmatmul.msk.f32.vlgmr.msra.gmra.mxu1 %vm3306_vm14, %v7596_v37  ;;  %v5806_v44 = vld [vmem:[%s8762_s7 + $0x360] sm:$0xff]  ;;  %v3853_v14 = vld [vmem:[#allocation4 + $0x9] sm:$0x1] }
 0x4ee   :  { %5731 = vmatmul.msk.f32.vlgmr.msra.gmra.mxu2 %vm3306_vm14, %v7596_v37  ;;  %5732 = vmatmul.msk.f32.vlgmr.msra.gmra.mxu3 %vm3306_vm14, %v7596_v37  ;;  %v3325_v60 = vld [vmem:[%s8762_s7 + $0x40] sm:$0xff]  ;;  %v3330_v58 = vld [vmem:[%s8762_s7 + $0x68] sm:$0xff] }
 0x4ef   :  { %vm3288_vm7 = vcmp.ge.f32.partialorder %v3280_v39, 0.0  ;;  %v3296_v30 = vmul.f32 0.01, %v3280_v39  ;;  %3411 = vmatpush.msrb.mxu0 %v5704_v38  ;;  %3781 = vmatpush.msra.mxu1 %v5766_v29  ;;  %v5802_v1 = vld [vmem:[%s8762_s7 + $0x340] sm:$0xff]  ;;  %v5803_v38 = vld [vmem:[%s8762_s7 + $0x348] sm:$0xff]  ;;  %v5804_v29 = vld [vmem:[%s8762_s7 + $0x350] sm:$0xff] }
 0x4f0   :  { %v3167_v41 = vpop.f32.mrf.mxu2  ;;  %3801 = vmatpush.msra.mxu2 %v5767_v19  ;;  %3821 = vmatpush.msra.mxu3 %v5768_v45  ;;  %v3316_v53 = vld [vmem:[#allocation4 + $0x20] sm:$0x1]  ;;  %v5799_v19 = vld [vmem:[%s8762_s7 + $0x328] sm:$0xff]  ;;  %v5800_v45 = vld [vmem:[%s8762_s7 + $0x330] sm:$0xff] }
 0x4f1   :  { %v3304_v25 = vsel %vm3288_vm7, %v3280_v39, %v3296_v30  ;;  %v3177_v5 = vadd.f32 %v3167_v41, %v3085_v26  ;;  %3412 = vmatpush.msrb.mxu0 %v5700_v8  ;;  %3782 = vmatpush.msra.mxu1 %v5762_v46  ;;  %v3259_v57 = vpop.f32.mrf.mxu3  ;;  %v3745_v40 = vld [vmem:[#allocation4 + $0x28] sm:$0x1]  ;;  %v3854_v15 = vld [vmem:[#allocation4 + $0x29] sm:$0x1]  ;;  %v3963_v39 = vld [vmem:[#allocation4 + $0x2a] sm:$0x1] }
 0x4f2   :  { %3313 = vst.msk [vmem:[#allocation4 + $0x30] sm:$0xff] %vm3306_vm14, %v3304_v25  ;;  %3802 = vmatpush.msra.mxu2 %v5763_v13  ;;  %3822 = vmatpush.msra.mxu3 %v5764_v6  ;;  %v3765_v34 = vrot.slane %v3745_v40, 7  ;;  %v3874_v20 = vrot.slane %v3854_v15, 7  ;;  %v3321_v10 = vld [vmem:[%s8762_s7 + $0x20] sm:$0xff]  ;;  %v3441_v30 = vrot.slane %v3316_v53, 7  ;;  %v3983_v26 = vrot.slane %v3963_v39, 7 }
 0x4f3   :  { %v3269_v32 = vadd.f32 %v3259_v57, %v3177_v5  ;;  %3413 = vmatpush.msrb.mxu0 %v5696_v27  ;;  %3783 = vmatpush.msra.mxu1 %v5758_v56  ;;  %v3317_v8 = vld [vmem:[%s8762_s7] sm:$0xff]  ;;  %v5795_v13 = vld [vmem:[%s8762_s7 + $0x308] sm:$0xff]  ;;  %v5796_v6 = vld [vmem:[%s8762_s7 + $0x310] sm:$0xff] }
 0x4f4   :  { %3803 = vmatpush.msra.mxu2 %v5759_v61  ;;  %3823 = vmatpush.msra.mxu3 %v5760_v47  ;;  %v7695_v18 = vsel %vm3355_vm6, %v3765_v34, %v3744_v42  ;;  %v7742_v52 = vsel %vm3355_vm6, %v3874_v20, %v3853_v14  ;;  %v5794_v46 = vld [vmem:[%s8762_s7 + $0x300] sm:$0xff]  ;;  %v3962_v27 = vld [vmem:[#allocation4 + $0xa] sm:$0x1]  ;;  %v5828_v47 = vld [vmem:[%s8762_s7 + $0x3f0] sm:$0xff] }
 0x4f5   :  { %v3281_v16 = vadd.f32 %v7466_v48, %v3269_v32  ;;  %5707 = vmatmul.msk.f32.vlgmr.msra.gmra.mxu0 %vm3306_vm14, %v7593_v22  ;;  %5750 = vmatmul.msk.f32.vlgmr.msrb.gmra.mxu1 %vm3306_vm14, %v7646_v43  ;;  %v5705_v48 = vld [vmem:[%s8762_s7 + $0xf8] sm:$0xff]  ;;  %v3315_v41 = vld [vmem:[#allocation4] sm:$0x1]  ;;  %v7795_v25 = vsel %vm3355_vm6, %v3983_v26, %v3962_v27  ;;  %v5827_v61 = vld [vmem:[%s8762_s7 + $0x3e8] sm:$0xff] }
 0x4f6   :  { %5751 = vmatmul.msk.f32.vlgmr.msrb.gmra.mxu2 %vm3306_vm14, %v7646_v43  ;;  %5752 = vmatmul.msk.f32.vlgmr.msrb.gmra.mxu3 %vm3306_vm14, %v7646_v43  ;;  %v7792_v56 = vsel %vm3355_vm6, %v3441_v30, %v3315_v41  ;;  %v5826_v5 = vld [vmem:[%s8762_s7 + $0x3e0] sm:$0xff]  ;;  %v3326_v57 = vld [vmem:[%s8762_s7 + $0x48] sm:$0xff]  ;;  %v5820_v40 = vld [vmem:[%s8762_s7 + $0x3b0] sm:$0xff] }
 0x4f7   :  { %vm3289_vm8 = vcmp.ge.f32.partialorder %v3281_v16, 0.0  ;;  %v3297_v4 = vmul.f32 0.01, %v3281_v16  ;;  %3414 = vmatpush.msrb.mxu0 %v5692_v0  ;;  %3784 = vmatpush.msra.mxu1 %v5754_v12  ;;  %v5822_v32 = vld [vmem:[%s8762_s7 + $0x3c0] sm:$0xff]  ;;  %v5823_v33 = vld [vmem:[%s8762_s7 + $0x3c8] sm:$0xff]  ;;  %v5824_v0 = vld [vmem:[%s8762_s7 + $0x3d0] sm:$0xff] }
 0x4f8   :  { %3804 = vmatpush.msra.mxu2 %v5755_v7  ;;  %3824 = vmatpush.msra.mxu3 %v5756_v2  ;;  %v4072_v12 = vld [vmem:[#allocation4 + $0x2b] sm:$0x1]  ;;  %v5818_v7 = vld [vmem:[%s8762_s7 + $0x3a0] sm:$0xff]  ;;  %v3331_v34 = vld [vmem:[%s8762_s7 + $0x70] sm:$0xff] }
 0x4f9   :  { %v3305_v11 = vsel %vm3289_vm8, %v3281_v16, %v3297_v4  ;;  %3431 = vmatpush.msra.mxu0 %v5705_v48  ;;  %3890 = vmatpush.msrb.mxu1 %v5786_v3  ;;  %v3322_v16 = vld [vmem:[%s8762_s7 + $0x28] sm:$0xff]  ;;  %v5814_v3 = vld [vmem:[%s8762_s7 + $0x380] sm:$0xff]  ;;  %v4092_v4 = vrot.slane %v4072_v12, 7  ;;  %v3327_v42 = vld [vmem:[%s8762_s7 + $0x50] sm:$0xff] }
 0x4fa   :  { %3314 = vst.msk [vmem:[#allocation4 + $0x38] sm:$0xff] %vm3306_vm14, %v3305_v11  ;;  %3910 = vmatpush.msrb.mxu2 %v5787_v23  ;;  %3930 = vmatpush.msrb.mxu3 %v5788_v24  ;;  %v5819_v2 = vld [vmem:[%s8762_s7 + $0x3a8] sm:$0xff]  ;;  %v5816_v24 = vld [vmem:[%s8762_s7 + $0x390] sm:$0xff]  ;;  %v5846_v11 = vld [vmem:[%s8762_s7 + $0x460] sm:$0xff] }
 0x4fb   :  { %3432 = vmatpush.msra.mxu0 %v5701_v50  ;;  %3891 = vmatpush.msrb.mxu1 %v5782_v55  ;;  %v3318_v48 = vld [vmem:[%s8762_s7 + $0x8] sm:$0xff]  ;;  %v3323_v15 = vld [vmem:[%s8762_s7 + $0x30] sm:$0xff]  ;;  %v3328_v53 = vld [vmem:[%s8762_s7 + $0x58] sm:$0xff] }
 0x4fc   :  { %3911 = vmatpush.msrb.mxu2 %v5783_v62  ;;  %3931 = vmatpush.msrb.mxu3 %v5784_v31  ;;  %v5815_v23 = vld [vmem:[%s8762_s7 + $0x388] sm:$0xff]  ;;  %v5848_v31 = vld [vmem:[%s8762_s7 + $0x470] sm:$0xff]  ;;  %v5862_v39 = vld [vmem:[%s8762_s7 + $0x4c0] sm:$0xff] }
 0x4fd   :  { %5708 = vmatmul.msk.f32.vlgmr.msrb.gmra.mxu0 %vm3306_vm14, %v7593_v22  ;;  %5770 = vmatmul.msk.f32.vlgmr.msra.gmra.mxu1 %vm3306_vm14, %v7695_v18  ;;  %v4071_v50 = vld [vmem:[#allocation4 + $0xb] sm:$0x1]  ;;  %v4181_v14 = vld [vmem:[#allocation4 + $0x10] sm:$0x1]  ;;  %v3320_v26 = vld [vmem:[%s8762_s7 + $0x18] sm:$0xff] }
 0x4fe   :  { %5771 = vmatmul.msk.f32.vlgmr.msra.gmra.mxu2 %vm3306_vm14, %v7695_v18  ;;  %5772 = vmatmul.msk.f32.vlgmr.msra.gmra.mxu3 %vm3306_vm14, %v7695_v18  ;;  %v7854_v55 = vsel %vm3355_vm6, %v4092_v4, %v4071_v50  ;;  %v5847_v62 = vld [vmem:[%s8762_s7 + $0x468] sm:$0xff]  ;;  %v5860_v30 = vld [vmem:[%s8762_s7 + $0x4b0] sm:$0xff]  ;;  %v5729_v27 = vld [vmem:[%s8762_s7 + $0x178] sm:$0xff] }
 0x4ff   :  { %3433 = vmatpush.msra.mxu0 %v5697_v63  ;;  %3892 = vmatpush.msrb.mxu1 %v5778_v17  ;;  %v5842_v63 = vld [vmem:[%s8762_s7 + $0x440] sm:$0xff]  ;;  %v5843_v17 = vld [vmem:[%s8762_s7 + $0x448] sm:$0xff]  ;;  %v5884_v12 = vld [vmem:[%s8762_s7 + $0x550] sm:$0xff] }
 0x500   :  { %3912 = vmatpush.msrb.mxu2 %v5779_v59  ;;  %3932 = vmatpush.msrb.mxu3 %v5780_v49  ;;  %v5844_v59 = vld [vmem:[%s8762_s7 + $0x450] sm:$0xff]  ;;  %v5855_v41 = vld [vmem:[%s8762_s7 + $0x488] sm:$0xff]  ;;  %v5874_v4 = vld [vmem:[%s8762_s7 + $0x500] sm:$0xff] }
 0x501   :  { %3434 = vmatpush.msra.mxu0 %v5693_v51  ;;  %3893 = vmatpush.msrb.mxu1 %v5774_v36  ;;  %v4182_v49 = vld [vmem:[#allocation4 + $0x30] sm:$0x1]  ;;  %v5838_v51 = vld [vmem:[%s8762_s7 + $0x420] sm:$0xff]  ;;  %v5839_v36 = vld [vmem:[%s8762_s7 + $0x428] sm:$0xff] }
 0x502   :  { %3913 = vmatpush.msrb.mxu2 %v5775_v28  ;;  %3933 = vmatpush.msrb.mxu3 %v5776_v35  ;;  %v5840_v28 = vld [vmem:[%s8762_s7 + $0x430] sm:$0xff]  ;;  %v4202_v20 = vrot.slane %v4182_v49, 7  ;;  %v5749_v50 = vld [vmem:[%s8762_s7 + $0x1f8] sm:$0xff] }
 0x503   :  { %3457 = vmatpush.msrb.mxu0 %v3329_v9  ;;  %3999 = vmatpush.msra.mxu1 %v5806_v44  ;;  %v3319_v35 = vld [vmem:[%s8762_s7 + $0x10] sm:$0xff]  ;;  %v5834_v9 = vld [vmem:[%s8762_s7 + $0x400] sm:$0xff]  ;;  %v5835_v44 = vld [vmem:[%s8762_s7 + $0x408] sm:$0xff] }
 0x504   :  { %4019 = vmatpush.msra.mxu2 %v5807_v54  ;;  %4039 = vmatpush.msra.mxu3 %v5808_v21  ;;  %v5836_v54 = vld [vmem:[%s8762_s7 + $0x410] sm:$0xff]  ;;  %v3332_v21 = vld [vmem:[%s8762_s7 + $0x78] sm:$0xff] }
 0x505   :  { %5709 = vmatmul.msk.f32.vlgmr.msra.gmra.mxu0 %vm3306_vm14, %v7593_v22  ;;  %5790 = vmatmul.msk.f32.vlgmr.msrb.gmra.mxu1 %vm3306_vm14, %v7742_v52  ;;  %v5798_v22 = vld [vmem:[%s8762_s7 + $0x320] sm:$0xff]  ;;  %v5904_v49 = vld [vmem:[%s8762_s7 + $0x5d0] sm:$0xff] }
 0x506   :  { %5791 = vmatmul.msk.f32.vlgmr.msrb.gmra.mxu2 %vm3306_vm14, %v7742_v52  ;;  %5792 = vmatmul.msk.f32.vlgmr.msrb.gmra.mxu3 %vm3306_vm14, %v7742_v52 }
 0x507   :  { %3458 = vmatpush.msrb.mxu0 %v3325_v60  ;;  %4000 = vmatpush.msra.mxu1 %v5802_v1  ;;  %v7913_v60 = vsel %vm3355_vm6, %v4202_v20, %v4181_v14  ;;  %v5866_v1 = vld [vmem:[%s8762_s7 + $0x4e0] sm:$0xff]  ;;  %v5769_v14 = vld [vmem:[%s8762_s7 + $0x278] sm:$0xff] }
 0x508   :  { %4020 = vmatpush.msra.mxu2 %v5803_v38  ;;  %4040 = vmatpush.msra.mxu3 %v5804_v29  ;;  %v5867_v38 = vld [vmem:[%s8762_s7 + $0x4e8] sm:$0xff]  ;;  %v5868_v29 = vld [vmem:[%s8762_s7 + $0x4f0] sm:$0xff]  ;;  %v5894_v20 = vld [vmem:[%s8762_s7 + $0x580] sm:$0xff] }
 0x509   :  { %3459 = vmatpush.msrb.mxu0 %v3321_v10  ;;  %4001 = vmatpush.msra.mxu1 %v5798_v22  ;;  %v5863_v10 = vld [vmem:[%s8762_s7 + $0x4c8] sm:$0xff]  ;;  %v5864_v22 = vld [vmem:[%s8762_s7 + $0x4d0] sm:$0xff] }
 0x50a   :  { %4021 = vmatpush.msra.mxu2 %v5799_v19  ;;  %4041 = vmatpush.msra.mxu3 %v5800_v45  ;;  %v4291_v19 = vld [vmem:[#allocation4 + $0x31] sm:$0x1]  ;;  %v3324_v45 = vld [vmem:[%s8762_s7 + $0x38] sm:$0xff] }
 0x50b   :  { %3460 = vmatpush.msrb.mxu0 %v3317_v8  ;;  %4002 = vmatpush.msra.mxu1 %v5794_v46  ;;  %v5858_v8 = vld [vmem:[%s8762_s7 + $0x4a0] sm:$0xff]  ;;  %v5859_v46 = vld [vmem:[%s8762_s7 + $0x4a8] sm:$0xff] }
 0x50c   :  { %4022 = vmatpush.msra.mxu2 %v5795_v13  ;;  %4042 = vmatpush.msra.mxu3 %v5796_v6  ;;  %v5854_v13 = vld [vmem:[%s8762_s7 + $0x480] sm:$0xff]  ;;  %v4311_v6 = vrot.slane %v4291_v19, 7  ;;  %v5924_v19 = vld [vmem:[%s8762_s7 + $0x650] sm:$0xff] }
 0x50d   :  { %5710 = vmatmul.msk.f32.vlgmr.msrb.gmra.mxu0 %vm3306_vm14, %v7792_v56  ;;  %5810 = vmatmul.msk.f32.vlgmr.msra.gmra.mxu1 %vm3306_vm14, %v7795_v25 }
 0x50e   :  { %3477 = vmatpush.msra.mxu0 %v3330_v58  ;;  %5811 = vmatmul.msk.f32.vlgmr.msra.gmra.mxu2 %vm3306_vm14, %v7795_v25  ;;  %v5856_v58 = vld [vmem:[%s8762_s7 + $0x490] sm:$0xff] }
 0x50f   :  { %5812 = vmatmul.msk.f32.vlgmr.msra.gmra.mxu3 %vm3306_vm14, %v7795_v25  ;;  %4108 = vmatpush.msrb.mxu1 %v5826_v5  ;;  %v4290_v5 = vld [vmem:[#allocation4 + $0x11] sm:$0x1] }
 0x510   :  { %4128 = vmatpush.msrb.mxu2 %v5827_v61  ;;  %4148 = vmatpush.msrb.mxu3 %v5828_v47  ;;  %v7972_v61 = vsel %vm3355_vm6, %v4311_v6, %v4290_v5  ;;  %v5886_v47 = vld [vmem:[%s8762_s7 + $0x560] sm:$0xff]  ;;  %v5789_v5 = vld [vmem:[%s8762_s7 + $0x2f8] sm:$0xff] }
 0x511   :  { %3478 = vmatpush.msra.mxu0 %v3326_v57  ;;  %4109 = vmatpush.msrb.mxu1 %v5822_v32  ;;  %v5887_v57 = vld [vmem:[%s8762_s7 + $0x568] sm:$0xff]  ;;  %v5888_v32 = vld [vmem:[%s8762_s7 + $0x570] sm:$0xff]  ;;  %v5914_v6 = vld [vmem:[%s8762_s7 + $0x600] sm:$0xff] }
 0x512   :  { %4129 = vmatpush.msrb.mxu2 %v5823_v33  ;;  %4149 = vmatpush.msrb.mxu3 %v5824_v0  ;;  %v5725_v33 = vld [vmem:[%s8762_s7 + $0x158] sm:$0xff]  ;;  %v5883_v0 = vld [vmem:[%s8762_s7 + $0x548] sm:$0xff] }
 0x513   :  { %3479 = vmatpush.msra.mxu0 %v3322_v16  ;;  %4110 = vmatpush.msrb.mxu1 %v5818_v7  ;;  %v4400_v16 = vld [vmem:[#allocation4 + $0x32] sm:$0x1]  ;;  %v5721_v7 = vld [vmem:[%s8762_s7 + $0x138] sm:$0xff] }
 0x514   :  { %4130 = vmatpush.msrb.mxu2 %v5819_v2  ;;  %4150 = vmatpush.msrb.mxu3 %v5820_v40  ;;  %v5878_v2 = vld [vmem:[%s8762_s7 + $0x520] sm:$0xff]  ;;  %v5879_v40 = vld [vmem:[%s8762_s7 + $0x528] sm:$0xff] }
 0x515   :  { %3480 = vmatpush.msra.mxu0 %v3318_v48  ;;  %4111 = vmatpush.msrb.mxu1 %v5814_v3  ;;  %v5880_v48 = vld [vmem:[%s8762_s7 + $0x530] sm:$0xff]  ;;  %v5717_v3 = vld [vmem:[%s8762_s7 + $0x118] sm:$0xff] }
 0x516   :  { %4131 = vmatpush.msrb.mxu2 %v5815_v23  ;;  %4151 = vmatpush.msrb.mxu3 %v5816_v24  ;;  %v4420_v23 = vrot.slane %v4400_v16, 7  ;;  %v5875_v24 = vld [vmem:[%s8762_s7 + $0x508] sm:$0xff]  ;;  %v5944_v16 = vld [vmem:[%s8762_s7 + $0x6d0] sm:$0xff] }
 0x517   :  { %5711 = vmatmul.msk.f32.vlgmr.msra.gmra.mxu0 %vm3306_vm14, %v7792_v56  ;;  %5830 = vmatmul.msk.f32.vlgmr.msrb.gmra.mxu1 %vm3306_vm14, %v7854_v55 }
 0x518   :  { %3497 = vmatpush.msrb.mxu0 %v3331_v34  ;;  %5831 = vmatmul.msk.f32.vlgmr.msrb.gmra.mxu2 %vm3306_vm14, %v7854_v55  ;;  %v5876_v34 = vld [vmem:[%s8762_s7 + $0x510] sm:$0xff] }
 0x519   :  { %5832 = vmatmul.msk.f32.vlgmr.msrb.gmra.mxu3 %vm3306_vm14, %v7854_v55  ;;  %4218 = vmatpush.msra.mxu1 %v5846_v11  ;;  %v4399_v11 = vld [vmem:[#allocation4 + $0x12] sm:$0x1] }
 0x51a   :  { %4238 = vmatpush.msra.mxu2 %v5847_v62  ;;  %4258 = vmatpush.msra.mxu3 %v5848_v31  ;;  %v8031_v62 = vsel %vm3355_vm6, %v4420_v23, %v4399_v11  ;;  %v5906_v31 = vld [vmem:[%s8762_s7 + $0x5e0] sm:$0xff]  ;;  %v5809_v11 = vld [vmem:[%s8762_s7 + $0x378] sm:$0xff] }
 0x51b   :  { %3498 = vmatpush.msrb.mxu0 %v3327_v42  ;;  %4219 = vmatpush.msra.mxu1 %v5842_v63  ;;  %v5907_v42 = vld [vmem:[%s8762_s7 + $0x5e8] sm:$0xff]  ;;  %v5908_v63 = vld [vmem:[%s8762_s7 + $0x5f0] sm:$0xff]  ;;  %v5934_v23 = vld [vmem:[%s8762_s7 + $0x680] sm:$0xff] }
 0x51c   :  { %4239 = vmatpush.msra.mxu2 %v5843_v17  ;;  %4259 = vmatpush.msra.mxu3 %v5844_v59  ;;  %v5745_v17 = vld [vmem:[%s8762_s7 + $0x1d8] sm:$0xff]  ;;  %v5903_v59 = vld [vmem:[%s8762_s7 + $0x5c8] sm:$0xff] }
 0x51d   :  { %3499 = vmatpush.msrb.mxu0 %v3323_v15  ;;  %4220 = vmatpush.msra.mxu1 %v5838_v51  ;;  %v4509_v15 = vld [vmem:[#allocation4 + $0x33] sm:$0x1]  ;;  %v5741_v51 = vld [vmem:[%s8762_s7 + $0x1b8] sm:$0xff] }
 0x51e   :  { %4240 = vmatpush.msra.mxu2 %v5839_v36  ;;  %4260 = vmatpush.msra.mxu3 %v5840_v28  ;;  %v5898_v36 = vld [vmem:[%s8762_s7 + $0x5a0] sm:$0xff]  ;;  %v5899_v28 = vld [vmem:[%s8762_s7 + $0x5a8] sm:$0xff] }
 0x51f   :  { %3500 = vmatpush.msrb.mxu0 %v3319_v35  ;;  %4221 = vmatpush.msra.mxu1 %v5834_v9  ;;  %v5900_v35 = vld [vmem:[%s8762_s7 + $0x5b0] sm:$0xff]  ;;  %v5737_v9 = vld [vmem:[%s8762_s7 + $0x198] sm:$0xff] }
 0x520   :  { %4241 = vmatpush.msra.mxu2 %v5835_v44  ;;  %4261 = vmatpush.msra.mxu3 %v5836_v54  ;;  %v4529_v44 = vrot.slane %v4509_v15, 7  ;;  %v5895_v54 = vld [vmem:[%s8762_s7 + $0x588] sm:$0xff]  ;;  %v5964_v15 = vld [vmem:[%s8762_s7 + $0x750] sm:$0xff] }
 0x521   :  { %5712 = vmatmul.msk.f32.vlgmr.msrb.gmra.mxu0 %vm3306_vm14, %v7792_v56  ;;  %5850 = vmatmul.msk.f32.vlgmr.msra.gmra.mxu1 %vm3306_vm14, %v7913_v60 }
 0x522   :  { %3517 = vmatpush.msra.mxu0 %v3332_v21  ;;  %5851 = vmatmul.msk.f32.vlgmr.msra.gmra.mxu2 %vm3306_vm14, %v7913_v60  ;;  %v5896_v21 = vld [vmem:[%s8762_s7 + $0x590] sm:$0xff] }
 0x523   :  { %5852 = vmatmul.msk.f32.vlgmr.msra.gmra.mxu3 %vm3306_vm14, %v7913_v60  ;;  %4327 = vmatpush.msrb.mxu1 %v5866_v1  ;;  %v4508_v1 = vld [vmem:[#allocation4 + $0x13] sm:$0x1] }
 0x524   :  { %4347 = vmatpush.msrb.mxu2 %v5867_v38  ;;  %4367 = vmatpush.msrb.mxu3 %v5868_v29  ;;  %v8090_v38 = vsel %vm3355_vm6, %v4529_v44, %v4508_v1  ;;  %v5926_v29 = vld [vmem:[%s8762_s7 + $0x660] sm:$0xff]  ;;  %v5829_v1 = vld [vmem:[%s8762_s7 + $0x3f8] sm:$0xff] }
 0x525   :  { %3518 = vmatpush.msra.mxu0 %v3328_v53  ;;  %4328 = vmatpush.msrb.mxu1 %v5862_v39  ;;  %v5927_v53 = vld [vmem:[%s8762_s7 + $0x668] sm:$0xff]  ;;  %v5928_v39 = vld [vmem:[%s8762_s7 + $0x670] sm:$0xff]  ;;  %v5954_v44 = vld [vmem:[%s8762_s7 + $0x700] sm:$0xff] }
 0x526   :  { %4348 = vmatpush.msrb.mxu2 %v5863_v10  ;;  %4368 = vmatpush.msrb.mxu3 %v5864_v22  ;;  %v5765_v10 = vld [vmem:[%s8762_s7 + $0x258] sm:$0xff]  ;;  %v5923_v22 = vld [vmem:[%s8762_s7 + $0x648] sm:$0xff] }
 0x527   :  { %3519 = vmatpush.msra.mxu0 %v3324_v45  ;;  %4329 = vmatpush.msrb.mxu1 %v5858_v8  ;;  %v4619_v45 = vld [vmem:[#allocation4 + $0x38] sm:$0x1] }
 0x528   :  { %4349 = vmatpush.msrb.mxu2 %v5859_v46  ;;  %4369 = vmatpush.msrb.mxu3 %v5860_v30  ;;  %v5761_v8 = vld [vmem:[%s8762_s7 + $0x238] sm:$0xff]  ;;  %v5918_v46 = vld [vmem:[%s8762_s7 + $0x620] sm:$0xff]  ;;  %v5919_v30 = vld [vmem:[%s8762_s7 + $0x628] sm:$0xff] }
 0x529   :  { %3520 = vmatpush.msra.mxu0 %v3320_v26  ;;  %4330 = vmatpush.msrb.mxu1 %v5854_v13  ;;  %v5920_v26 = vld [vmem:[%s8762_s7 + $0x630] sm:$0xff]  ;;  %v5757_v13 = vld [vmem:[%s8762_s7 + $0x218] sm:$0xff] }
 0x52a   :  { %4350 = vmatpush.msrb.mxu2 %v5855_v41  ;;  %4370 = vmatpush.msrb.mxu3 %v5856_v58  ;;  %v4639_v41 = vrot.slane %v4619_v45, 7  ;;  %v5915_v58 = vld [vmem:[%s8762_s7 + $0x608] sm:$0xff]  ;;  %v5984_v45 = vld [vmem:[%s8762_s7 + $0x7d0] sm:$0xff] }
 0x52b   :  { %5713 = vmatmul.msk.f32.vlgmr.msra.gmra.mxu0 %vm3306_vm14, %v7792_v56  ;;  %5870 = vmatmul.msk.f32.vlgmr.msrb.gmra.mxu1 %vm3306_vm14, %v7972_v61  ;;  %v5882_v56 = vld [vmem:[%s8762_s7 + $0x540] sm:$0xff] }
 0x52c   :  { %3622 = vmatpush.msrb.mxu0 %v5729_v27  ;;  %5871 = vmatmul.msk.f32.vlgmr.msrb.gmra.mxu2 %vm3306_vm14, %v7972_v61  ;;  %v5916_v27 = vld [vmem:[%s8762_s7 + $0x610] sm:$0xff] }
 0x52d   :  { %5872 = vmatmul.msk.f32.vlgmr.msrb.gmra.mxu3 %vm3306_vm14, %v7972_v61  ;;  %4436 = vmatpush.msra.mxu1 %v5886_v47  ;;  %v4618_v47 = vld [vmem:[#allocation4 + $0x18] sm:$0x1] }
 0x52e   :  { %4456 = vmatpush.msra.mxu2 %v5887_v57  ;;  %4476 = vmatpush.msra.mxu3 %v5888_v32  ;;  %v8149_v57 = vsel %vm3355_vm6, %v4639_v41, %v4618_v47  ;;  %v5946_v32 = vld [vmem:[%s8762_s7 + $0x6e0] sm:$0xff]  ;;  %v5849_v47 = vld [vmem:[%s8762_s7 + $0x478] sm:$0xff] }
 0x52f   :  { %3623 = vmatpush.msrb.mxu0 %v5725_v33  ;;  %4437 = vmatpush.msra.mxu1 %v5882_v56  ;;  %v5947_v33 = vld [vmem:[%s8762_s7 + $0x6e8] sm:$0xff]  ;;  %v5948_v56 = vld [vmem:[%s8762_s7 + $0x6f0] sm:$0xff]  ;;  %v5974_v41 = vld [vmem:[%s8762_s7 + $0x780] sm:$0xff] }
 0x530   :  { %4457 = vmatpush.msra.mxu2 %v5883_v0  ;;  %4477 = vmatpush.msra.mxu3 %v5884_v12  ;;  %v5785_v0 = vld [vmem:[%s8762_s7 + $0x2d8] sm:$0xff]  ;;  %v5943_v12 = vld [vmem:[%s8762_s7 + $0x6c8] sm:$0xff] }
 0x531   :  { %3624 = vmatpush.msrb.mxu0 %v5721_v7  ;;  %4438 = vmatpush.msra.mxu1 %v5878_v2  ;;  %v4728_v7 = vld [vmem:[#allocation4 + $0x39] sm:$0x1] }
 0x532   :  { %4458 = vmatpush.msra.mxu2 %v5879_v40  ;;  %4478 = vmatpush.msra.mxu3 %v5880_v48  ;;  %v5781_v2 = vld [vmem:[%s8762_s7 + $0x2b8] sm:$0xff]  ;;  %v5938_v40 = vld [vmem:[%s8762_s7 + $0x6a0] sm:$0xff]  ;;  %v5939_v48 = vld [vmem:[%s8762_s7 + $0x6a8] sm:$0xff] }
 0x533   :  { %3625 = vmatpush.msrb.mxu0 %v5717_v3  ;;  %4439 = vmatpush.msra.mxu1 %v5874_v4  ;;  %v5940_v3 = vld [vmem:[%s8762_s7 + $0x6b0] sm:$0xff]  ;;  %v5777_v4 = vld [vmem:[%s8762_s7 + $0x298] sm:$0xff] }
 0x534   :  { %4459 = vmatpush.msra.mxu2 %v5875_v24  ;;  %4479 = vmatpush.msra.mxu3 %v5876_v34  ;;  %v4748_v24 = vrot.slane %v4728_v7, 7  ;;  %v5935_v34 = vld [vmem:[%s8762_s7 + $0x688] sm:$0xff]  ;;  %v5865_v7 = vld [vmem:[%s8762_s7 + $0x4d8] sm:$0xff] }
 0x535   :  { %5733 = vmatmul.msk.f32.vlgmr.msrb.gmra.mxu0 %vm3306_vm14, %v7596_v37  ;;  %5890 = vmatmul.msk.f32.vlgmr.msra.gmra.mxu1 %vm3306_vm14, %v8031_v62  ;;  %v5902_v37 = vld [vmem:[%s8762_s7 + $0x5c0] sm:$0xff] }
 0x536   :  { %3731 = vmatpush.msra.mxu0 %v5749_v50  ;;  %5891 = vmatmul.msk.f32.vlgmr.msra.gmra.mxu2 %vm3306_vm14, %v8031_v62  ;;  %v5936_v50 = vld [vmem:[%s8762_s7 + $0x690] sm:$0xff] }
 0x537   :  { %5892 = vmatmul.msk.f32.vlgmr.msra.gmra.mxu3 %vm3306_vm14, %v8031_v62  ;;  %4545 = vmatpush.msrb.mxu1 %v5906_v31  ;;  %v4727_v31 = vld [vmem:[#allocation4 + $0x19] sm:$0x1] }
 0x538   :  { %4565 = vmatpush.msrb.mxu2 %v5907_v42  ;;  %4585 = vmatpush.msrb.mxu3 %v5908_v63  ;;  %v8208_v42 = vsel %vm3355_vm6, %v4748_v24, %v4727_v31  ;;  %v5966_v63 = vld [vmem:[%s8762_s7 + $0x760] sm:$0xff]  ;;  %v5885_v24 = vld [vmem:[%s8762_s7 + $0x558] sm:$0xff] }
 0x539   :  { %3732 = vmatpush.msra.mxu0 %v5745_v17  ;;  %4546 = vmatpush.msrb.mxu1 %v5902_v37  ;;  %v5967_v17 = vld [vmem:[%s8762_s7 + $0x768] sm:$0xff]  ;;  %v5968_v37 = vld [vmem:[%s8762_s7 + $0x770] sm:$0xff] }
 0x53a   :  { %4566 = vmatpush.msrb.mxu2 %v5903_v59  ;;  %4586 = vmatpush.msrb.mxu3 %v5904_v49  ;;  %v5805_v59 = vld [vmem:[%s8762_s7 + $0x358] sm:$0xff]  ;;  %v5963_v49 = vld [vmem:[%s8762_s7 + $0x748] sm:$0xff] }
 0x53b   :  { %3733 = vmatpush.msra.mxu0 %v5741_v51  ;;  %4547 = vmatpush.msrb.mxu1 %v5898_v36  ;;  %v4837_v51 = vld [vmem:[#allocation4 + $0x3a] sm:$0x1] }
 0x53c   :  { %4567 = vmatpush.msrb.mxu2 %v5899_v28  ;;  %4587 = vmatpush.msrb.mxu3 %v5900_v35  ;;  %v5801_v36 = vld [vmem:[%s8762_s7 + $0x338] sm:$0xff]  ;;  %v5958_v28 = vld [vmem:[%s8762_s7 + $0x720] sm:$0xff]  ;;  %v5959_v35 = vld [vmem:[%s8762_s7 + $0x728] sm:$0xff] }
 0x53d   :  { %3734 = vmatpush.msra.mxu0 %v5737_v9  ;;  %4548 = vmatpush.msrb.mxu1 %v5894_v20  ;;  %v5960_v9 = vld [vmem:[%s8762_s7 + $0x730] sm:$0xff]  ;;  %v5797_v20 = vld [vmem:[%s8762_s7 + $0x318] sm:$0xff] }
 0x53e   :  { %4568 = vmatpush.msrb.mxu2 %v5895_v54  ;;  %4588 = vmatpush.msrb.mxu3 %v5896_v21  ;;  %v4857_v54 = vrot.slane %v4837_v51, 7  ;;  %v5955_v21 = vld [vmem:[%s8762_s7 + $0x708] sm:$0xff] }
 0x53f   :  { %5753 = vmatmul.msk.f32.vlgmr.msra.gmra.mxu0 %vm3306_vm14, %v7646_v43  ;;  %5910 = vmatmul.msk.f32.vlgmr.msrb.gmra.mxu1 %vm3306_vm14, %v8090_v38  ;;  %v5922_v43 = vld [vmem:[%s8762_s7 + $0x640] sm:$0xff] }
 0x540   :  { %3841 = vmatpush.msrb.mxu0 %v5769_v14  ;;  %5911 = vmatmul.msk.f32.vlgmr.msrb.gmra.mxu2 %vm3306_vm14, %v8090_v38  ;;  %v5956_v14 = vld [vmem:[%s8762_s7 + $0x710] sm:$0xff] }
 0x541   :  { %5912 = vmatmul.msk.f32.vlgmr.msrb.gmra.mxu3 %vm3306_vm14, %v8090_v38  ;;  %4655 = vmatpush.msra.mxu1 %v5926_v29  ;;  %v4836_v29 = vld [vmem:[#allocation4 + $0x1a] sm:$0x1] }
 0x542   :  { %4675 = vmatpush.msra.mxu2 %v5927_v53  ;;  %4695 = vmatpush.msra.mxu3 %v5928_v39  ;;  %v8267_v53 = vsel %vm3355_vm6, %v4857_v54, %v4836_v29  ;;  %v5986_v39 = vld [vmem:[%s8762_s7 + $0x7e0] sm:$0xff]  ;;  %v5945_v29 = vld [vmem:[%s8762_s7 + $0x6d8] sm:$0xff] }
 0x543   :  { %3842 = vmatpush.msrb.mxu0 %v5765_v10  ;;  %4656 = vmatpush.msra.mxu1 %v5922_v43  ;;  %v5987_v10 = vld [vmem:[%s8762_s7 + $0x7e8] sm:$0xff]  ;;  %v5988_v43 = vld [vmem:[%s8762_s7 + $0x7f0] sm:$0xff] }
 0x544   :  { %4676 = vmatpush.msra.mxu2 %v5923_v22  ;;  %4696 = vmatpush.msra.mxu3 %v5924_v19  ;;  %v5825_v22 = vld [vmem:[%s8762_s7 + $0x3d8] sm:$0xff]  ;;  %v5983_v19 = vld [vmem:[%s8762_s7 + $0x7c8] sm:$0xff] }
 0x545   :  { %3843 = vmatpush.msrb.mxu0 %v5761_v8  ;;  %4657 = vmatpush.msra.mxu1 %v5918_v46  ;;  %v4946_v8 = vld [vmem:[#allocation4 + $0x3b] sm:$0x1] }
 0x546   :  { %4677 = vmatpush.msra.mxu2 %v5919_v30  ;;  %4697 = vmatpush.msra.mxu3 %v5920_v26  ;;  %v5821_v46 = vld [vmem:[%s8762_s7 + $0x3b8] sm:$0xff]  ;;  %v5978_v30 = vld [vmem:[%s8762_s7 + $0x7a0] sm:$0xff]  ;;  %v5979_v26 = vld [vmem:[%s8762_s7 + $0x7a8] sm:$0xff] }
 0x547   :  { %3844 = vmatpush.msrb.mxu0 %v5757_v13  ;;  %4658 = vmatpush.msra.mxu1 %v5914_v6  ;;  %v5980_v13 = vld [vmem:[%s8762_s7 + $0x7b0] sm:$0xff]  ;;  %v5817_v6 = vld [vmem:[%s8762_s7 + $0x398] sm:$0xff] }
 0x548   :  { %4678 = vmatpush.msra.mxu2 %v5915_v58  ;;  %4698 = vmatpush.msra.mxu3 %v5916_v27  ;;  %v4966_v58 = vrot.slane %v4946_v8, 7  ;;  %v5975_v27 = vld [vmem:[%s8762_s7 + $0x788] sm:$0xff]  ;;  %v5969_v8 = vld [vmem:[%s8762_s7 + $0x778] sm:$0xff] }
 0x549   :  { %5773 = vmatmul.msk.f32.vlgmr.msrb.gmra.mxu0 %vm3306_vm14, %v7695_v18  ;;  %5930 = vmatmul.msk.f32.vlgmr.msra.gmra.mxu1 %vm3306_vm14, %v8149_v57  ;;  %v5942_v18 = vld [vmem:[%s8762_s7 + $0x6c0] sm:$0xff] }
 0x54a   :  { %3950 = vmatpush.msra.mxu0 %v5789_v5  ;;  %5931 = vmatmul.msk.f32.vlgmr.msra.gmra.mxu2 %vm3306_vm14, %v8149_v57  ;;  %v5976_v5 = vld [vmem:[%s8762_s7 + $0x790] sm:$0xff] }
 0x54b   :  { %5932 = vmatmul.msk.f32.vlgmr.msra.gmra.mxu3 %vm3306_vm14, %v8149_v57  ;;  %4764 = vmatpush.msrb.mxu1 %v5946_v32  ;;  %v4945_v32 = vld [vmem:[#allocation4 + $0x1b] sm:$0x1] }
 0x54c   :  { %4784 = vmatpush.msrb.mxu2 %v5947_v33  ;;  %4804 = vmatpush.msrb.mxu3 %v5948_v56  ;;  %v8326_v33 = vsel %vm3355_vm6, %v4966_v58, %v4945_v32  ;;  %v5845_v56 = vld [vmem:[%s8762_s7 + $0x458] sm:$0xff] }
 0x54d   :  { %3951 = vmatpush.msra.mxu0 %v5785_v0  ;;  %4765 = vmatpush.msrb.mxu1 %v5942_v18  ;;  %v5841_v0 = vld [vmem:[%s8762_s7 + $0x438] sm:$0xff] }
 0x54e   :  { %4785 = vmatpush.msrb.mxu2 %v5943_v12  ;;  %4805 = vmatpush.msrb.mxu3 %v5944_v16  ;;  %v5837_v12 = vld [vmem:[%s8762_s7 + $0x418] sm:$0xff] }
 0x54f   :  { %3952 = vmatpush.msra.mxu0 %v5781_v2  ;;  %4766 = vmatpush.msrb.mxu1 %v5938_v40  ;;  %v5869_v16 = vld [vmem:[%s8762_s7 + $0x4f8] sm:$0xff] }
 0x550   :  { %4786 = vmatpush.msrb.mxu2 %v5939_v48  ;;  %4806 = vmatpush.msrb.mxu3 %v5940_v3  ;;  %v5861_v2 = vld [vmem:[%s8762_s7 + $0x4b8] sm:$0xff] }
 0x551   :  { %3953 = vmatpush.msra.mxu0 %v5777_v4  ;;  %4767 = vmatpush.msrb.mxu1 %v5934_v23  ;;  %v5889_v23 = vld [vmem:[%s8762_s7 + $0x578] sm:$0xff] }
 0x552   :  { %4787 = vmatpush.msrb.mxu2 %v5935_v34  ;;  %4807 = vmatpush.msrb.mxu3 %v5936_v50  ;;  %v5881_v34 = vld [vmem:[%s8762_s7 + $0x538] sm:$0xff] }
 0x553   :  { %5793 = vmatmul.msk.f32.vlgmr.msra.gmra.mxu0 %vm3306_vm14, %v7742_v52  ;;  %5950 = vmatmul.msk.f32.vlgmr.msrb.gmra.mxu1 %vm3306_vm14, %v8208_v42  ;;  %v5962_v52 = vld [vmem:[%s8762_s7 + $0x740] sm:$0xff] }
 0x554   :  { %4059 = vmatpush.msrb.mxu0 %v5809_v11  ;;  %5951 = vmatmul.msk.f32.vlgmr.msrb.gmra.mxu2 %vm3306_vm14, %v8208_v42 }
 0x555   :  { %5952 = vmatmul.msk.f32.vlgmr.msrb.gmra.mxu3 %vm3306_vm14, %v8208_v42  ;;  %4873 = vmatpush.msra.mxu1 %v5966_v63 }
 0x556   :  { %4893 = vmatpush.msra.mxu2 %v5967_v17  ;;  %4913 = vmatpush.msra.mxu3 %v5968_v37  ;;  %v5909_v17 = vld [vmem:[%s8762_s7 + $0x5f8] sm:$0xff] }
 0x557   :  { %4060 = vmatpush.msrb.mxu0 %v5805_v59  ;;  %4874 = vmatpush.msra.mxu1 %v5962_v52  ;;  %v5905_v37 = vld [vmem:[%s8762_s7 + $0x5d8] sm:$0xff] }
 0x558   :  { %4894 = vmatpush.msra.mxu2 %v5963_v49  ;;  %4914 = vmatpush.msra.mxu3 %v5964_v15  ;;  %v5901_v59 = vld [vmem:[%s8762_s7 + $0x5b8] sm:$0xff] }
 0x559   :  { %4061 = vmatpush.msrb.mxu0 %v5801_v36  ;;  %4875 = vmatpush.msra.mxu1 %v5958_v28  ;;  %v5929_v36 = vld [vmem:[%s8762_s7 + $0x678] sm:$0xff] }
 0x55a   :  { %4895 = vmatpush.msra.mxu2 %v5959_v35  ;;  %4915 = vmatpush.msra.mxu3 %v5960_v9  ;;  %v5925_v28 = vld [vmem:[%s8762_s7 + $0x658] sm:$0xff] }
 0x55b   :  { %4062 = vmatpush.msrb.mxu0 %v5797_v20  ;;  %4876 = vmatpush.msra.mxu1 %v5954_v44  ;;  %v5921_v35 = vld [vmem:[%s8762_s7 + $0x638] sm:$0xff] }
 0x55c   :  { %4896 = vmatpush.msra.mxu2 %v5955_v21  ;;  %4916 = vmatpush.msra.mxu3 %v5956_v14  ;;  %v5949_v14 = vld [vmem:[%s8762_s7 + $0x6f8] sm:$0xff] }
 0x55d   :  { %5813 = vmatmul.msk.f32.vlgmr.msrb.gmra.mxu0 %vm3306_vm14, %v7795_v25  ;;  %5970 = vmatmul.msk.f32.vlgmr.msra.gmra.mxu1 %vm3306_vm14, %v8267_v53  ;;  %v5982_v25 = vld [vmem:[%s8762_s7 + $0x7c0] sm:$0xff] }
 0x55e   :  { %4168 = vmatpush.msra.mxu0 %v5829_v1  ;;  %5971 = vmatmul.msk.f32.vlgmr.msra.gmra.mxu2 %vm3306_vm14, %v8267_v53 }
 0x55f   :  { %5972 = vmatmul.msk.f32.vlgmr.msra.gmra.mxu3 %vm3306_vm14, %v8267_v53  ;;  %4982 = vmatpush.msrb.mxu1 %v5986_v39 }
 0x560   :  { %5002 = vmatpush.msrb.mxu2 %v5987_v10  ;;  %5022 = vmatpush.msrb.mxu3 %v5988_v43  ;;  %v5941_v10 = vld [vmem:[%s8762_s7 + $0x6b8] sm:$0xff] }
 0x561   :  { %4169 = vmatpush.msra.mxu0 %v5825_v22  ;;  %4983 = vmatpush.msrb.mxu1 %v5982_v25 }
 0x562   :  { %5003 = vmatpush.msrb.mxu2 %v5983_v19  ;;  %5023 = vmatpush.msrb.mxu3 %v5984_v45 }
 0x563   :  { %4170 = vmatpush.msra.mxu0 %v5821_v46  ;;  %4984 = vmatpush.msrb.mxu1 %v5978_v30  ;;  %v5965_v30 = vld [vmem:[%s8762_s7 + $0x758] sm:$0xff] }
 0x564   :  { %5004 = vmatpush.msrb.mxu2 %v5979_v26  ;;  %5024 = vmatpush.msrb.mxu3 %v5980_v13  ;;  %v5961_v13 = vld [vmem:[%s8762_s7 + $0x738] sm:$0xff] }
 0x565   :  { %4171 = vmatpush.msra.mxu0 %v5817_v6  ;;  %4985 = vmatpush.msrb.mxu1 %v5974_v41  ;;  %v5957_v41 = vld [vmem:[%s8762_s7 + $0x718] sm:$0xff] }
 0x566   :  { %5005 = vmatpush.msrb.mxu2 %v5975_v27  ;;  %5025 = vmatpush.msrb.mxu3 %v5976_v5  ;;  %v5989_v5 = vld [vmem:[%s8762_s7 + $0x7f8] sm:$0xff] }
 0x567   :  { %5833 = vmatmul.msk.f32.vlgmr.msra.gmra.mxu0 %vm3306_vm14, %v7854_v55  ;;  %5990 = vmatmul.msk.f32.vlgmr.msrb.gmra.mxu1 %vm3306_vm14, %v8326_v33 }
 0x568   :  { %4278 = vmatpush.msrb.mxu0 %v5849_v47  ;;  %5991 = vmatmul.msk.f32.vlgmr.msrb.gmra.mxu2 %vm3306_vm14, %v8326_v33 }
 0x569   :  { %5992 = vmatmul.msk.f32.vlgmr.msrb.gmra.mxu3 %vm3306_vm14, %v8326_v33 }
 0x56a   :  { %4279 = vmatpush.msrb.mxu0 %v5845_v56  ;;  %v3376_v55 = vpop.f32.mrf.mxu0  ;;  %v3567_v18 = vpop.f32.mrf.mxu1  ;;  %v5985_v56 = vld [vmem:[%s8762_s7 + $0x7d8] sm:$0xff] }
 0x56c   :  { %4280 = vmatpush.msrb.mxu0 %v5841_v0 }
 0x56e   :  { %4281 = vmatpush.msrb.mxu0 %v5837_v12  ;;  %v5977_v12 = vld [vmem:[%s8762_s7 + $0x798] sm:$0xff] }
 0x56f   :  { %5853 = vmatmul.msk.f32.vlgmr.msrb.gmra.mxu0 %vm3306_vm14, %v7913_v60  ;;  %v5857_v60 = vld [vmem:[%s8762_s7 + $0x498] sm:$0xff] }
 0x570   :  { %4387 = vmatpush.msra.mxu0 %v5869_v16 }
 0x571   :  { %v8356_v40 = vpop.f32.mrf.mxu2  ;;  %v8358_v48 = vpop.f32.mrf.mxu3 }
 0x572   :  { %4388 = vmatpush.msra.mxu0 %v5865_v7  ;;  %v3396_v3 = vpop.f32.mrf.mxu0  ;;  %v3676_v4 = vpop.f32.mrf.mxu1 }
 0x574   :  { %4389 = vmatpush.msra.mxu0 %v5861_v2 }
 0x576   :  { %4390 = vmatpush.msra.mxu0 %v5857_v60 }
 0x577   :  { %5873 = vmatmul.msk.f32.vlgmr.msra.gmra.mxu0 %vm3306_vm14, %v7972_v61  ;;  %v5877_v61 = vld [vmem:[%s8762_s7 + $0x518] sm:$0xff] }
 0x578   :  { %4496 = vmatpush.msrb.mxu0 %v5889_v23  ;;  %v5093_v23 = vld [vmem:[%s8764_s9 + $0x68] sm:$0xff] }
 0x579   :  { %v3696_v50 = vpop.f32.mrf.mxu2  ;;  %v8374_v11 = vpop.f32.mrf.mxu3 }
 0x57a   :  { %4497 = vmatpush.msrb.mxu0 %v5885_v24  ;;  %v8376_v31 = vpop.f32.mrf.mxu0  ;;  %v3786_v63 = vpop.f32.mrf.mxu1  ;;  %v5092_v24 = vld [vmem:[%s8764_s9 + $0x60] sm:$0xff] }
 0x57c   :  { %4498 = vmatpush.msrb.mxu0 %v5881_v34  ;;  %v5111_v34 = vld [vmem:[%s8764_s9 + $0xf8] sm:$0xff] }
 0x57d   :  { %5168 = vmatpush.msra.mxu2 %v5111_v34  ;;  %v5100_v34 = vld [vmem:[%s8764_s9 + $0xa0] sm:$0xff] }
 0x57e   :  { %4499 = vmatpush.msrb.mxu0 %v5877_v61  ;;  %v5126_v61 = vld [vmem:[%s8764_s9 + $0x170] sm:$0xff] }
 0x57f   :  { %5893 = vmatmul.msk.f32.vlgmr.msrb.gmra.mxu0 %vm3306_vm14, %v8031_v62  ;;  %v5897_v62 = vld [vmem:[%s8762_s7 + $0x598] sm:$0xff] }
 0x580   :  { %4605 = vmatpush.msra.mxu0 %v5909_v17 }
 0x581   :  { %v3806_v52 = vpop.f32.mrf.mxu2  ;;  %v8392_v49 = vpop.f32.mrf.mxu3 }
 0x582   :  { %4606 = vmatpush.msra.mxu0 %v5905_v37  ;;  %v8394_v15 = vpop.f32.mrf.mxu0  ;;  %v8396_v51 = vpop.f32.mrf.mxu1 }
 0x584   :  { %4607 = vmatpush.msra.mxu0 %v5901_v59  ;;  %v5090_v59 = vld [vmem:[%s8764_s9 + $0x50] sm:$0xff] }
 0x586   :  { %4608 = vmatpush.msra.mxu0 %v5897_v62  ;;  %v5089_v62 = vld [vmem:[%s8764_s9 + $0x48] sm:$0xff] }
 0x587   :  { %5913 = vmatmul.msk.f32.vlgmr.msra.gmra.mxu0 %vm3306_vm14, %v8090_v38  ;;  %v5917_v38 = vld [vmem:[%s8762_s7 + $0x618] sm:$0xff] }
 0x588   :  { %4715 = vmatpush.msrb.mxu0 %v5929_v36  ;;  %v5108_v36 = vld [vmem:[%s8764_s9 + $0xe0] sm:$0xff] }
 0x589   :  { %v8412_v9 = vpop.f32.mrf.mxu2  ;;  %v8414_v20 = vpop.f32.mrf.mxu3 }
 0x58a   :  { %4716 = vmatpush.msrb.mxu0 %v5925_v28  ;;  %v3462_v44 = vpop.f32.mrf.mxu0  ;;  %v8416_v54 = vpop.f32.mrf.mxu1  ;;  %v5124_v28 = vld [vmem:[%s8764_s9 + $0x160] sm:$0xff] }
 0x58b   :  { %v3463_v21 = vadd.f32 %v3462_v44, %v3376_v55  ;;  %v5981_v55 = vld [vmem:[%s8762_s7 + $0x7b8] sm:$0xff]  ;;  %v5088_v44 = vld [vmem:[%s8764_s9 + $0x40] sm:$0xff] }
 0x58c   :  { %4717 = vmatpush.msrb.mxu0 %v5921_v35 }
 0x58d   :  { %v3630_v1 = vadd.f32 %v3567_v18, %v3463_v21  ;;  %v5123_v21 = vld [vmem:[%s8764_s9 + $0x158] sm:$0xff] }
 0x58e   :  { %4718 = vmatpush.msrb.mxu0 %v5917_v38  ;;  %v5107_v38 = vld [vmem:[%s8764_s9 + $0xd8] sm:$0xff] }
 0x58f   :  { %5933 = vmatmul.msk.f32.vlgmr.msrb.gmra.mxu0 %vm3306_vm14, %v8149_v57  ;;  %v3739_v39 = vadd.f32 %v3676_v4, %v3630_v1  ;;  %v5937_v57 = vld [vmem:[%s8762_s7 + $0x698] sm:$0xff] }
 0x590   :  { %4824 = vmatpush.msra.mxu0 %v5949_v14  ;;  %v5087_v1 = vld [vmem:[%s8764_s9 + $0x38] sm:$0xff] }
 0x591   :  { %v8432_v43 = vadd.f32 %v3786_v63, %v3739_v39  ;;  %v8434_v22 = vpop.f32.mrf.mxu2  ;;  %v5110_v63 = vld [vmem:[%s8764_s9 + $0xf0] sm:$0xff] }
 0x592   :  { %4825 = vmatpush.msra.mxu0 %v5945_v29  ;;  %v8436_v25 = vpop.f32.mrf.mxu3  ;;  %5169 = vmatpush.msra.mxu2 %v5110_v63  ;;  %v5106_v29 = vld [vmem:[%s8764_s9 + $0xd0] sm:$0xff] }
 0x593   :  { %v5122_v39 = vld [vmem:[%s8764_s9 + $0x150] sm:$0xff] }
 0x594   :  { %4826 = vmatpush.msra.mxu0 %v5941_v10  ;;  %v3482_v19 = vpop.f32.mrf.mxu0  ;;  %v8441_v45 = vpop.f32.mrf.mxu1 }
 0x595   :  { %v3483_v46 = vadd.f32 %v3482_v19, %v3396_v3  ;;  %v5086_v19 = vld [vmem:[%s8764_s9 + $0x30] sm:$0xff] }
 0x596   :  { %4827 = vmatpush.msra.mxu0 %v5937_v57 }
 0x597   :  { %5953 = vmatmul.msk.f32.vlgmr.msra.gmra.mxu0 %vm3306_vm14, %v8208_v42  ;;  %v3631_v26 = vadd.f32 %v8356_v40, %v3483_v46  ;;  %v5095_v40 = vld [vmem:[%s8764_s9 + $0x78] sm:$0xff]  ;;  %v5121_v46 = vld [vmem:[%s8764_s9 + $0x148] sm:$0xff] }
 0x598   :  { %4933 = vmatpush.msrb.mxu0 %v5969_v8  ;;  %5148 = vmatpush.msra.mxu1 %v5095_v40  ;;  %v5105_v8 = vld [vmem:[%s8764_s9 + $0xc8] sm:$0xff]  ;;  %v5102_v40 = vld [vmem:[%s8764_s9 + $0xb0] sm:$0xff] }
 0x599   :  { %v3740_v6 = vadd.f32 %v3696_v50, %v3631_v26  ;;  %v5127_v50 = vld [vmem:[%s8764_s9 + $0x178] sm:$0xff]  ;;  %v5085_v26 = vld [vmem:[%s8764_s9 + $0x28] sm:$0xff] }
 0x59a   :  { %4934 = vmatpush.msrb.mxu0 %v5965_v30  ;;  %5188 = vmatpush.msra.mxu3 %v5127_v50  ;;  %v5116_v50 = vld [vmem:[%s8764_s9 + $0x120] sm:$0xff] }
 0x59b   :  { %v8458_v58 = vadd.f32 %v3806_v52, %v3740_v6  ;;  %v8460_v42 = vpop.f32.mrf.mxu2  ;;  %v5109_v52 = vld [vmem:[%s8764_s9 + $0xe8] sm:$0xff]  ;;  %v5120_v6 = vld [vmem:[%s8764_s9 + $0x140] sm:$0xff] }
 0x59c   :  { %4935 = vmatpush.msrb.mxu0 %v5961_v13  ;;  %v8462_v27 = vpop.f32.mrf.mxu3  ;;  %5189 = vmatpush.msra.mxu3 %v5126_v61  ;;  %v5104_v13 = vld [vmem:[%s8764_s9 + $0xc0] sm:$0xff] }
 0x59d   :  { %5170 = vmatpush.msra.mxu2 %v5109_v52 }
 0x59e   :  { %4936 = vmatpush.msrb.mxu0 %v5957_v41  ;;  %v3502_v47 = vpop.f32.mrf.mxu0  ;;  %v8467_v32 = vpop.f32.mrf.mxu1 }
 0x59f   :  { %5973 = vmatmul.msk.f32.vlgmr.msrb.gmra.mxu0 %vm3306_vm14, %v8267_v53  ;;  %v3503_v0 = vadd.f32 %v3502_v47, %v8376_v31  ;;  %v5091_v31 = vld [vmem:[%s8764_s9 + $0x58] sm:$0xff]  ;;  %5171 = vmatpush.msra.mxu2 %v5108_v36 }
 0x5a0   :  { %5042 = vmatpush.msra.mxu0 %v5989_v5  ;;  %v5084_v5 = vld [vmem:[%s8764_s9 + $0x20] sm:$0xff]  ;;  %v5103_v47 = vld [vmem:[%s8764_s9 + $0xb8] sm:$0xff] }
 0x5a1   :  { %v3632_v18 = vadd.f32 %v8358_v48, %v3503_v0  ;;  %v5094_v48 = vld [vmem:[%s8764_s9 + $0x70] sm:$0xff]  ;;  %5172 = vmatpush.msra.mxu2 %v5107_v38  ;;  %v5112_v38 = vld [vmem:[%s8764_s9 + $0x100] sm:$0xff] }
 0x5a2   :  { %5043 = vmatpush.msra.mxu0 %v5985_v56  ;;  %5149 = vmatpush.msra.mxu1 %v5094_v48  ;;  %v5119_v56 = vld [vmem:[%s8764_s9 + $0x138] sm:$0xff]  ;;  %v5118_v48 = vld [vmem:[%s8764_s9 + $0x130] sm:$0xff] }
 0x5a3   :  { %v3741_v53 = vadd.f32 %v8374_v11, %v3632_v18  ;;  %5173 = vmatpush.msra.mxu2 %v5106_v29 }
 0x5a4   :  { %5044 = vmatpush.msra.mxu0 %v5981_v55  ;;  %5150 = vmatpush.msra.mxu1 %v5093_v23  ;;  %v5117_v23 = vld [vmem:[%s8764_s9 + $0x128] sm:$0xff] }
 0x5a5   :  { %v8484_v16 = vadd.f32 %v8392_v49, %v3741_v53  ;;  %v8486_v7 = vpop.f32.mrf.mxu2  ;;  %v5125_v49 = vld [vmem:[%s8764_s9 + $0x168] sm:$0xff]  ;;  %5174 = vmatpush.msra.mxu2 %v5105_v8  ;;  %v5083_v53 = vld [vmem:[%s8764_s9 + $0x18] sm:$0xff] }
 0x5a6   :  { %5045 = vmatpush.msra.mxu0 %v5977_v12  ;;  %v8488_v2 = vpop.f32.mrf.mxu3  ;;  %5151 = vmatpush.msra.mxu1 %v5092_v24  ;;  %v5081_v24 = vld [vmem:[%s8764_s9 + $0x8] sm:$0xff] }
 0x5a7   :  { %5993 = vmatmul.msk.f32.vlgmr.msra.gmra.mxu0 %vm3306_vm14, %v8326_v33  ;;  %5190 = vmatpush.msra.mxu3 %v5125_v49  ;;  %v3960_v49 = vadd.f32 %v8414_v20, %v8484_v16  ;;  %v5098_v20 = vld [vmem:[%s8764_s9 + $0x90] sm:$0xff]  ;;  %v5097_v16 = vld [vmem:[%s8764_s9 + $0x88] sm:$0xff] }
 0x5a8   :  { %v3522_v3 = vpop.f32.mrf.mxu0  ;;  %v8498_v4 = vpop.f32.mrf.mxu1  ;;  %5152 = vmatpush.msra.mxu1 %v5091_v31  ;;  %5175 = vmatpush.msra.mxu2 %v5104_v13  ;;  %v3958_v31 = vadd.f32 %v8396_v51, %v8432_v43  ;;  %v5099_v51 = vld [vmem:[%s8764_s9 + $0x98] sm:$0xff] }
 0x5a9   :  { %v3523_v60 = vadd.f32 %v3522_v3, %v8394_v15  ;;  %5191 = vmatpush.msra.mxu3 %v5124_v28  ;;  %v5082_v3 = vld [vmem:[%s8764_s9 + $0x10] sm:$0xff]  ;;  %v5115_v43 = vld [vmem:[%s8764_s9 + $0x118] sm:$0xff]  ;;  %v4069_v36 = vadd.f32 %v8436_v25, %v3960_v49  ;;  %v5096_v28 = vld [vmem:[%s8764_s9 + $0x80] sm:$0xff] }
 0x5aa   :  { %5153 = vmatpush.msra.mxu1 %v5090_v59  ;;  %5176 = vmatpush.msra.mxu2 %v5103_v47  ;;  %v4067_v52 = vadd.f32 %v8416_v54, %v3958_v31  ;;  %v5114_v54 = vld [vmem:[%s8764_s9 + $0x110] sm:$0xff]  ;;  %v5141_v49 = vld [vmem:[%s8764_s9 + $0x1e8] sm:$0xff] }
 0x5ab   :  { %5192 = vmatpush.msra.mxu3 %v5123_v21  ;;  %v4178_v25 = vadd.f32 %v8462_v27, %v4069_v36  ;;  %v8683_v27 = vld [vmem:[%s8763_s8] sm:$0xf] }
 0x5ac   :  { %5154 = vmatpush.msra.mxu1 %v5089_v62  ;;  %5177 = vmatpush.msra.mxu2 %v5102_v40  ;;  %v3959_v62 = vadd.f32 %v8412_v9, %v8458_v58  ;;  %v5113_v9 = vld [vmem:[%s8764_s9 + $0x108] sm:$0xff]  ;;  %v4176_v58 = vadd.f32 %v8441_v45, %v4067_v52  ;;  %v5136_v36 = vld [vmem:[%s8764_s9 + $0x1c0] sm:$0xff] }
 0x5ad   :  { %5193 = vmatpush.msra.mxu3 %v5122_v39  ;;  %v4288_v8 = vadd.f32 %v8488_v2, %v4178_v25  ;;  %v5131_v25 = vld [vmem:[%s8764_s9 + $0x198] sm:$0xff] }
 0x5ae   :  { %5155 = vmatpush.msra.mxu1 %v5088_v44  ;;  %v4068_v44 = vadd.f32 %v8434_v22, %v3959_v62  ;;  %v4286_v21 = vadd.f32 %v8467_v32, %v4176_v58  ;;  %v5137_v58 = vld [vmem:[%s8764_s9 + $0x1c8] sm:$0xff] }
 0x5af   :  { %v8504_v33 = vpop.f32.mrf.mxu2  ;;  %5194 = vmatpush.msra.mxu3 %v5121_v46 }
 0x5b0   :  { %v8515_v11 = vpop.f32.mrf.mxu3  ;;  %5156 = vmatpush.msra.mxu1 %v5087_v1  ;;  %v4395_v45 = vadd.f32 %v8498_v4, %v4286_v21  ;;  %v4177_v39 = vadd.f32 %v8460_v42, %v4068_v44  ;;  %v5135_v44 = vld [vmem:[%s8764_s9 + $0x1b8] sm:$0xff]  ;;  %v5133_v21 = vld [vmem:[%s8764_s9 + $0x1a8] sm:$0xff] }
 0x5b1   :  { %5195 = vmatpush.msra.mxu3 %v5120_v6  ;;  %v4397_v42 = vadd.f32 %v8515_v11, %v4288_v8 }
 0x5b2   :  { %v3627_v17 = vpop.f32.mrf.mxu0  ;;  %v8526_v37 = vpop.f32.mrf.mxu1  ;;  %5157 = vmatpush.msra.mxu1 %v5086_v19  ;;  %v4287_v46 = vadd.f32 %v8486_v7, %v4177_v39  ;;  %v5056_v7 = vperm.slane %v8683_v27, 0  ;;  %v5129_v39 = vld [vmem:[%s8764_s9 + $0x188] sm:$0xff] }
 0x5b3   :  { %v3633_v15 = vadd.f32 %v3627_v17, %v3523_v60  ;;  %5196 = vmatpush.msra.mxu3 %v5119_v56  ;;  %v5101_v60 = vld [vmem:[%s8764_s9 + $0xa8] sm:$0xff]  ;;  %v4504_v19 = vadd.f32 %v8526_v37, %v4395_v45  ;;  %v5130_v45 = vld [vmem:[%s8764_s9 + $0x190] sm:$0xff] }
 0x5b4   :  { %5158 = vmatpush.msra.mxu1 %v5085_v26  ;;  %5178 = vmatpush.msra.mxu2 %v5101_v60  ;;  %v4396_v26 = vadd.f32 %v8504_v33, %v4287_v46 }
 0x5b5   :  { %5197 = vmatpush.msra.mxu3 %v5118_v48 }
 0x5b6   :  { %5159 = vmatpush.msra.mxu1 %v5084_v5  ;;  %5179 = vmatpush.msra.mxu2 %v5100_v34 }
 0x5b7   :  { %5198 = vmatpush.msra.mxu3 %v5117_v23 }
 0x5b8   :  { %5160 = vmatpush.msra.mxu1 %v5083_v53  ;;  %5180 = vmatpush.msra.mxu2 %v5099_v51 }
 0x5b9   :  { %v8546_v35 = vpop.f32.mrf.mxu2  ;;  %5199 = vmatpush.msra.mxu3 %v5116_v50 }
 0x5ba   :  { %v8557_v14 = vpop.f32.mrf.mxu3  ;;  %5161 = vmatpush.msra.mxu1 %v5082_v3  ;;  %5181 = vmatpush.msra.mxu2 %v5098_v20  ;;  %v4505_v37 = vadd.f32 %v8546_v35, %v4396_v26 }
 0x5bb   :  { %5200 = vmatpush.msra.mxu3 %v5115_v43  ;;  %v4506_v2 = vadd.f32 %v8557_v14, %v4397_v42  ;;  %v5057_v14 = vperm.slane %v8683_v27, 1  ;;  %v5140_v43 = vld [vmem:[%s8764_s9 + $0x1e0] sm:$0xff] }
 0x5bc   :  { %v3736_v10 = vpop.f32.mrf.mxu0  ;;  %v8568_v57 = vpop.f32.mrf.mxu1  ;;  %5162 = vmatpush.msra.mxu1 %v5081_v24  ;;  %5182 = vmatpush.msra.mxu2 %v5097_v16  ;;  %v5139_v16 = vld [vmem:[%s8764_s9 + $0x1d8] sm:$0xff] }
 0x5bd   :  { %v3742_v30 = vadd.f32 %v3736_v10, %v3633_v15  ;;  %v5080_v15 = vld [vmem:[%s8764_s9] sm:$0xff]  ;;  %5201 = vmatpush.msra.mxu3 %v5114_v54  ;;  %v4613_v32 = vadd.f32 %v8568_v57, %v4504_v19 }
 0x5be   :  { %5163 = vmatpush.msra.mxu1 %v5080_v15  ;;  %5183 = vmatpush.msra.mxu2 %v5096_v28  ;;  %v5128_v19 = vld [vmem:[%s8764_s9 + $0x180] sm:$0xff] }
 0x5bf   :  { %5202 = vmatpush.msra.mxu3 %v5113_v9  ;;  %v5138_v9 = vld [vmem:[%s8764_s9 + $0x1d0] sm:$0xff] }
 0x5c1   :  { %5203 = vmatpush.msra.mxu3 %v5112_v38  ;;  %v5134_v38 = vld [vmem:[%s8764_s9 + $0x1b0] sm:$0xff] }
 0x5c3   :  { %v8588_v41 = vpop.f32.mrf.mxu2 }
 0x5c4   :  { %v8599_v0 = vpop.f32.mrf.mxu3  ;;  %v4614_v5 = vadd.f32 %v8588_v41, %v4505_v37  ;;  %v5058_v41 = vperm.slane %v8683_v27, 2 }
 0x5c5   :  { %v4615_v56 = vadd.f32 %v8599_v0, %v4506_v2 }
 0x5c6   :  { %v3846_v55 = vpop.f32.mrf.mxu0  ;;  %v4660_v18 = vpop.f32.mrf.mxu1 }
 0x5c7   :  { %v8601_v12 = vadd.f32 %v3846_v55, %v3742_v30  ;;  %v4723_v30 = vadd.f32 %v4660_v18, %v4613_v32 }
 0x5cd   :  { %v4680_v63 = vpop.f32.mrf.mxu2 }
 0x5ce   :  { %v4700_v61 = vpop.f32.mrf.mxu3  ;;  %v4724_v18 = vadd.f32 %v4680_v63, %v4614_v5  ;;  %v5143_v63 = vld [vmem:[%s8764_s9 + $0x1f8] sm:$0xff] }
 0x5cf   :  { %v4725_v11 = vadd.f32 %v4700_v61, %v4615_v56  ;;  %v5142_v61 = vld [vmem:[%s8764_s9 + $0x1f0] sm:$0xff]  ;;  %5208 = vmatpush.msrb.mxu0 %v5143_v63 }
 0x5d0   :  { %v8632_v17 = vpop.f32.mrf.mxu0  ;;  %v4769_v59 = vpop.f32.mrf.mxu1 }
 0x5d1   :  { %v4832_v4 = vadd.f32 %v4769_v59, %v4723_v30  ;;  %5209 = vmatpush.msrb.mxu0 %v5142_v61  ;;  %v3961_v8 = vadd.f32 %v8632_v17, %v8601_v12 }
 0x5d3   :  { %5210 = vmatpush.msrb.mxu0 %v5141_v49 }
 0x5d5   :  { %5211 = vmatpush.msrb.mxu0 %v5140_v43 }
 0x5d7   :  { %v4789_v1 = vpop.f32.mrf.mxu2  ;;  %5212 = vmatpush.msrb.mxu0 %v5139_v16 }
 0x5d8   :  { %v4809_v29 = vpop.f32.mrf.mxu3  ;;  %v4833_v40 = vadd.f32 %v4789_v1, %v4724_v18  ;;  %v5132_v1 = vld [vmem:[%s8764_s9 + $0x1a0] sm:$0xff] }
 0x5d9   :  { %v4834_v48 = vadd.f32 %v4809_v29, %v4725_v11  ;;  %5213 = vmatpush.msrb.mxu0 %v5138_v9 }
 0x5da   :  { %v8673_v10 = vpop.f32.mrf.mxu0  ;;  %v4878_v22 = vpop.f32.mrf.mxu1 }
 0x5db   :  { %v4941_v57 = vadd.f32 %v4878_v22, %v4832_v4  ;;  %5214 = vmatpush.msrb.mxu0 %v5137_v58  ;;  %v4070_v32 = vadd.f32 %v8673_v10, %v3961_v8  ;;  %v5999_v10 = vld [vmem:[%s8765_s10] ss:$0 sm:$0xff] }
 0x5dd   :  { %5215 = vmatpush.msrb.mxu0 %v5136_v36 }
 0x5df   :  { %5216 = vmatpush.msrb.mxu0 %v5135_v44 }
 0x5e1   :  { %v4898_v13 = vpop.f32.mrf.mxu2  ;;  %5217 = vmatpush.msrb.mxu0 %v5134_v38 }
 0x5e2   :  { %v4918_v6 = vpop.f32.mrf.mxu3  ;;  %v4942_v3 = vadd.f32 %v4898_v13, %v4833_v40 }
 0x5e3   :  { %v4943_v60 = vadd.f32 %v4918_v6, %v4834_v48  ;;  %5218 = vmatpush.msrb.mxu0 %v5133_v21 }
 0x5e4   :  { %v8690_v33 = vpop.f32.mrf.mxu0  ;;  %v4987_v47 = vpop.f32.mrf.mxu1 }
 0x5e5   :  { %v5050_v55 = vadd.f32 %v4987_v47, %v4941_v57  ;;  %5219 = vmatpush.msrb.mxu0 %v5132_v1  ;;  %v4179_v30 = vadd.f32 %v8690_v33, %v4070_v32 }
 0x5e7   :  { %v5064_v53 = vadd.f32 %v5056_v7, %v5050_v55  ;;  %5220 = vmatpush.msrb.mxu0 %v5131_v25  ;;  %v5059_v7 = vperm.slane %v8683_v27, 3 }
 0x5e9   :  { %vm5068_vm9 = vcmp.ge.f32.partialorder %v5064_v53, 0.0  ;;  %v5072_v35 = vmul.f32 0.01, %v5064_v53  ;;  %5221 = vmatpush.msrb.mxu0 %v5130_v45 }
 0x5eb   :  { %v5007_v23 = vpop.f32.mrf.mxu2  ;;  %v5076_v24 = vsel %vm5068_vm9, %v5064_v53, %v5072_v35  ;;  %5222 = vmatpush.msrb.mxu0 %v5129_v39 }
 0x5ec   :  { %v5051_v34 = vadd.f32 %v5007_v23, %v4942_v3  ;;  %v5027_v50 = vpop.f32.mrf.mxu3  ;;  %v4283_v31 = vpop.f32.mrf.mxu0  ;;  %5164 = vmatmul.f32.vlgmr.msra.gmra.mxu1 %v5076_v24 }
 0x5ed   :  { %v5052_v0 = vadd.f32 %v5027_v50, %v4943_v60  ;;  %5223 = vmatpush.msrb.mxu0 %v5128_v19  ;;  %v4289_v26 = vadd.f32 %v4283_v31, %v4179_v30 }
 0x5ee   :  { %v5065_v59 = vadd.f32 %v5057_v14, %v5051_v34 }
 0x5ef   :  { %v5066_v52 = vadd.f32 %v5058_v41, %v5052_v0 }
 0x5f0   :  { %vm5069_vm1 = vcmp.ge.f32.partialorder %v5065_v59, 0.0  ;;  %v5073_v15 = vmul.f32 0.01, %v5065_v59 }
 0x5f1   :  { %vm5070_vm10 = vcmp.ge.f32.partialorder %v5066_v52, 0.0  ;;  %v5074_v51 = vmul.f32 0.01, %v5066_v52 }
 0x5f2   :  { %v5077_v62 = vsel %vm5069_vm1, %v5065_v59, %v5073_v15 }
 0x5f3   :  { %5184 = vmatmul.f32.vlgmr.msra.gmra.mxu2 %v5077_v62  ;;  %v5078_v20 = vsel %vm5070_vm10, %v5066_v52, %v5074_v51 }
 0x5f4   :  { %5204 = vmatmul.f32.vlgmr.msra.gmra.mxu3 %v5078_v20  ;;  %v4392_v54 = vpop.f32.mrf.mxu0 }
 0x5f5   :  { %v4398_v42 = vadd.f32 %v4392_v54, %v4289_v26 }
 0x5fc   :  { %v4501_v28 = vpop.f32.mrf.mxu0 }
 0x5fd   :  { %v4507_v4 = vadd.f32 %v4501_v28, %v4398_v42 }
 0x604   :  { %v4610_v29 = vpop.f32.mrf.mxu0 }
 0x605   :  { %v4616_v37 = vadd.f32 %v4610_v29, %v4507_v4 }
 0x60c   :  { %v4720_v22 = vpop.f32.mrf.mxu0 }
 0x60d   :  { %v4726_v6 = vadd.f32 %v4720_v22, %v4616_v37 }
 0x614   :  { %v4829_v46 = vpop.f32.mrf.mxu0 }
 0x615   :  { %v4835_v2 = vadd.f32 %v4829_v46, %v4726_v6 }
 0x61c   :  { %v4938_v13 = vpop.f32.mrf.mxu0 }
 0x61d   :  { %v4944_v57 = vadd.f32 %v4938_v13, %v4835_v2 }
 0x624   :  { %v5047_v5 = vpop.f32.mrf.mxu0 }
 0x625   :  { %v5053_v47 = vadd.f32 %v5047_v5, %v4944_v57 }
 0x627   :  { %v5067_v56 = vadd.f32 %v5059_v7, %v5053_v47 }
 0x629   :  { %vm5071_vm2 = vcmp.ge.f32.partialorder %v5067_v56, 0.0  ;;  %v5075_v12 = vmul.f32 0.01, %v5067_v56 }
 0x62b   :  { %v5079_v17 = vsel %vm5071_vm2, %v5067_v56, %v5075_v12 }
 0x62c   :  { %5224 = vmatmul.f32.vlgmr.msrb.gmra.mxu0 %v5079_v17 }
 0x669   :  { %v5165_v33 = vpop.f32.mrf.mxu1 }
 0x66a   :  { %v5166_v18 = vadd.f32 %v5999_v10, %v5165_v33 }
 0x676   :  { %v5185_v55 = vpop.f32.mrf.mxu2 }
 0x677   :  { %v5186_v11 = vadd.f32 %v5185_v55, %v5166_v18  ;;  %v5205_v53 = vpop.f32.mrf.mxu3 }
 0x679   :  { %v5206_v27 = vadd.f32 %v5205_v53, %v5186_v11 }
 0x6a9   :  { %v5225_v40 = vpop.f32.mrf.mxu0 }
 0x6aa   :  { %v5226_v48 = vadd.f32 %v5225_v40, %v5206_v27 }
 0x6ac   :  { %5228 = vst.msk [vmem:[#allocation5] sm:$0x3] %vm152_vm12, %v5226_v48 }
 0x6ad   :  { %5239 = dma.vmem_to_hbm [thread:$0]  %s5235_s30, 32, %s5237_s14, [#allocation6]  }
 0x6ae   :  { %6025 = dma.done.wait [#allocation6], 32  }
 0x6af   :  { %6026 = vsyncadd [#allocation6], 4294967264 }
 0x6b0   :  { %5244 = vsyncpa [#allocation6], 1 }

</bundles_post_ra>
